<compile_context>
chip_gen: v5e
topology: v5e:2x2
jax: 0.10.0
libtpu: 0.0.40
codegen_flags: <defaults>
</compile_context>

<pallas_src>
import functools

import jax
import jax.numpy as jnp
import numpy as np
from jax import lax
from jax.experimental import pallas as pl
from jax.experimental.pallas import tpu as pltpu


def _silu(x):
    # exp and reciprocal both land on the EUP slot (idle otherwise here).
    return x * pl.reciprocal(1.0 + jnp.exp(-x), approx=True)


def mobilenet_block_kernel(x_ref, masks_ref, w1_ref, bn_ec_ref, wdw_ref,
                           wse1_ref, bn_se_ref, wse2_ref, pool_ref, exp_ref,
                           w3_ref, bn_c_ref, o_ref, *, offsets):
    NSB = x_ref.shape[-1]                      # packed lane width (IPB * S)

    x = x_ref[...]                             # (C, NSB) f32
    bn_ec = bn_ec_ref[...]                     # (EC, 4)  [s1 b1 s2 b2]
    s1, b1 = bn_ec[:, 0:1], bn_ec[:, 1:2]
    s2, b2 = bn_ec[:, 2:3], bn_ec[:, 3:4]

    # --- conv1 (1x1, no bias) + bn1 + SiLU: bf16 MXU, f32 accumulation -----
    h = jnp.dot(w1_ref[...], x.astype(jnp.bfloat16),
                preferred_element_type=jnp.float32)          # (EC, NSB)
    h = _silu(h * s1 + b1)

    # --- conv2: depthwise KxK, SAME (odd K), exact f32 ----------------------
    # Tap t at flattened offset `off`: lane-roll on the XLU, 0/1 boundary mask
    # and per-channel scale on the VPU.  Masks also stop cross-image bleed.
    wdw = wdw_ref[...]                          # (EC, K*K)
    masks = masks_ref[...]                      # (K*K, NSB) 0/1
    acc = jnp.zeros_like(h)
    for t, off in enumerate(offsets):
        tap = wdw[:, t:t + 1]                   # (EC, 1)
        if off == 0:
            acc = acc + h * tap                 # center tap: mask is all-ones
        else:
            rolled = pltpu.roll(h, shift=(-off) % NSB, axis=1)
            acc = acc + rolled * tap * masks[t:t + 1, :]
    h2 = _silu(acc * s2 + b2)                   # conv2 bias folded into b2

    # --- SE: per-image avg pool -> 1x1 -> bn -> relu -> 1x1 -> hardsigmoid --
    h2b = h2.astype(jnp.bfloat16)
    pooled = jnp.dot(h2b, pool_ref[...],
                     preferred_element_type=jnp.float32)     # (EC, IPB)
    bn_se = bn_se_ref[...]                                   # (SE, 2)
    mid = jnp.dot(wse1_ref[...], pooled.astype(jnp.bfloat16),
                  preferred_element_type=jnp.float32)        # (SE, IPB)
    mid = jnp.maximum(mid * bn_se[:, 0:1] + bn_se[:, 1:2], 0.0)
    gate = jnp.dot(wse2_ref[...], mid.astype(jnp.bfloat16),
                   preferred_element_type=jnp.float32)       # (EC, IPB)
    gate = jnp.clip(gate * (1.0 / 6.0) + 0.5, 0.0, 1.0)      # Hardsigmoid
    gate_full = jnp.dot(gate.astype(jnp.bfloat16), exp_ref[...],
                        preferred_element_type=jnp.float32)  # (EC, NSB)
    h2s = h2 * gate_full

    # --- conv3 (1x1, no bias) + bn3 + residual + SiLU -----------------------
    bn_c = bn_c_ref[...]                                     # (C, 2)
    h3 = jnp.dot(w3_ref[...], h2s.astype(jnp.bfloat16),
                 preferred_element_type=jnp.float32)         # (C, NSB)
    h3 = h3 * bn_c[:, 0:1] + bn_c[:, 1:2]
    o_ref[...] = _silu(h3 + x).astype(o_ref.dtype)


def _tap_masks(H, W, K, ipb):
    """0/1 row per tap: 1 where the tap source (i+di-P, j+dj-P) is in bounds.
    Tiled over the ipb packed images (same mask per image)."""
    P = K // 2
    S = H * W
    m = np.zeros((K * K, S), np.float32)
    for di in range(K):
        for dj in range(K):
            for i in range(H):
                for j in range(W):
                    if 0 <= i + di - P < H and 0 <= j + dj - P < W:
                        m[di * K + dj, i * W + j] = 1.0
    return jnp.asarray(np.tile(m, (1, ipb)))


def _pool_matrix(S, ipb):
    """(ipb*S, ipb) per-image mean-pooling matrix (1/S is exact in bf16)."""
    p = np.zeros((ipb * S, ipb), np.float32)
    for n in range(ipb):
        p[n * S:(n + 1) * S, n] = 1.0 / S
    return jnp.asarray(p, dtype=jnp.bfloat16)


def _expand_matrix(S, ipb):
    """(ipb, ipb*S) 0/1 matrix broadcasting per-image SE gates back to lanes."""
    e = np.zeros((ipb, ipb * S), np.float32)
    for n in range(ipb):
        e[n, n * S:(n + 1) * S] = 1.0
    return jnp.asarray(e, dtype=jnp.bfloat16)


def mobilenet_block(x_nchw, params, kernel_size):
    N, C, H, W = x_nchw.shape
    K = kernel_size
    P = K // 2
    S = H * W

    # Pack all images along the lane axis -> lane-dense (C, N*S) working set.
    IPB = N
    NB = N // IPB
    NSB = IPB * S

    x = (x_nchw.reshape(N, C, S).transpose(1, 0, 2)
         .reshape(C, N * S).astype(jnp.float32))

    (w1, s1, b1, wdw, s2, b2, wse1, sse, bse, wse2, w3, s3, b3) = params

    masks = _tap_masks(H, W, K, IPB)                     # (K*K, NSB) f32
    pool = _pool_matrix(S, IPB)                          # (NSB, IPB) bf16
    expand = _expand_matrix(S, IPB)                      # (IPB, NSB) bf16

    # Pack BN scale/shift columns to avoid lane-padding many (*, 1) tiles.
    bn_ec = jnp.concatenate([s1, b1, s2, b2], axis=1).astype(jnp.float32)
    bn_se = jnp.concatenate([sse, bse], axis=1).astype(jnp.float32)
    bn_c = jnp.concatenate([s3, b3], axis=1).astype(jnp.float32)

    consts = (masks, w1.astype(jnp.bfloat16), bn_ec, wdw,
              wse1.astype(jnp.bfloat16), bn_se, wse2.astype(jnp.bfloat16),
              pool, expand, w3.astype(jnp.bfloat16), bn_c)

    offsets = tuple((di - P) * W + (dj - P)
                    for di in range(K) for dj in range(K))
    kern = functools.partial(mobilenet_block_kernel, offsets=offsets)

    def rep(a):
        return pl.BlockSpec(a.shape, lambda n, _nd=a.ndim: (0,) * _nd)

    out = pl.pallas_call(
        kern,
        out_shape=jax.ShapeDtypeStruct((C, N * S), jnp.float32),
        grid=(NB,),
        in_specs=[pl.BlockSpec((C, NSB), lambda n: (0, n))]
                 + [rep(a) for a in consts],
        out_specs=pl.BlockSpec((C, NSB), lambda n: (0, n)),
        compiler_params=pltpu.CompilerParams(
            dimension_semantics=("parallel",)),
    )(x, *consts)

    return (out.reshape(C, N, S).transpose(1, 0, 2)
            .reshape(N, C, H, W).astype(x_nchw.dtype))


def make_params(key, C, K):
    """Deterministic synthetic params; BN folded to (scale, shift) columns."""
    EC = 4 * C
    SE = max(EC // 4, 8)
    ks = jax.random.split(key, 10)

    def bn(k, n):
        kg, kb, km, kv = jax.random.split(k, 4)
        gamma = jax.random.uniform(kg, (n,), minval=0.8, maxval=1.2)
        beta = 0.1 * jax.random.normal(kb, (n,))
        mean = 0.1 * jax.random.normal(km, (n,))
        var = jax.random.uniform(kv, (n,), minval=0.5, maxval=1.5)
        scale = gamma / jnp.sqrt(var + 1e-5)
        shift = beta - mean * scale
        return (scale.reshape(-1, 1).astype(jnp.float32),
                shift.reshape(-1, 1).astype(jnp.float32))

    w1 = 0.2 * jax.random.normal(ks[0], (EC, C), jnp.float32)
    s1, b1 = bn(ks[1], EC)
    wdw = 0.2 * jax.random.normal(ks[2], (EC, K * K), jnp.float32)
    bias2 = 0.1 * jax.random.normal(ks[3], (EC, 1), jnp.float32)
    s2, b2 = bn(ks[4], EC)
    b2 = b2 + bias2 * s2                     # fold conv2 bias into bn2 shift
    wse1 = 0.2 * jax.random.normal(ks[5], (SE, EC), jnp.float32)
    sse, bse = bn(ks[6], SE)
    wse2 = 0.2 * jax.random.normal(ks[7], (EC, SE), jnp.float32)
    w3 = 0.2 * jax.random.normal(ks[8], (C, EC), jnp.float32)
    s3, b3 = bn(ks[9], C)
    return (w1, s1, b1, wdw, s2, b2, wse1, sse, bse, wse2, w3, s3, b3)


def ref_forward(x, params, K):
    """Pure-JAX NCHW reference (independent of the kernel implementation)."""
    w1, s1, b1, wdw, s2, b2, wse1, sse, bse, wse2, w3, s3, b3 = params
    N, C, H, W = x.shape
    EC = 4 * C
    bc = lambda v: v.reshape(1, -1, 1, 1)

    h = jnp.einsum('nchw,ec->nehw', x, w1) * bc(s1) + bc(b1)
    h = h * jax.nn.sigmoid(h)

    dw = wdw.reshape(EC, 1, K, K)
    h2 = lax.conv_general_dilated(h, dw, (1, 1), 'SAME',
                                  dimension_numbers=('NCHW', 'OIHW', 'NCHW'),
                                  feature_group_count=EC)
    h2 = h2 * bc(s2) + bc(b2)
    h2 = h2 * jax.nn.sigmoid(h2)

    pooled = jnp.mean(h2, axis=(2, 3))                       # (N, EC)
    se = jnp.einsum('ne,de->nd', pooled, wse1) * sse[:, 0] + bse[:, 0]
    se = jnp.maximum(se, 0.0)
    se = jnp.einsum('nd,ed->ne', se, wse2)
    se = jnp.clip(se / 6.0 + 0.5, 0.0, 1.0)
    h2 = h2 * se[:, :, None, None]

    h3 = jnp.einsum('nehw,ce->nchw', h2, w3) * bc(s3) + bc(b3)
    out = h3 + x
    return out * jax.nn.sigmoid(out)


if __name__ == "__main__":
    key = jax.random.PRNGKey(0)
    kx, kp = jax.random.split(key)

    # MobileNetBlock(kernel_size=3, size=32) on a (2, 32, 8, 8) NCHW input.
    N, C, H, W = 2, 32, 8, 8
    K = 3

    x = jax.random.normal(kx, (N, C, H, W), jnp.float32)
    params = make_params(kp, C, K)

    out = jax.block_until_ready(mobilenet_block(x, params, K))
    ref = jax.block_until_ready(ref_forward(x, params, K))

    # Tolerance sized for bf16 MXU operands (f32 accumulation) vs f32 reference.
    np.testing.assert_allclose(np.asarray(out), np.asarray(ref),
                               rtol=2e-2, atol=5e-2)
    print("KERNEL_OK")
</pallas_src>

<mosaic_0001>
module attributes {stable_mosaic.version = 11 : i64} {
  func.func @mobilenet_block_kernel(%arg0: i32, %arg1: memref<32x128xf32, #tpu.memory_space<vmem>>, %arg2: memref<9x128xf32, #tpu.memory_space<vmem>>, %arg3: memref<128x32xbf16, #tpu.memory_space<vmem>>, %arg4: memref<128x4xf32, #tpu.memory_space<vmem>>, %arg5: memref<128x9xf32, #tpu.memory_space<vmem>>, %arg6: memref<32x128xbf16, #tpu.memory_space<vmem>>, %arg7: memref<32x2xf32, #tpu.memory_space<vmem>>, %arg8: memref<128x32xbf16, #tpu.memory_space<vmem>>, %arg9: memref<128x2xbf16, #tpu.memory_space<vmem>>, %arg10: memref<2x128xbf16, #tpu.memory_space<vmem>>, %arg11: memref<32x128xbf16, #tpu.memory_space<vmem>>, %arg12: memref<32x2xf32, #tpu.memory_space<vmem>>, %arg13: memref<32x128xf32, #tpu.memory_space<vmem>>) attributes {dimension_semantics = [#tpu.dimension_semantics<parallel>], iteration_bounds = array<i64: 1>, scalar_prefetch = 0 : i64, scratch_operands = 0 : i64, tpu.core_type = #tpu.core_type<tc>, window_params = [{transform_indices = @transform_0, window_bounds = array<i64: 32, 128>}, {pipeline_mode = #tpu.pipeline_mode<synchronous>, transform_indices = @transform_1, window_bounds = array<i64: 9, 128>}, {pipeline_mode = #tpu.pipeline_mode<synchronous>, transform_indices = @transform_2, window_bounds = array<i64: 128, 32>}, {pipeline_mode = #tpu.pipeline_mode<synchronous>, transform_indices = @transform_3, window_bounds = array<i64: 128, 4>}, {pipeline_mode = #tpu.pipeline_mode<synchronous>, transform_indices = @transform_4, window_bounds = array<i64: 128, 9>}, {pipeline_mode = #tpu.pipeline_mode<synchronous>, transform_indices = @transform_5, window_bounds = array<i64: 32, 128>}, {pipeline_mode = #tpu.pipeline_mode<synchronous>, transform_indices = @transform_6, window_bounds = array<i64: 32, 2>}, {pipeline_mode = #tpu.pipeline_mode<synchronous>, transform_indices = @transform_7, window_bounds = array<i64: 128, 32>}, {pipeline_mode = #tpu.pipeline_mode<synchronous>, transform_indices = @transform_8, window_bounds = array<i64: 128, 2>}, {pipeline_mode = #tpu.pipeline_mode<synchronous>, transform_indices = @transform_9, window_bounds = array<i64: 2, 128>}, {pipeline_mode = #tpu.pipeline_mode<synchronous>, transform_indices = @transform_10, window_bounds = array<i64: 32, 128>}, {pipeline_mode = #tpu.pipeline_mode<synchronous>, transform_indices = @transform_11, window_bounds = array<i64: 32, 2>}, {transform_indices = @transform_12, window_bounds = array<i64: 32, 128>}]} {
    %c0 = arith.constant 0 : index
    %c0_0 = arith.constant 0 : index
    %0 = vector.load %arg1[%c0, %c0_0] : memref<32x128xf32, #tpu.memory_space<vmem>>, vector<32x128xf32>
    %c0_1 = arith.constant 0 : index
    %c0_2 = arith.constant 0 : index
    %1 = vector.load %arg4[%c0_1, %c0_2] : memref<128x4xf32, #tpu.memory_space<vmem>>, vector<128x4xf32>
    %2 = vector.extract_strided_slice %1 {offsets = [0, 0], sizes = [128, 1], strides = [1, 1]} : vector<128x4xf32> to vector<128x1xf32>
    %3 = vector.extract_strided_slice %1 {offsets = [0, 1], sizes = [128, 1], strides = [1, 1]} : vector<128x4xf32> to vector<128x1xf32>
    %4 = vector.extract_strided_slice %1 {offsets = [0, 2], sizes = [128, 1], strides = [1, 1]} : vector<128x4xf32> to vector<128x1xf32>
    %5 = vector.extract_strided_slice %1 {offsets = [0, 3], sizes = [128, 1], strides = [1, 1]} : vector<128x4xf32> to vector<128x1xf32>
    %c0_3 = arith.constant 0 : index
    %c0_4 = arith.constant 0 : index
    %6 = vector.load %arg3[%c0_3, %c0_4] : memref<128x32xbf16, #tpu.memory_space<vmem>>, vector<128x32xbf16>
    %7 = arith.truncf %0 : vector<32x128xf32> to vector<32x128xbf16>
    %cst = arith.constant dense<0.000000e+00> : vector<128x128xf32>
    %8 = tpu.matmul %6, %7, %cst {dimension_numbers = #tpu.dot_dimension_numbers<[1], [0], [0], [1], [0, 0, 1, 1], [], []>} : vector<128x32xbf16>, vector<32x128xbf16>, vector<128x128xf32> -> vector<128x128xf32>
    %9 = vector.broadcast %2 : vector<128x1xf32> to vector<128x128xf32>
    %10 = arith.mulf %8, %9 : vector<128x128xf32>
    %11 = vector.broadcast %3 : vector<128x1xf32> to vector<128x128xf32>
    %12 = arith.addf %10, %11 : vector<128x128xf32>
    %cst_5 = arith.constant 0.000000e+00 : f32
    %13 = vector.broadcast %cst_5 : f32 to vector<128x128xf32>
    %14 = arith.subf %13, %12 : vector<128x128xf32>
    %15 = math.exp %14 : vector<128x128xf32>
    %cst_6 = arith.constant 1.000000e+00 : f32
    %16 = vector.broadcast %cst_6 : f32 to vector<128x128xf32>
    %17 = arith.addf %16, %15 : vector<128x128xf32>
    %18 = tpu.reciprocal %17 {approx = true} : vector<128x128xf32> -> vector<128x128xf32>
    %19 = arith.mulf %12, %18 : vector<128x128xf32>
    %c0_7 = arith.constant 0 : index
    %c0_8 = arith.constant 0 : index
    %20 = vector.load %arg5[%c0_7, %c0_8] : memref<128x9xf32, #tpu.memory_space<vmem>>, vector<128x9xf32>
    %c0_9 = arith.constant 0 : index
    %c0_10 = arith.constant 0 : index
    %21 = vector.load %arg2[%c0_9, %c0_10] : memref<9x128xf32, #tpu.memory_space<vmem>>, vector<9x128xf32>
    %cst_11 = arith.constant 0.000000e+00 : f32
    %22 = vector.broadcast %cst_11 : f32 to vector<128x128xf32>
    %23 = vector.extract_strided_slice %20 {offsets = [0, 0], sizes = [128, 1], strides = [1, 1]} : vector<128x9xf32> to vector<128x1xf32>
    %c9_i32 = arith.constant 9 : i32
    %24 = tpu.dynamic_rotate %19 by %c9_i32 dim 1 : vector<128x128xf32>, i32 -> vector<128x128xf32>
    %25 = vector.broadcast %23 : vector<128x1xf32> to vector<128x128xf32>
    %26 = arith.mulf %24, %25 : vector<128x128xf32>
    %27 = vector.extract_strided_slice %21 {offsets = [0, 0], sizes = [1, 128], strides = [1, 1]} : vector<9x128xf32> to vector<1x128xf32>
    %28 = vector.broadcast %27 : vector<1x128xf32> to vector<128x128xf32>
    %29 = arith.mulf %26, %28 : vector<128x128xf32>
    %30 = arith.addf %22, %29 : vector<128x128xf32>
    %31 = vector.extract_strided_slice %20 {offsets = [0, 1], sizes = [128, 1], strides = [1, 1]} : vector<128x9xf32> to vector<128x1xf32>
    %c8_i32 = arith.constant 8 : i32
    %32 = tpu.dynamic_rotate %19 by %c8_i32 dim 1 : vector<128x128xf32>, i32 -> vector<128x128xf32>
    %33 = vector.broadcast %31 : vector<128x1xf32> to vector<128x128xf32>
    %34 = arith.mulf %32, %33 : vector<128x128xf32>
    %35 = vector.extract_strided_slice %21 {offsets = [1, 0], sizes = [1, 128], strides = [1, 1]} : vector<9x128xf32> to vector<1x128xf32>
    %36 = vector.broadcast %35 : vector<1x128xf32> to vector<128x128xf32>
    %37 = arith.mulf %34, %36 : vector<128x128xf32>
    %38 = arith.addf %30, %37 : vector<128x128xf32>
    %39 = vector.extract_strided_slice %20 {offsets = [0, 2], sizes = [128, 1], strides = [1, 1]} : vector<128x9xf32> to vector<128x1xf32>
    %c7_i32 = arith.constant 7 : i32
    %40 = tpu.dynamic_rotate %19 by %c7_i32 dim 1 : vector<128x128xf32>, i32 -> vector<128x128xf32>
    %41 = vector.broadcast %39 : vector<128x1xf32> to vector<128x128xf32>
    %42 = arith.mulf %40, %41 : vector<128x128xf32>
    %43 = vector.extract_strided_slice %21 {offsets = [2, 0], sizes = [1, 128], strides = [1, 1]} : vector<9x128xf32> to vector<1x128xf32>
    %44 = vector.broadcast %43 : vector<1x128xf32> to vector<128x128xf32>
    %45 = arith.mulf %42, %44 : vector<128x128xf32>
    %46 = arith.addf %38, %45 : vector<128x128xf32>
    %47 = vector.extract_strided_slice %20 {offsets = [0, 3], sizes = [128, 1], strides = [1, 1]} : vector<128x9xf32> to vector<128x1xf32>
    %c1_i32 = arith.constant 1 : i32
    %48 = tpu.dynamic_rotate %19 by %c1_i32 dim 1 : vector<128x128xf32>, i32 -> vector<128x128xf32>
    %49 = vector.broadcast %47 : vector<128x1xf32> to vector<128x128xf32>
    %50 = arith.mulf %48, %49 : vector<128x128xf32>
    %51 = vector.extract_strided_slice %21 {offsets = [3, 0], sizes = [1, 128], strides = [1, 1]} : vector<9x128xf32> to vector<1x128xf32>
    %52 = vector.broadcast %51 : vector<1x128xf32> to vector<128x128xf32>
    %53 = arith.mulf %50, %52 : vector<128x128xf32>
    %54 = arith.addf %46, %53 : vector<128x128xf32>
    %55 = vector.extract_strided_slice %20 {offsets = [0, 4], sizes = [128, 1], strides = [1, 1]} : vector<128x9xf32> to vector<128x1xf32>
    %56 = vector.broadcast %55 : vector<128x1xf32> to vector<128x128xf32>
    %57 = arith.mulf %19, %56 : vector<128x128xf32>
    %58 = arith.addf %54, %57 : vector<128x128xf32>
    %59 = vector.extract_strided_slice %20 {offsets = [0, 5], sizes = [128, 1], strides = [1, 1]} : vector<128x9xf32> to vector<128x1xf32>
    %c127_i32 = arith.constant 127 : i32
    %60 = tpu.dynamic_rotate %19 by %c127_i32 dim 1 : vector<128x128xf32>, i32 -> vector<128x128xf32>
    %61 = vector.broadcast %59 : vector<128x1xf32> to vector<128x128xf32>
    %62 = arith.mulf %60, %61 : vector<128x128xf32>
    %63 = vector.extract_strided_slice %21 {offsets = [5, 0], sizes = [1, 128], strides = [1, 1]} : vector<9x128xf32> to vector<1x128xf32>
    %64 = vector.broadcast %63 : vector<1x128xf32> to vector<128x128xf32>
    %65 = arith.mulf %62, %64 : vector<128x128xf32>
    %66 = arith.addf %58, %65 : vector<128x128xf32>
    %67 = vector.extract_strided_slice %20 {offsets = [0, 6], sizes = [128, 1], strides = [1, 1]} : vector<128x9xf32> to vector<128x1xf32>
    %c121_i32 = arith.constant 121 : i32
    %68 = tpu.dynamic_rotate %19 by %c121_i32 dim 1 : vector<128x128xf32>, i32 -> vector<128x128xf32>
    %69 = vector.broadcast %67 : vector<128x1xf32> to vector<128x128xf32>
    %70 = arith.mulf %68, %69 : vector<128x128xf32>
    %71 = vector.extract_strided_slice %21 {offsets = [6, 0], sizes = [1, 128], strides = [1, 1]} : vector<9x128xf32> to vector<1x128xf32>
    %72 = vector.broadcast %71 : vector<1x128xf32> to vector<128x128xf32>
    %73 = arith.mulf %70, %72 : vector<128x128xf32>
    %74 = arith.addf %66, %73 : vector<128x128xf32>
    %75 = vector.extract_strided_slice %20 {offsets = [0, 7], sizes = [128, 1], strides = [1, 1]} : vector<128x9xf32> to vector<128x1xf32>
    %c120_i32 = arith.constant 120 : i32
    %76 = tpu.dynamic_rotate %19 by %c120_i32 dim 1 : vector<128x128xf32>, i32 -> vector<128x128xf32>
    %77 = vector.broadcast %75 : vector<128x1xf32> to vector<128x128xf32>
    %78 = arith.mulf %76, %77 : vector<128x128xf32>
    %79 = vector.extract_strided_slice %21 {offsets = [7, 0], sizes = [1, 128], strides = [1, 1]} : vector<9x128xf32> to vector<1x128xf32>
    %80 = vector.broadcast %79 : vector<1x128xf32> to vector<128x128xf32>
    %81 = arith.mulf %78, %80 : vector<128x128xf32>
    %82 = arith.addf %74, %81 : vector<128x128xf32>
    %83 = vector.extract_strided_slice %20 {offsets = [0, 8], sizes = [128, 1], strides = [1, 1]} : vector<128x9xf32> to vector<128x1xf32>
    %c119_i32 = arith.constant 119 : i32
    %84 = tpu.dynamic_rotate %19 by %c119_i32 dim 1 : vector<128x128xf32>, i32 -> vector<128x128xf32>
    %85 = vector.broadcast %83 : vector<128x1xf32> to vector<128x128xf32>
    %86 = arith.mulf %84, %85 : vector<128x128xf32>
    %87 = vector.extract_strided_slice %21 {offsets = [8, 0], sizes = [1, 128], strides = [1, 1]} : vector<9x128xf32> to vector<1x128xf32>
    %88 = vector.broadcast %87 : vector<1x128xf32> to vector<128x128xf32>
    %89 = arith.mulf %86, %88 : vector<128x128xf32>
    %90 = arith.addf %82, %89 : vector<128x128xf32>
    %91 = vector.broadcast %4 : vector<128x1xf32> to vector<128x128xf32>
    %92 = arith.mulf %90, %91 : vector<128x128xf32>
    %93 = vector.broadcast %5 : vector<128x1xf32> to vector<128x128xf32>
    %94 = arith.addf %92, %93 : vector<128x128xf32>
    %cst_12 = arith.constant 0.000000e+00 : f32
    %95 = vector.broadcast %cst_12 : f32 to vector<128x128xf32>
    %96 = arith.subf %95, %94 : vector<128x128xf32>
    %97 = math.exp %96 : vector<128x128xf32>
    %cst_13 = arith.constant 1.000000e+00 : f32
    %98 = vector.broadcast %cst_13 : f32 to vector<128x128xf32>
    %99 = arith.addf %98, %97 : vector<128x128xf32>
    %100 = tpu.reciprocal %99 {approx = true} : vector<128x128xf32> -> vector<128x128xf32>
    %101 = arith.mulf %94, %100 : vector<128x128xf32>
    %102 = arith.truncf %101 : vector<128x128xf32> to vector<128x128xbf16>
    %c0_14 = arith.constant 0 : index
    %c0_15 = arith.constant 0 : index
    %103 = vector.load %arg9[%c0_14, %c0_15] : memref<128x2xbf16, #tpu.memory_space<vmem>>, vector<128x2xbf16>
    %cst_16 = arith.constant dense<0.000000e+00> : vector<128x2xf32>
    %104 = tpu.matmul %102, %103, %cst_16 {dimension_numbers = #tpu.dot_dimension_numbers<[1], [0], [0], [1], [0, 0, 1, 1], [], []>} : vector<128x128xbf16>, vector<128x2xbf16>, vector<128x2xf32> -> vector<128x2xf32>
    %c0_17 = arith.constant 0 : index
    %c0_18 = arith.constant 0 : index
    %105 = vector.load %arg7[%c0_17, %c0_18] : memref<32x2xf32, #tpu.memory_space<vmem>>, vector<32x2xf32>
    %c0_19 = arith.constant 0 : index
    %c0_20 = arith.constant 0 : index
    %106 = vector.load %arg6[%c0_19, %c0_20] : memref<32x128xbf16, #tpu.memory_space<vmem>>, vector<32x128xbf16>
    %107 = arith.truncf %104 : vector<128x2xf32> to vector<128x2xbf16>
    %cst_21 = arith.constant dense<0.000000e+00> : vector<32x2xf32>
    %108 = tpu.matmul %106, %107, %cst_21 {dimension_numbers = #tpu.dot_dimension_numbers<[1], [0], [0], [1], [0, 0, 1, 1], [], []>} : vector<32x128xbf16>, vector<128x2xbf16>, vector<32x2xf32> -> vector<32x2xf32>
    %109 = vector.extract_strided_slice %105 {offsets = [0, 0], sizes = [32, 1], strides = [1, 1]} : vector<32x2xf32> to vector<32x1xf32>
    %110 = vector.broadcast %109 : vector<32x1xf32> to vector<32x2xf32>
    %111 = arith.mulf %108, %110 : vector<32x2xf32>
    %112 = vector.extract_strided_slice %105 {offsets = [0, 1], sizes = [32, 1], strides = [1, 1]} : vector<32x2xf32> to vector<32x1xf32>
    %113 = vector.broadcast %112 : vector<32x1xf32> to vector<32x2xf32>
    %114 = arith.addf %111, %113 : vector<32x2xf32>
    %cst_22 = arith.constant 0.000000e+00 : f32
    %115 = vector.broadcast %cst_22 : f32 to vector<32x2xf32>
    %116 = arith.maximumf %114, %115 : vector<32x2xf32>
    %c0_23 = arith.constant 0 : index
    %c0_24 = arith.constant 0 : index
    %117 = vector.load %arg8[%c0_23, %c0_24] : memref<128x32xbf16, #tpu.memory_space<vmem>>, vector<128x32xbf16>
    %118 = arith.truncf %116 : vector<32x2xf32> to vector<32x2xbf16>
    %cst_25 = arith.constant dense<0.000000e+00> : vector<128x2xf32>
    %119 = tpu.matmul %117, %118, %cst_25 {dimension_numbers = #tpu.dot_dimension_numbers<[1], [0], [0], [1], [0, 0, 1, 1], [], []>} : vector<128x32xbf16>, vector<32x2xbf16>, vector<128x2xf32> -> vector<128x2xf32>
    %cst_26 = arith.constant 0.166666672 : f32
    %120 = vector.broadcast %cst_26 : f32 to vector<128x2xf32>
    %121 = arith.mulf %119, %120 : vector<128x2xf32>
    %cst_27 = arith.constant 5.000000e-01 : f32
    %122 = vector.broadcast %cst_27 : f32 to vector<128x2xf32>
    %123 = arith.addf %121, %122 : vector<128x2xf32>
    %cst_28 = arith.constant 0.000000e+00 : f32
    %cst_29 = arith.constant 1.000000e+00 : f32
    %124 = vector.broadcast %cst_28 : f32 to vector<128x2xf32>
    %125 = arith.maximumf %124, %123 : vector<128x2xf32>
    %126 = vector.broadcast %cst_29 : f32 to vector<128x2xf32>
    %127 = arith.minimumf %126, %125 : vector<128x2xf32>
    %128 = arith.truncf %127 : vector<128x2xf32> to vector<128x2xbf16>
    %c0_30 = arith.constant 0 : index
    %c0_31 = arith.constant 0 : index
    %129 = vector.load %arg10[%c0_30, %c0_31] : memref<2x128xbf16, #tpu.memory_space<vmem>>, vector<2x128xbf16>
    %cst_32 = arith.constant dense<0.000000e+00> : vector<128x128xf32>
    %130 = tpu.matmul %128, %129, %cst_32 {dimension_numbers = #tpu.dot_dimension_numbers<[1], [0], [0], [1], [0, 0, 1, 1], [], []>} : vector<128x2xbf16>, vector<2x128xbf16>, vector<128x128xf32> -> vector<128x128xf32>
    %131 = arith.mulf %101, %130 : vector<128x128xf32>
    %c0_33 = arith.constant 0 : index
    %c0_34 = arith.constant 0 : index
    %132 = vector.load %arg12[%c0_33, %c0_34] : memref<32x2xf32, #tpu.memory_space<vmem>>, vector<32x2xf32>
    %c0_35 = arith.constant 0 : index
    %c0_36 = arith.constant 0 : index
    %133 = vector.load %arg11[%c0_35, %c0_36] : memref<32x128xbf16, #tpu.memory_space<vmem>>, vector<32x128xbf16>
    %134 = arith.truncf %131 : vector<128x128xf32> to vector<128x128xbf16>
    %cst_37 = arith.constant dense<0.000000e+00> : vector<32x128xf32>
    %135 = tpu.matmul %133, %134, %cst_37 {dimension_numbers = #tpu.dot_dimension_numbers<[1], [0], [0], [1], [0, 0, 1, 1], [], []>} : vector<32x128xbf16>, vector<128x128xbf16>, vector<32x128xf32> -> vector<32x128xf32>
    %136 = vector.extract_strided_slice %132 {offsets = [0, 0], sizes = [32, 1], strides = [1, 1]} : vector<32x2xf32> to vector<32x1xf32>
    %137 = vector.broadcast %136 : vector<32x1xf32> to vector<32x128xf32>
    %138 = arith.mulf %135, %137 : vector<32x128xf32>
    %139 = vector.extract_strided_slice %132 {offsets = [0, 1], sizes = [32, 1], strides = [1, 1]} : vector<32x2xf32> to vector<32x1xf32>
    %140 = vector.broadcast %139 : vector<32x1xf32> to vector<32x128xf32>
    %141 = arith.addf %138, %140 : vector<32x128xf32>
    %142 = arith.addf %141, %0 : vector<32x128xf32>
    %cst_38 = arith.constant 0.000000e+00 : f32
    %143 = vector.broadcast %cst_38 : f32 to vector<32x128xf32>
    %144 = arith.subf %143, %142 : vector<32x128xf32>
    %145 = math.exp %144 : vector<32x128xf32>
    %cst_39 = arith.constant 1.000000e+00 : f32
    %146 = vector.broadcast %cst_39 : f32 to vector<32x128xf32>
    %147 = arith.addf %146, %145 : vector<32x128xf32>
    %148 = tpu.reciprocal %147 {approx = true} : vector<32x128xf32> -> vector<32x128xf32>
    %149 = arith.mulf %142, %148 : vector<32x128xf32>
    %c0_40 = arith.constant 0 : index
    %c0_41 = arith.constant 0 : index
    %150 = vector.load %arg13[%c0_40, %c0_41] : memref<32x128xf32, #tpu.memory_space<vmem>>, vector<32x128xf32>
    tpu.vector_store %arg13[%c0_40, %c0_41], %149 {strides = array<i32>} : memref<32x128xf32, #tpu.memory_space<vmem>>, vector<32x128xf32>,
    return
  }
  func.func @transform_0(%arg0: i32) -> (i32, i32) {
    %c0_i32 = arith.constant 0 : i32
    %c0_i32_0 = arith.constant 0 : i32
    return %c0_i32, %arg0 : i32, i32
  }
  func.func @transform_1(%arg0: i32) -> (i32, i32) {
    %c0_i32 = arith.constant 0 : i32
    %c0_i32_0 = arith.constant 0 : i32
    %c0_i32_1 = arith.constant 0 : i32
    return %c0_i32, %c0_i32_0 : i32, i32
  }
  func.func @transform_2(%arg0: i32) -> (i32, i32) {
    %c0_i32 = arith.constant 0 : i32
    %c0_i32_0 = arith.constant 0 : i32
    %c0_i32_1 = arith.constant 0 : i32
    return %c0_i32, %c0_i32_0 : i32, i32
  }
  func.func @transform_3(%arg0: i32) -> (i32, i32) {
    %c0_i32 = arith.constant 0 : i32
    %c0_i32_0 = arith.constant 0 : i32
    %c0_i32_1 = arith.constant 0 : i32
    return %c0_i32, %c0_i32_0 : i32, i32
  }
  func.func @transform_4(%arg0: i32) -> (i32, i32) {
    %c0_i32 = arith.constant 0 : i32
    %c0_i32_0 = arith.constant 0 : i32
    %c0_i32_1 = arith.constant 0 : i32
    return %c0_i32, %c0_i32_0 : i32, i32
  }
  func.func @transform_5(%arg0: i32) -> (i32, i32) {
    %c0_i32 = arith.constant 0 : i32
    %c0_i32_0 = arith.constant 0 : i32
    %c0_i32_1 = arith.constant 0 : i32
    return %c0_i32, %c0_i32_0 : i32, i32
  }
  func.func @transform_6(%arg0: i32) -> (i32, i32) {
    %c0_i32 = arith.constant 0 : i32
    %c0_i32_0 = arith.constant 0 : i32
    %c0_i32_1 = arith.constant 0 : i32
    return %c0_i32, %c0_i32_0 : i32, i32
  }
  func.func @transform_7(%arg0: i32) -> (i32, i32) {
    %c0_i32 = arith.constant 0 : i32
    %c0_i32_0 = arith.constant 0 : i32
    %c0_i32_1 = arith.constant 0 : i32
    return %c0_i32, %c0_i32_0 : i32, i32
  }
  func.func @transform_8(%arg0: i32) -> (i32, i32) {
    %c0_i32 = arith.constant 0 : i32
    %c0_i32_0 = arith.constant 0 : i32
    %c0_i32_1 = arith.constant 0 : i32
    return %c0_i32, %c0_i32_0 : i32, i32
  }
  func.func @transform_9(%arg0: i32) -> (i32, i32) {
    %c0_i32 = arith.constant 0 : i32
    %c0_i32_0 = arith.constant 0 : i32
    %c0_i32_1 = arith.constant 0 : i32
    return %c0_i32, %c0_i32_0 : i32, i32
  }
  func.func @transform_10(%arg0: i32) -> (i32, i32) {
    %c0_i32 = arith.constant 0 : i32
    %c0_i32_0 = arith.constant 0 : i32
    %c0_i32_1 = arith.constant 0 : i32
    return %c0_i32, %c0_i32_0 : i32, i32
  }
  func.func @transform_11(%arg0: i32) -> (i32, i32) {
    %c0_i32 = arith.constant 0 : i32
    %c0_i32_0 = arith.constant 0 : i32
    %c0_i32_1 = arith.constant 0 : i32
    return %c0_i32, %c0_i32_0 : i32, i32
  }
  func.func @transform_12(%arg0: i32) -> (i32, i32) {
    %c0_i32 = arith.constant 0 : i32
    %c0_i32_0 = arith.constant 0 : i32
    return %c0_i32, %arg0 : i32, i32
  }
}

</mosaic_0001>

<bundles_post_ra>
// kernel: tpu_custom_call.1
= control target key start
LH: loop header
LB: loop body
LE: loop exit
PB: predicated region body
PF: predicated region fallthrough
CT: control target
= control target key end

     0   :  { %v5304_v3 = vmov 0   ;;  %s5289_s0 = inlined_call_operand.vmem [shape: f32[32,128], index: 0, kind: input, shape index: {}]   ;;  %s5290_s1 = inlined_call_operand.vmem [shape: f32[9,128], index: 1, kind: input, shape index: {}]   ;;  %s5291_s2 = inlined_call_operand.vmem [shape: bf16[128,32], index: 2, kind: input, shape index: {}]   ;;  %s5292_s3 = inlined_call_operand.vmem [shape: f32[128,4], index: 3, kind: input, shape index: {}]   ;;  %s5293_s4 = inlined_call_operand.vmem [shape: f32[128,9], index: 4, kind: input, shape index: {}]   ;;  %s5294_s5 = inlined_call_operand.vmem [shape: bf16[32,128], index: 5, kind: input, shape index: {}]   ;;  %s5295_s6 = inlined_call_operand.vmem [shape: f32[32,2], index: 6, kind: input, shape index: {}]   ;;  %s5296_s7 = inlined_call_operand.vmem [shape: bf16[128,32], index: 7, kind: input, shape index: {}]   ;;  %s5297_s8 = inlined_call_operand.vmem [shape: bf16[128,2], index: 8, kind: input, shape index: {}]   ;;  %s5298_s9 = inlined_call_operand.vmem [shape: bf16[2,128], index: 9, kind: input, shape index: {}]   ;;  %s5299_s10 = inlined_call_operand.vmem [shape: bf16[32,128], index: 10, kind: input, shape index: {}]   ;;  %s5300_s11 = inlined_call_operand.vmem [shape: f32[32,2], index: 11, kind: input, shape index: {}]   ;;  %s5301_s12 = inlined_call_operand.hbm [shape: f32[32,128], index: 12, kind: output, shape index: {}]  }
   0x1   :  { %v51_v0 = vld [vmem:[%s5292_s3 + $0x20] sm:$0xff]  ;;  %v3292_v1 = vld [vmem:[%s5292_s3 + $0x10] sm:$0xff]  ;;  %2861 = vset.pattern.permute.xlu2 %v5304_v3  ;;  %2860 = vset.pattern.permute.xlu1 %v5304_v3  ;;  %v46_v5 = vld [vmem:[%s5289_s0 + $0x18] sm:$0xff] }
   0x2   :  { %v47_v2 = vld [vmem:[%s5292_s3] sm:$0xff]  ;;  %v45_v4 = vld [vmem:[%s5289_s0 + $0x10] sm:$0xff]  ;;  %2859 = vset.pattern.permute.xlu0 %v5304_v3  ;;  %217 = vperm.xlu2 %2861, %v51_v0   ;;  %v44_v8 = vld [vmem:[%s5289_s0 + $0x8] sm:$0xff] }
   0x3   :  { %v43_v6 = vld [vmem:[%s5289_s0] sm:$0xff]  ;;  %v80_v7 = vpack.c.bf16 %v46_v5, %v45_v4  ;;  %207 = vperm.xlu1 %2860, %v3292_v1   ;;  %197 = vperm.xlu0 %2859, %v47_v2   ;;  %v52_v10 = vld [vmem:[%s5292_s3 + $0x28] sm:$0xff] }
   0x4   :  { %v79_v9 = vpack.c.bf16 %v44_v8, %v43_v6 }
   0x5   :  { %152 = vmatpush.bf16.msra.mxu0 %v80_v7 }
   0x6   :  { %17 = vsyncpa [#allocation3], 0  ;;  %v50_v11 = vld [vmem:[%s5292_s3 + $0x18] sm:$0xff]  ;;  %v48_v12 = vld [vmem:[%s5292_s3 + $0x8] sm:$0xff]  ;;  %vm121_vm0 = vcmask 261120   ;;  %v5302_v26 = vmov 1  }
   0x7   :  { %v2804_v13 = vld [vmem:[%s5291_s2] sm:$0xff]  ;;  %v54_v15 = vld [vmem:[%s5292_s3 + $0x38] sm:$0xff]  ;;  %v53_v16 = vld [vmem:[%s5292_s3 + $0x30] sm:$0xff]  ;;  %s3204_s18 = smov 9   ;;  %s3205_s19 = smov 8   ;;  %vm2458_vm1 = vcmask 1040384  }
   0x8   :  { %v55_v14 = vld [vmem:[%s5292_s3 + $0x40] sm:$0xff]  ;;  %v58_v17 = vld [vmem:[%s5292_s3 + $0x58] sm:$0xff]  ;;  %v57_v18 = vld [vmem:[%s5292_s3 + $0x50] sm:$0xff]  ;;  %s3206_s20 = smov 7   ;;  %s3209_s21 = smov 1   ;;  %vm2433_vm2 = vcmask 15360  }
   0x9   :  { %153 = vmatpush.bf16.msra.mxu0 %v79_v9  ;;  %v56_v19 = vld [vmem:[%s5292_s3 + $0x48] sm:$0xff]  ;;  %v61_v21 = vld [vmem:[%s5292_s3 + $0x70] sm:$0xff]  ;;  %v59_v23 = vld [vmem:[%s5292_s3 + $0x60] sm:$0xff]  ;;  %s3210_s22 = smov 120   ;;  %s3214_s23 = smov 127  }
   0xa   :  { %222 = vperm.xlu2 %2861, %v52_v10   ;;  %v2805_v20 = vld [vmem:[%s5291_s2 + $0x8] sm:$0xff]  ;;  %v62_v24 = vld [vmem:[%s5292_s3 + $0x78] sm:$0xff]  ;;  %v2806_v25 = vld [vmem:[%s5291_s2 + $0x10] sm:$0xff]  ;;  %s3216_s24 = smov 121   ;;  %s3218_s25 = smov 119  }
   0xb   :  { %212 = vperm.xlu1 %2860, %v50_v11   ;;  %202 = vperm.xlu0 %2859, %v48_v12   ;;  %v60_v22 = vld [vmem:[%s5292_s3 + $0x68] sm:$0xff]  ;;  %v3369_v27 = vld [vmem:[%s5293_s4 + $0x10] sm:$0xff]  ;;  %v3375_v28 = vld [vmem:[%s5293_s4 + $0x38] sm:$0xff] }
   0xc   :  { %2700 = vmatmul.msk.bf16.vlgmr.msra.gmra.mxu0 %vm121_vm0, %v2804_v13  ;;  %v2807_v29 = vld [vmem:[%s5291_s2 + $0x18] sm:$0xff]  ;;  %v3385_v30 = vld [vmem:[%s5293_s4 + $0x50] sm:$0xff]  ;;  %v3391_v31 = vld [vmem:[%s5293_s4 + $0x68] sm:$0xff] }
   0xd   :  { %v2808_v32 = vld [vmem:[%s5291_s2 + $0x20] sm:$0xff]  ;;  %v2809_v33 = vld [vmem:[%s5291_s2 + $0x28] sm:$0xff]  ;;  %v3423_v37 = vld [vmem:[%s5293_s4 + $0x18] sm:$0xff] }
   0xe   :  { %v3406_v34 = vld [vmem:[%s5293_s4] sm:$0xff]  ;;  %v3411_v35 = vld [vmem:[%s5293_s4 + $0x8] sm:$0xff]  ;;  %v2810_v39 = vld [vmem:[%s5291_s2 + $0x30] sm:$0xff] }
   0xf   :  { %v3428_v38 = vld [vmem:[%s5293_s4 + $0x20] sm:$0xff]  ;;  %v3440_v41 = vld [vmem:[%s5293_s4 + $0x28] sm:$0xff]  ;;  %v3445_v42 = vld [vmem:[%s5293_s4 + $0x30] sm:$0xff] }
  0x10   :  { %v3453_v43 = vld [vmem:[%s5293_s4 + $0x40] sm:$0xff]  ;;  %v3458_v44 = vld [vmem:[%s5293_s4 + $0x48] sm:$0xff]  ;;  %v2811_v48 = vld [vmem:[%s5291_s2 + $0x38] sm:$0xff] }
  0x11   :  { %v3473_v49 = vld [vmem:[%s5293_s4 + $0x58] sm:$0xff]  ;;  %v3478_v50 = vld [vmem:[%s5293_s4 + $0x60] sm:$0xff]  ;;  %v3489_v54 = vld [vmem:[%s5293_s4 + $0x70] sm:$0xff] }
  0x12   :  { %237 = vperm.xlu2 %2861, %v55_v14   ;;  %v3494_v55 = vld [vmem:[%s5293_s4 + $0x78] sm:$0xff] }
  0x13   :  { %232 = vperm.xlu1 %2860, %v54_v15   ;;  %227 = vperm.xlu0 %2859, %v53_v16  }
  0x1a   :  { %252 = vperm.xlu2 %2861, %v58_v17  }
  0x1b   :  { %247 = vperm.xlu1 %2860, %v57_v18   ;;  %242 = vperm.xlu0 %2859, %v56_v19  }
  0x1c   :  { %2701 = vmatmul.msk.bf16.gmra.mxu0 %vm121_vm0, %v2805_v20 }
  0x22   :  { %267 = vperm.xlu2 %2861, %v61_v21  }
  0x23   :  { %262 = vperm.xlu1 %2860, %v60_v22   ;;  %257 = vperm.xlu0 %2859, %v59_v23  }
  0x2a   :  { %2863 = vset.pattern.permute.xlu2 %v5302_v26 }
  0x2b   :  { %2862 = vset.pattern.permute.xlu1 %v5302_v26  ;;  %272 = vperm.xlu0 %2859, %v62_v24  }
  0x2c   :  { %2702 = vmatmul.msk.bf16.gmra.mxu0 %vm121_vm0, %v2806_v25  ;;  %296 = vperm.xlu2 %2863, %v48_v12  }
  0x2d   :  { %292 = vperm.xlu1 %2862, %v47_v2  }
  0x33   :  { %529 = vperm.xlu0 %2859, %v3369_v27  }
  0x34   :  { %308 = vperm.xlu2 %2863, %v51_v0  }
  0x35   :  { %304 = vperm.xlu1 %2862, %v50_v11  }
  0x3b   :  { %554 = vperm.xlu0 %2859, %v3375_v28  }
  0x3c   :  { %2703 = vmatmul.msk.bf16.gmra.mxu0 %vm121_vm0, %v2807_v29  ;;  %316 = vperm.xlu2 %2863, %v53_v16  }
  0x3d   :  { %312 = vperm.xlu1 %2862, %v52_v10  }
  0x43   :  { %569 = vperm.xlu0 %2859, %v3385_v30  }
  0x44   :  { %328 = vperm.xlu2 %2863, %v56_v19  }
  0x45   :  { %324 = vperm.xlu1 %2862, %v55_v14  }
  0x4b   :  { %584 = vperm.xlu0 %2859, %v3391_v31  }
  0x4c   :  { %2704 = vmatmul.msk.bf16.gmra.mxu0 %vm121_vm0, %v2808_v32  ;;  %340 = vperm.xlu2 %2863, %v59_v23  }
  0x4d   :  { %336 = vperm.xlu1 %2862, %v58_v17  }
  0x53   :  { %2866 = vset.pattern.permute.xlu0 %v5302_v26 }
  0x54   :  { %352 = vperm.xlu2 %2863, %v62_v24   ;;  %300 = vperm.xlu0 %2866, %v3292_v1  }
  0x55   :  { %348 = vperm.xlu1 %2862, %v61_v21  }
  0x5c   :  { %2705 = vmatmul.msk.bf16.gmra.mxu0 %vm121_vm0, %v2809_v33  ;;  %320 = vperm.xlu0 %2866, %v54_v15   ;;  %v3418_v36 = vpop.permute.xlu2 %217 }
  0x5d   :  { %2864 = vset.pattern.permute.xlu1 %v5304_v3  ;;  %2865 = vset.pattern.permute.xlu2 %v5304_v3 }
  0x5e   :  { %519 = vperm.xlu1 %2864, %v3406_v34   ;;  %524 = vperm.xlu2 %2865, %v3411_v35  }
  0x64   :  { %332 = vperm.xlu0 %2866, %v57_v18   ;;  %v3435_v40 = vpop.permute.xlu2 %222 }
  0x66   :  { %534 = vperm.xlu1 %2864, %v3423_v37   ;;  %539 = vperm.xlu2 %2865, %v3428_v38  }
  0x6c   :  { %2706 = vmatmul.msk.bf16.gmra.mxu0 %vm121_vm0, %v2810_v39  ;;  %344 = vperm.xlu0 %2866, %v60_v22   ;;  %v3460_v45 = vpop.permute.xlu2 %237 }
  0x6e   :  { %544 = vperm.xlu1 %2864, %v3440_v41   ;;  %549 = vperm.xlu2 %2865, %v3445_v42  }
  0x74   :  { %687 = vperm.xlu0 %2866, %v3369_v27   ;;  %v3484_v53 = vpop.permute.xlu2 %252 }
  0x75   :  { %v3463_v46 = vpop.permute.xlu1 %207  ;;  %v198_v47 = vpop.permute.xlu0 %197 }
  0x76   :  { %559 = vperm.xlu1 %2864, %v3453_v43   ;;  %564 = vperm.xlu2 %2865, %v3458_v44  }
  0x7c   :  { %2707 = vmatmul.msk.bf16.gmra.mxu0 %vm121_vm0, %v2811_v48  ;;  %707 = vperm.xlu0 %2866, %v3375_v28   ;;  %v3502_v58 = vpop.permute.xlu2 %267 }
  0x7d   :  { %v213_v51 = vpop.permute.xlu1 %212  ;;  %v203_v52 = vpop.permute.xlu0 %202 }
  0x7e   :  { %574 = vperm.xlu1 %2864, %v3473_v49   ;;  %579 = vperm.xlu2 %2865, %v3478_v50  }
  0x85   :  { %v3496_v56 = vpop.permute.xlu1 %232  ;;  %v3498_v57 = vpop.permute.xlu0 %227 }
  0x86   :  { %589 = vperm.xlu1 %2864, %v3489_v54   ;;  %594 = vperm.xlu2 %2865, %v3494_v55   ;;  %v297_v0 = vpop.permute.xlu2 %296 }
  0x89   :  { %v155_v59 = vpop.f32.mrf.mxu0 }
  0x8a   :  { %v275_v9 = vmul.f32 %v198_v47, %v155_v59 }
  0x8d   :  { %v3504_v60 = vpop.permute.xlu1 %247  ;;  %v3506_v61 = vpop.permute.xlu0 %242 }
  0x8e   :  { %2867 = vset.pattern.permute.xlu1 %v5302_v26  ;;  %2868 = vset.pattern.permute.xlu2 %v5302_v26  ;;  %v309_v20 = vpop.permute.xlu2 %308 }
  0x8f   :  { %679 = vperm.xlu1 %2867, %v3406_v34   ;;  %683 = vperm.xlu2 %2868, %v3411_v35  }
  0x91   :  { %v157_v62 = vpop.f32.mrf.mxu0 }
  0x92   :  { %v276_v63 = vmul.f32 %v203_v52, %v157_v62 }
  0x94   :  { %v356_v1 = vadd.f32 %v297_v0, %v276_v63 }
  0x95   :  { %v3512_v2 = vpop.permute.xlu1 %262  ;;  %v3514_v4 = vpop.permute.xlu0 %257 }
  0x96   :  { %v372_v5 = vsub.f32 0.0, %v356_v1 }
  0x97   :  { %691 = vperm.xlu1 %2867, %v3423_v37   ;;  %695 = vperm.xlu2 %2868, %v3428_v38  }
  0x98   :  { %v389_v6 = vmul.f32 1.442695, %v372_v5 }
  0x99   :  { %v3518_v7 = vpop.f32.mrf.mxu0 }
  0x9a   :  { %2989 = vpow2.f32 %v389_v6 }
  0x9d   :  { %v3520_v8 = vpop.permute.xlu0 %272 }
  0x9f   :  { %v293_v10 = vpop.permute.xlu1 %292  ;;  %699 = vperm.xlu1 %2867, %v3440_v41   ;;  %703 = vperm.xlu2 %2868, %v3445_v42  }
  0xa0   :  { %v2990_v11 = vpop.eup %2989  ;;  %v355_v12 = vadd.f32 %v293_v10, %v275_v9 }
  0xa1   :  { %v420_v13 = vadd.f32 1.0, %v2990_v11  ;;  %v162_v14 = vpop.f32.mrf.mxu0 }
  0xa2   :  { %v371_v15 = vsub.f32 0.0, %v355_v12  ;;  %v278_v23 = vmul.f32 %v213_v51, %v162_v14  ;;  %v317_v51 = vpop.permute.xlu2 %316 }
  0xa3   :  { %2991 = vrcp.f32 %v420_v13 }
  0xa4   :  { %v387_v16 = vmul.f32 1.442695, %v371_v15 }
  0xa5   :  { %v3524_v17 = vpop.permute.xlu0 %529 }
  0xa6   :  { %5348 = vst [vmem:[#allocation5_spill] sm:$0xff] %v3524_v17  ;;  %2993 = vpow2.f32 %v387_v16  ;;  %v3142_v17 = vld [vmem:[%s5292_s3 + $0x18] sm:$0xff] }
  0xa7   :  { %v305_v18 = vpop.permute.xlu1 %304  ;;  %715 = vperm.xlu2 %2868, %v3458_v44  }
  0xa8   :  { %v358_v29 = vadd.f32 %v305_v18, %v278_v23  ;;  %v277_v23 = vmul.f32 %v3463_v46, %v3518_v7 }
  0xa9   :  { %v2992_v19 = vpop.eup %2991  ;;  %v165_v21 = vpop.f32.mrf.mxu0 }
  0xaa   :  { %v3527_v22 = vmul.f32 %v2992_v19, %v356_v1  ;;  %v279_v24 = vmul.f32 %v3418_v36, %v165_v21  ;;  %v374_v52 = vsub.f32 0.0, %v358_v29  ;;  %v329_v11 = vpop.permute.xlu2 %328 }
  0xac   :  { %v2994_v25 = vpop.eup %2993  ;;  %v359_v32 = vadd.f32 %v309_v20, %v279_v24  ;;  %487 = vrot.lane.b32.xlu1 %v3527_v22, %s3204_s18  ;;  %v393_v63 = vmul.f32 1.442695, %v374_v52 }
  0xad   :  { %v419_v33 = vadd.f32 1.0, %v2994_v25  ;;  %v3532_v39 = vpop.permute.xlu0 %554 }
  0xae   :  { %v375_v47 = vsub.f32 0.0, %v359_v32 }
  0xaf   :  { %2995 = vrcp.f32 %v419_v33  ;;  %v313_v48 = vpop.permute.xlu1 %312 }
  0xb0   :  { %v395_v59 = vmul.f32 1.442695, %v375_v47 }
  0xb1   :  { %v167_v62 = vpop.f32.mrf.mxu0 }
  0xb2   :  { %2997 = vpow2.f32 %v395_v59  ;;  %v3560_v25 = vpop.permute.xlu2 %340 }
  0xb3   :  { %2999 = vpow2.f32 %v393_v63 }
  0xb4   :  { %648 = vrot.lane.b32.xlu1 %v3527_v22, %s3205_s19 }
  0xb5   :  { %v2996_v36 = vpop.eup %2995  ;;  %v3536_v0 = vpop.permute.xlu0 %569 }
  0xb6   :  { %5349 = vst [vmem:[#allocation6_spill] sm:$0xff] %v3536_v0  ;;  %v3538_v1 = vmul.f32 %v2996_v36, %v355_v12 }
  0xb7   :  { %v3540_v5 = vpop.permute.xlu1 %324 }
  0xb8   :  { %5350 = vst [vmem:[#allocation7_spill] sm:$0xff] %v3538_v1  ;;  %v2998_v6 = vpop.eup %2997  ;;  %485 = vrot.lane.b32.xlu0 %v3538_v1, %s3204_s18 }
  0xb9   :  { %v423_v9 = vadd.f32 1.0, %v2998_v6  ;;  %v170_v10 = vpop.f32.mrf.mxu0  ;;  %v3000_v14 = vpop.eup %2999  ;;  %v280_v6 = vmul.f32 %v3435_v40, %v167_v62 }
  0xba   :  { %v281_v12 = vmul.f32 %v3498_v57, %v170_v10  ;;  %v422_v18 = vadd.f32 1.0, %v3000_v14 }
  0xbb   :  { %3001 = vrcp.f32 %v423_v9 }
  0xbc   :  { %711 = vperm.xlu1 %2867, %v3453_v43   ;;  %v3554_v21 = vadd.f32 %v317_v51, %v281_v12  ;;  %3003 = vrcp.f32 %v422_v18  ;;  %v3578_v18 = vadd.f32 %v313_v48, %v280_v6 }
  0xbd   :  { %v3545_v13 = vpop.permute.xlu0 %584 }
  0xbe   :  { %5351 = vst [vmem:[#allocation8_spill] sm:$0xff] %v3545_v13  ;;  %v377_v47 = vsub.f32 0.0, %v3554_v21  ;;  %v376_v62 = vsub.f32 0.0, %v3578_v18 }
  0xbf   :  { %v3547_v15 = vpop.permute.xlu1 %336 }
  0xc0   :  { %646 = vrot.lane.b32.xlu0 %v3538_v1, %s3205_s19  ;;  %v399_v63 = vmul.f32 1.442695, %v377_v47 }
  0xc1   :  { %v3002_v16 = vpop.eup %3001  ;;  %v172_v19 = vpop.f32.mrf.mxu0 }
  0xc2   :  { %v3552_v20 = vmul.f32 %v3002_v16, %v359_v32  ;;  %v3004_v59 = vpop.eup %3003  ;;  %v282_v46 = vmul.f32 %v3496_v56, %v172_v19 }
  0xc3   :  { %v3569_v7 = vmul.f32 %v3004_v59, %v358_v29 }
  0xc4   :  { %5352 = vst [vmem:[#allocation9_spill] sm:$0xff] %v3552_v20  ;;  %493 = vrot.lane.b32.xlu1 %v3552_v20, %s3204_s18 }
  0xc5   :  { %5353 = vst [vmem:[#allocation10_spill] sm:$0xff] %v3569_v7 }
  0xc6   :  { %v301_v24 = vpop.permute.xlu0 %300 }
  0xc7   :  { %v3562_v57 = vpop.permute.xlu1 %348  ;;  %v357_v33 = vadd.f32 %v301_v24, %v277_v23 }
  0xc8   :  { %719 = vperm.xlu0 %2866, %v3385_v30   ;;  %v3576_v30 = vpop.permute.xlu2 %352 }
  0xc9   :  { %v373_v32 = vsub.f32 0.0, %v357_v33  ;;  %v175_v52 = vpop.f32.mrf.mxu0 }
  0xcb   :  { %v391_v51 = vmul.f32 1.442695, %v373_v32 }
  0xcc   :  { %654 = vrot.lane.b32.xlu1 %v3552_v20, %s3205_s19 }
  0xcd   :  { %3005 = vpow2.f32 %v391_v51  ;;  %v397_v51 = vmul.f32 1.442695, %v376_v62 }
  0xce   :  { %v321_v36 = vpop.permute.xlu0 %320  ;;  %3007 = vpow2.f32 %v399_v63 }
  0xcf   :  { %v362_v9 = vadd.f32 %v321_v36, %v282_v46 }
  0xd0   :  { %v3572_v10 = vpop.permute.xlu1 %519  ;;  %491 = vrot.lane.b32.xlu0 %v3569_v7, %s3204_s18  ;;  %v3587_v47 = vpop.permute.xlu2 %524 }
  0xd1   :  { %v378_v14 = vsub.f32 0.0, %v362_v9  ;;  %v177_v12 = vpop.f32.mrf.mxu0 }
  0xd2   :  { %v284_v19 = vmul.f32 %v3506_v61, %v177_v12 }
  0xd3   :  { %v3006_v16 = vpop.eup %3005  ;;  %v401_v56 = vmul.f32 1.442695, %v378_v14 }
  0xd4   :  { %v421_v29 = vadd.f32 1.0, %v3006_v16  ;;  %723 = vperm.xlu1 %2867, %v3473_v49   ;;  %v3008_v40 = vpop.eup %3007  ;;  %v3590_v6 = vadd.f32 %v329_v11, %v284_v19 }
  0xd5   :  { %3009 = vpow2.f32 %v401_v56  ;;  %v425_v24 = vadd.f32 1.0, %v3008_v40 }
  0xd6   :  { %3011 = vrcp.f32 %v421_v29  ;;  %v333_v63 = vpop.permute.xlu0 %332 }
  0xd7   :  { %3013 = vrcp.f32 %v425_v24 }
  0xd8   :  { %v3583_v23 = vpop.permute.xlu1 %534  ;;  %652 = vrot.lane.b32.xlu0 %v3569_v7, %s3205_s19  ;;  %v3603_v29 = vpop.permute.xlu2 %539 }
  0xd9   :  { %v180_v48 = vpop.f32.mrf.mxu0  ;;  %5356 = vst [vmem:[#allocation13_spill] sm:$0xff] %v3603_v29  ;;  %v4007_v29 = vld [vmem:[%s5293_s4 + $0x38] sm:$0xff] }
  0xda   :  { %v285_v32 = vmul.f32 %v3504_v60, %v180_v48  ;;  %v380_v60 = vsub.f32 0.0, %v3590_v6 }
  0xdb   :  { %v3010_v59 = vpop.eup %3009 }
  0xdc   :  { %v3012_v46 = vpop.eup %3011  ;;  %v426_v36 = vadd.f32 1.0, %v3010_v59  ;;  %v3592_v14 = vadd.f32 %v333_v63, %v285_v32  ;;  %v405_v62 = vmul.f32 1.442695, %v380_v60  ;;  %v283_v32 = vmul.f32 %v3460_v45, %v175_v52 }
  0xdd   :  { %v3594_v61 = vmul.f32 %v3012_v46, %v357_v33  ;;  %v3014_v56 = vpop.eup %3013 }
  0xde   :  { %3015 = vrcp.f32 %v426_v36  ;;  %v381_v12 = vsub.f32 0.0, %v3592_v14  ;;  %v3608_v48 = vmul.f32 %v3014_v56, %v3554_v21  ;;  %v3620_v21 = vadd.f32 %v3540_v5, %v283_v32 }
  0xdf   :  { %5354 = vst [vmem:[#allocation11_spill] sm:$0xff] %v3594_v61  ;;  %3017 = vpow2.f32 %v397_v51  ;;  %489 = vrot.lane.b32.xlu2 %v3594_v61, %s3204_s18 }
  0xe0   :  { %v3600_v16 = vpop.permute.xlu1 %544  ;;  %731 = vperm.xlu0 %2866, %v3391_v31   ;;  %v407_v40 = vmul.f32 1.442695, %v381_v12  ;;  %5357 = vst [vmem:[#allocation14_spill] sm:$0xff] %v3608_v48  ;;  %v3622_v52 = vpop.permute.xlu2 %549  ;;  %v379_v63 = vsub.f32 0.0, %v3620_v21 }
  0xe1   :  { %5355 = vst [vmem:[#allocation12_spill] sm:$0xff] %v3600_v16  ;;  %v182_v11 = vpop.f32.mrf.mxu0 }
  0xe2   :  { %3019 = vpow2.f32 %v407_v40  ;;  %5359 = vst [vmem:[#allocation16_spill] sm:$0xff] %v3622_v52 }
  0xe3   :  { %3021 = vpow2.f32 %v405_v62  ;;  %v345_v62 = vpop.permute.xlu0 %344 }
  0xe4   :  { %v3016_v33 = vpop.eup %3015 }
  0xe5   :  { %v3018_v19 = vpop.eup %3017  ;;  %v3605_v24 = vmul.f32 %v3016_v33, %v362_v9  ;;  %v403_v33 = vmul.f32 1.442695, %v379_v63 }
  0xe6   :  { %v424_v31 = vadd.f32 1.0, %v3018_v19 }
  0xe7   :  { %650 = vrot.lane.b32.xlu2 %v3594_v61, %s3205_s19  ;;  %499 = vrot.lane.b32.xlu1 %v3605_v24, %s3204_s18 }
  0xe8   :  { %v3615_v59 = vpop.permute.xlu1 %559  ;;  %497 = vrot.lane.b32.xlu0 %v3608_v48, %s3204_s18  ;;  %3023 = vrcp.f32 %v424_v31  ;;  %v3020_v45 = vpop.eup %3019 }
  0xe9   :  { %5358 = vst [vmem:[#allocation15_spill] sm:$0xff] %v3615_v59  ;;  %v185_v9 = vpop.f32.mrf.mxu0  ;;  %v3022_v51 = vpop.eup %3021  ;;  %v429_v46 = vadd.f32 1.0, %v3020_v45 }
  0xea   :  { %v287_v36 = vmul.f32 %v3514_v4, %v185_v9  ;;  %v428_v5 = vadd.f32 1.0, %v3022_v51  ;;  %v3638_v4 = vpop.permute.xlu2 %564 }
  0xeb   :  { %3025 = vrcp.f32 %v429_v46  ;;  %5362 = vst [vmem:[#allocation19_spill] sm:$0xff] %v3638_v4 }
  0xec   :  { %v367_v19 = vadd.f32 %v3560_v25, %v287_v36  ;;  %3027 = vrcp.f32 %v428_v5 }
  0xed   :  { %3029 = vpow2.f32 %v403_v33 }
  0xee   :  { %v3024_v56 = vpop.eup %3023 }
  0xef   :  { %727 = vperm.xlu2 %2868, %v3478_v50   ;;  %660 = vrot.lane.b32.xlu1 %v3605_v24, %s3205_s19  ;;  %v3636_v31 = vmul.f32 %v3024_v56, %v3578_v18  ;;  %v286_v56 = vmul.f32 %v3484_v53, %v182_v11 }
  0xf0   :  { %v3629_v12 = vpop.permute.xlu1 %574  ;;  %658 = vrot.lane.b32.xlu0 %v3608_v48, %s3205_s19 }
  0xf1   :  { %5360 = vst [vmem:[#allocation17_spill] sm:$0xff] %v3629_v12  ;;  %v187_v60 = vpop.f32.mrf.mxu0  ;;  %v3026_v45 = vpop.eup %3025 }
  0xf2   :  { %v288_v40 = vmul.f32 %v3512_v2, %v187_v60  ;;  %5361 = vst [vmem:[#allocation18_spill] sm:$0xff] %v3636_v31  ;;  %v383_v2 = vsub.f32 0.0, %v367_v19  ;;  %v3028_v18 = vpop.eup %3027  ;;  %v3648_v5 = vmul.f32 %v3026_v45, %v3592_v14  ;;  %v3660_v33 = vpop.permute.xlu2 %579 }
  0xf3   :  { %v3030_v36 = vpop.eup %3029  ;;  %v3651_v60 = vmul.f32 %v3028_v18, %v3590_v6  ;;  %5365 = vst [vmem:[#allocation22_spill] sm:$0xff] %v3660_v33  ;;  %v366_v6 = vadd.f32 %v3547_v15, %v286_v56 }
  0xf4   :  { %v368_v32 = vadd.f32 %v345_v62, %v288_v40  ;;  %v411_v46 = vmul.f32 1.442695, %v383_v2  ;;  %5364 = vst [vmem:[#allocation21_spill] sm:$0xff] %v3648_v5  ;;  %v427_v40 = vadd.f32 1.0, %v3030_v36 }
  0xf6   :  { %v384_v9 = vsub.f32 0.0, %v368_v32 }
  0xf7   :  { %495 = vrot.lane.b32.xlu2 %v3636_v31, %s3204_s18  ;;  %735 = vperm.xlu1 %2867, %v3489_v54  }
  0xf8   :  { %791 = vrot.lane.b32.xlu0 %v3538_v1, %s3206_s20  ;;  %v3645_v25 = vpop.permute.xlu1 %589  ;;  %v413_v51 = vmul.f32 1.442695, %v384_v9  ;;  %v382_v9 = vsub.f32 0.0, %v366_v6 }
  0xf9   :  { %5363 = vst [vmem:[#allocation20_spill] sm:$0xff] %v3645_v25  ;;  %v190_v63 = vpop.f32.mrf.mxu0 }
  0xfa   :  { %3031 = vpow2.f32 %v413_v51  ;;  %v3671_v15 = vpop.permute.xlu2 %594 }
  0xfb   :  { %3033 = vpow2.f32 %v411_v46  ;;  %v409_v46 = vmul.f32 1.442695, %v382_v9  ;;  %5366 = vst [vmem:[#allocation23_spill] sm:$0xff] %v3671_v15  ;;  %v5308_v15 = vmov 5  }
  0xfc   :  { %3035 = vrcp.f32 %v427_v40  ;;  %2875 = vset.pattern.permute.xlu0 %v5308_v15 }
  0xff   :  { %656 = vrot.lane.b32.xlu2 %v3636_v31, %s3205_s19  ;;  %505 = vrot.lane.b32.xlu1 %v3648_v5, %s3204_s18 }
 0x100   :  { %503 = vrot.lane.b32.xlu0 %v3651_v60, %s3204_s18  ;;  %v3032_v53 = vpop.eup %3031 }
 0x101   :  { %v3662_v14 = vpop.permute.xlu1 %679  ;;  %v192_v11 = vpop.f32.mrf.mxu0  ;;  %v432_v2 = vadd.f32 1.0, %v3032_v53 }
 0x102   :  { %v3034_v62 = vpop.eup %3033  ;;  %v290_v45 = vmul.f32 %v3520_v8, %v192_v11  ;;  %v3685_v11 = vpop.permute.xlu2 %683 }
 0x103   :  { %v431_v18 = vadd.f32 1.0, %v3034_v62  ;;  %v3036_v51 = vpop.eup %3035  ;;  %3037 = vrcp.f32 %v432_v2 }
 0x104   :  { %v370_v56 = vadd.f32 %v3576_v30, %v290_v45  ;;  %v289_v45 = vmul.f32 %v3502_v58, %v190_v63 }
 0x105   :  { %3039 = vrcp.f32 %v431_v18 }
 0x106   :  { %3041 = vpow2.f32 %v409_v46  ;;  %v386_v8 = vsub.f32 0.0, %v370_v56 }
 0x107   :  { %739 = vperm.xlu2 %2868, %v3494_v55   ;;  %666 = vrot.lane.b32.xlu1 %v3648_v5, %s3205_s19  ;;  %v3677_v55 = vmul.f32 %v3036_v51, %v3620_v21  ;;  %v3698_v51 = vpop.permute.xlu0 %687 }
 0x108   :  { %664 = vrot.lane.b32.xlu0 %v3651_v60, %s3205_s19  ;;  %v417_v30 = vmul.f32 1.442695, %v386_v8 }
 0x109   :  { %v3673_v36 = vpop.permute.xlu1 %691  ;;  %5367 = vst [vmem:[#allocation24_spill] sm:$0xff] %v3677_v55  ;;  %v3038_v40 = vpop.eup %3037 }
 0x10a   :  { %v3687_v21 = vmul.f32 %v3038_v40, %v368_v32  ;;  %3043 = vpow2.f32 %v417_v30  ;;  %v369_v32 = vadd.f32 %v3562_v57, %v289_v45  ;;  %v5306_v45 = vmov 2  }
 0x10b   :  { %v3040_v53 = vpop.eup %3039  ;;  %2869 = vset.pattern.permute.xlu1 %v5306_v45 }
 0x10c   :  { %v3042_v62 = vpop.eup %3041  ;;  %5368 = vst [vmem:[#allocation25_spill] sm:$0xff] %v3687_v21  ;;  %v3691_v2 = vmul.f32 %v3040_v53, %v367_v19  ;;  %v3703_v19 = vpop.permute.xlu2 %695  ;;  %v385_v58 = vsub.f32 0.0, %v369_v32 }
 0x10d   :  { %v430_v18 = vadd.f32 1.0, %v3042_v62  ;;  %5371 = vst [vmem:[#allocation28_spill] sm:$0xff] %v3703_v19 }
 0x10e   :  { %5370 = vst [vmem:[#allocation27_spill] sm:$0xff] %v3691_v2  ;;  %v415_v57 = vmul.f32 1.442695, %v385_v58 }
 0x10f   :  { %501 = vrot.lane.b32.xlu2 %v3677_v55, %s3204_s18  ;;  %793 = vrot.lane.b32.xlu1 %v3527_v22, %s3206_s20  ;;  %3045 = vrcp.f32 %v430_v18  ;;  %v3713_v53 = vpop.permute.xlu0 %707 }
 0x110   :  { %797 = vrot.lane.b32.xlu0 %v3569_v7, %s3206_s20  ;;  %v3044_v46 = vpop.eup %3043  ;;  %2870 = vset.pattern.permute.xlu2 %v5306_v45 }
 0x111   :  { %v3689_v9 = vpop.permute.xlu1 %699  ;;  %v434_v8 = vadd.f32 1.0, %v3044_v46 }
 0x112   :  { %5369 = vst [vmem:[#allocation26_spill] sm:$0xff] %v3689_v9 }
 0x113   :  { %3047 = vrcp.f32 %v434_v8 }
 0x114   :  { %3049 = vpow2.f32 %v415_v57  ;;  %v3717_v62 = vpop.permute.xlu2 %703 }
 0x115   :  { %v3046_v40 = vpop.eup %3045  ;;  %5373 = vst [vmem:[#allocation30_spill] sm:$0xff] %v3717_v62 }
 0x116   :  { %v3715_v30 = vmul.f32 %v3046_v40, %v366_v6 }
 0x117   :  { %662 = vrot.lane.b32.xlu2 %v3677_v55, %s3205_s19  ;;  %511 = vrot.lane.b32.xlu1 %v3687_v21, %s3204_s18 }
 0x118   :  { %509 = vrot.lane.b32.xlu0 %v3691_v2, %s3204_s18  ;;  %5372 = vst [vmem:[#allocation29_spill] sm:$0xff] %v3715_v30 }
 0x119   :  { %v3048_v46 = vpop.eup %3047 }
 0x11a   :  { %v3050_v58 = vpop.eup %3049  ;;  %v3731_v8 = vmul.f32 %v3048_v46, %v370_v56 }
 0x11b   :  { %v433_v40 = vadd.f32 1.0, %v3050_v58 }
 0x11c   :  { %5374 = vst [vmem:[#allocation31_spill] sm:$0xff] %v3731_v8  ;;  %v3739_v57 = vpop.permute.xlu2 %715 }
 0x11d   :  { %5375 = vst [vmem:[#allocation32_spill] sm:$0xff] %v3739_v57  ;;  %3051 = vrcp.f32 %v433_v40 }
 0x11e   :  { %v3705_v63 = vpop.permute.xlu1 %487 }
 0x11f   :  { %795 = vrot.lane.b32.xlu2 %v3594_v61, %s3206_s20  ;;  %672 = vrot.lane.b32.xlu1 %v3687_v21, %s3205_s19 }
 0x120   :  { %670 = vrot.lane.b32.xlu0 %v3691_v2, %s3205_s19 }
 0x123   :  { %v3052_v46 = vpop.eup %3051 }
 0x124   :  { %v3755_v45 = vmul.f32 %v3052_v46, %v369_v32 }
 0x126   :  { %v3726_v18 = vpop.permute.xlu1 %648  ;;  %5379 = vst [vmem:[#allocation36_spill] sm:$0xff] %v3755_v45 }
 0x127   :  { %507 = vrot.lane.b32.xlu2 %v3715_v30, %s3204_s18  ;;  %799 = vrot.lane.b32.xlu1 %v3552_v20, %s3206_s20 }
 0x128   :  { %803 = vrot.lane.b32.xlu0 %v3608_v48, %s3206_s20 }
 0x12a   :  { %v3729_v6 = vpop.permute.xlu0 %485 }
 0x12e   :  { %v3743_v3 = vpop.permute.xlu1 %711 }
 0x12f   :  { %668 = vrot.lane.b32.xlu2 %v3715_v30, %s3205_s19  ;;  %805 = vrot.lane.b32.xlu1 %v3605_v24, %s3206_s20  ;;  %5376 = vst [vmem:[#allocation33_spill] sm:$0xff] %v3743_v3  ;;  %v5314_v3 = vmov 3  }
 0x130   :  { %515 = vrot.lane.b32.xlu0 %v3731_v8, %s3204_s18 }
 0x132   :  { %v3741_v26 = vpop.permute.xlu0 %646 }
 0x136   :  { %v3757_v25 = vpop.permute.xlu1 %493 }
 0x137   :  { %801 = vrot.lane.b32.xlu2 %v3636_v31, %s3206_s20  ;;  %811 = vrot.lane.b32.xlu1 %v3648_v5, %s3206_s20  ;;  %5380 = vst [vmem:[#allocation37_spill] sm:$0xff] %v3757_v25 }
 0x138   :  { %676 = vrot.lane.b32.xlu0 %v3731_v8, %s3205_s19 }
 0x139   :  { %v3751_v56 = vpop.permute.xlu2 %489 }
 0x13a   :  { %5377 = vst [vmem:[#allocation34_spill] sm:$0xff] %v3751_v56  ;;  %v3753_v58 = vpop.permute.xlu0 %719 }
 0x13b   :  { %5378 = vst [vmem:[#allocation35_spill] sm:$0xff] %v3753_v58 }
 0x13e   :  { %v3770_v32 = vpop.permute.xlu1 %654 }
 0x13f   :  { %817 = vrot.lane.b32.xlu1 %v3687_v21, %s3206_s20  ;;  %513 = vrot.lane.b32.xlu2 %v3755_v45, %s3204_s18  ;;  %5381 = vst [vmem:[#allocation38_spill] sm:$0xff] %v3770_v32  ;;  %v4025_v32 = vld [vmem:[%s5293_s4 + $0x50] sm:$0xff]  ;;  %s2656_s18 = sshll.u32 %s5301_s12, 4  ;;  %s2657_s18 = int_to_ptr.hbm [resolvable:$true] %s2656_s18 }
 0x140   :  { %809 = vrot.lane.b32.xlu0 %v3651_v60, %s3206_s20 }
 0x141   :  { %v3765_v40 = vpop.permute.xlu2 %650 }
 0x142   :  { %v3768_v33 = vpop.permute.xlu0 %491 }
 0x146   :  { %v3786_v15 = vpop.permute.xlu1 %723 }
 0x147   :  { %824 = vperm.xlu1 %2869, %v3406_v34   ;;  %674 = vrot.lane.b32.xlu2 %v3755_v45, %s3205_s19  ;;  %5383 = vst [vmem:[#allocation40_spill] sm:$0xff] %v3786_v15 }
 0x148   :  { %815 = vrot.lane.b32.xlu0 %v3691_v2, %s3206_s20 }
 0x149   :  { %v3777_v46 = vpop.permute.xlu2 %727 }
 0x14a   :  { %5382 = vst [vmem:[#allocation39_spill] sm:$0xff] %v3777_v46  ;;  %v3779_v13 = vpop.permute.xlu0 %652 }
 0x14f   :  { %836 = vperm.xlu1 %2869, %v3423_v37   ;;  %807 = vrot.lane.b32.xlu2 %v3677_v55, %s3206_s20 }
 0x150   :  { %821 = vrot.lane.b32.xlu0 %v3731_v8, %s3206_s20 }
 0x151   :  { %v3788_v12 = vpop.permute.xlu2 %495 }
 0x152   :  { %5384 = vst [vmem:[#allocation41_spill] sm:$0xff] %v3788_v12  ;;  %v3790_v0 = vpop.permute.xlu0 %731  ;;  %v5419_v12 = vmov 2  }
 0x153   :  { %5385 = vst [vmem:[#allocation42_spill] sm:$0xff] %v3790_v0 }
 0x157   :  { %844 = vperm.xlu1 %2869, %v3440_v41   ;;  %813 = vrot.lane.b32.xlu2 %v3715_v30, %s3206_s20  ;;  %v5427_v30 = vmov 4  }
 0x158   :  { %938 = vrot.lane.b32.xlu0 %v3527_v22, %s3209_s21 }
 0x159   :  { %v3797_v46 = vpop.permute.xlu2 %656  ;;  %v3799_v58 = vpop.permute.xlu1 %499 }
 0x15a   :  { %5386 = vst [vmem:[#allocation43_spill] sm:$0xff] %v3797_v46  ;;  %v3801_v8 = vpop.permute.xlu0 %497  ;;  %v5424_v46 = vmov 8  }
 0x15b   :  { %5387 = vst [vmem:[#allocation44_spill] sm:$0xff] %v3801_v8 }
 0x15f   :  { %856 = vperm.xlu1 %2869, %v3453_v43   ;;  %819 = vrot.lane.b32.xlu2 %v3755_v45, %s3206_s20 }
 0x160   :  { %1214 = vperm.xlu0 %2875, %v3411_v35  }
 0x161   :  { %v3807_v0 = vpop.permute.xlu2 %739  ;;  %v3809_v15 = vpop.permute.xlu1 %660 }
 0x162   :  { %5388 = vst [vmem:[#allocation45_spill] sm:$0xff] %v3807_v0  ;;  %v3811_v4 = vpop.permute.xlu0 %658 }
 0x163   :  { %5389 = vst [vmem:[#allocation46_spill] sm:$0xff] %v3811_v4 }
 0x167   :  { %868 = vperm.xlu1 %2869, %v3473_v49   ;;  %828 = vperm.xlu2 %2870, %v3411_v35  }
 0x168   :  { %1467 = vrot.lane.b32.xlu0 %v3538_v1, %s3210_s22 }
 0x169   :  { %v3817_v43 = vpop.permute.xlu1 %735  ;;  %v3819_v57 = vpop.permute.xlu2 %501 }
 0x16a   :  { %5390 = vst [vmem:[#allocation47_spill] sm:$0xff] %v3817_v43  ;;  %v3821_v59 = vpop.permute.xlu0 %791  ;;  %v5316_v43 = vmov 4  }
 0x16b   :  { %5391 = vst [vmem:[#allocation48_spill] sm:$0xff] %v3819_v57 }
 0x16f   :  { %2871 = vset.pattern.permute.xlu1 %v5314_v3  ;;  %840 = vperm.xlu2 %2870, %v3428_v38  }
 0x170   :  { %940 = vrot.lane.b32.xlu0 %v3594_v61, %s3209_s21  ;;  %969 = vperm.xlu1 %2871, %v3406_v34  }
 0x171   :  { %v3828_v49 = vpop.permute.xlu2 %662  ;;  %v3830_v0 = vpop.permute.xlu1 %505 }
 0x172   :  { %5392 = vst [vmem:[#allocation49_spill] sm:$0xff] %v3828_v49  ;;  %v3832_v21 = vpop.permute.xlu0 %503 }
 0x173   :  { %5393 = vst [vmem:[#allocation50_spill] sm:$0xff] %v3830_v0  ;;  %v5318_v0 = vmov 7  }
 0x174   :  { %5394 = vst [vmem:[#allocation51_spill] sm:$0xff] %v3832_v21 }
 0x177   :  { %848 = vperm.xlu2 %2870, %v3445_v42  }
 0x178   :  { %1222 = vperm.xlu0 %2875, %v3423_v37   ;;  %2873 = vset.pattern.permute.xlu1 %v5316_v43 }
 0x179   :  { %v3837_v3 = vpop.permute.xlu2 %795  ;;  %v3839_v38 = vpop.permute.xlu1 %666  ;;  %1086 = vperm.xlu1 %2873, %v3411_v35  }
 0x17a   :  { %5395 = vst [vmem:[#allocation52_spill] sm:$0xff] %v3837_v3  ;;  %v3842_v57 = vpop.permute.xlu0 %664 }
 0x17b   :  { %5396 = vst [vmem:[#allocation53_spill] sm:$0xff] %v3839_v38  ;;  %v5320_v38 = vmov 6  }
 0x17c   :  { %5397 = vst [vmem:[#allocation54_spill] sm:$0xff] %v3842_v57  ;;  %v5399_v57 = vmov 3  }
 0x17f   :  { %860 = vperm.xlu2 %2870, %v3458_v44  }
 0x180   :  { %2888 = vset.pattern.permute.xlu0 %v5318_v0 }
 0x181   :  { %1504 = vperm.xlu0 %2888, %v3411_v35   ;;  %v3847_v42 = vpop.permute.xlu1 %793  ;;  %v3849_v21 = vpop.permute.xlu2 %507  ;;  %1179 = vrot.lane.b32.xlu1 %v3527_v22, %s3214_s23 }
 0x182   :  { %5398 = vst [vmem:[#allocation55_spill] sm:$0xff] %v3849_v21  ;;  %v3853_v43 = vpop.permute.xlu0 %797  ;;  %2876 = vset.pattern.permute.xlu1 %v5320_v38 }
 0x187   :  { %936 = vrot.lane.b32.xlu2 %v3538_v1, %s3209_s21 }
 0x188   :  { %2872 = vset.pattern.permute.xlu2 %v5399_v57 }
 0x189   :  { %1471 = vrot.lane.b32.xlu0 %v3594_v61, %s3210_s22  ;;  %v3861_v0 = vpop.permute.xlu2 %668  ;;  %1322 = vrot.lane.b32.xlu1 %v3538_v1, %s3216_s24  ;;  %v3865_v21 = vpop.permute.xlu1 %511 }
 0x18a   :  { %5400 = vst [vmem:[#allocation56_spill] sm:$0xff] %v3861_v0  ;;  %v3867_v49 = vpop.permute.xlu0 %509  ;;  %v5406_v0 = vmov 5  }
 0x18b   :  { %5401 = vst [vmem:[#allocation57_spill] sm:$0xff] %v3865_v21 }
 0x18c   :  { %5402 = vst [vmem:[#allocation58_spill] sm:$0xff] %v3867_v49 }
 0x18f   :  { %973 = vperm.xlu2 %2872, %v3411_v35  }
 0x191   :  { %1512 = vperm.xlu0 %2888, %v3423_v37   ;;  %v3871_v38 = vpop.permute.xlu2 %801  ;;  %1355 = vperm.xlu1 %2876, %v3406_v34   ;;  %v3874_v52 = vpop.permute.xlu1 %672 }
 0x192   :  { %5403 = vst [vmem:[#allocation59_spill] sm:$0xff] %v3871_v38  ;;  %v3876_v8 = vpop.permute.xlu0 %670 }
 0x193   :  { %5404 = vst [vmem:[#allocation60_spill] sm:$0xff] %v3874_v52  ;;  %v5322_v52 = vmov 8  }
 0x194   :  { %5405 = vst [vmem:[#allocation61_spill] sm:$0xff] %v3876_v8 }
 0x197   :  { %1177 = vrot.lane.b32.xlu2 %v3538_v1, %s3214_s23 }
 0x198   :  { %2874 = vset.pattern.permute.xlu2 %v5406_v0 }
 0x199   :  { %944 = vrot.lane.b32.xlu0 %v3552_v20, %s3209_s21  ;;  %1469 = vrot.lane.b32.xlu1 %v3527_v22, %s3210_s22  ;;  %v3885_v49 = vpop.permute.xlu1 %799  ;;  %v3887_v21 = vpop.permute.xlu2 %513 }
 0x19a   :  { %5407 = vst [vmem:[#allocation62_spill] sm:$0xff] %v3885_v49  ;;  %v3889_v62 = vpop.permute.xlu0 %803  ;;  %2879 = vset.pattern.permute.xlu1 %v5322_v52 }
 0x19b   :  { %5408 = vst [vmem:[#allocation63_spill] sm:$0xff] %v3887_v21  ;;  %v5412_v21 = vmov 6  }
 0x19c   :  { %5409 = vst [vmem:[#allocation64_spill] sm:$0xff] %v3889_v62 }
 0x19f   :  { %1210 = vperm.xlu2 %2874, %v3406_v34  }
 0x1a1   :  { %1475 = vrot.lane.b32.xlu0 %v3552_v20, %s3210_s22  ;;  %1612 = vrot.lane.b32.xlu1 %v3538_v1, %s3218_s25  ;;  %v3897_v8 = vpop.permute.xlu1 %805  ;;  %v3899_v4 = vpop.permute.xlu2 %674 }
 0x1a2   :  { %5410 = vst [vmem:[#allocation65_spill] sm:$0xff] %v3899_v4  ;;  %v3901_v38 = vpop.permute.xlu0 %515 }
 0x1a3   :  { %5411 = vst [vmem:[#allocation66_spill] sm:$0xff] %v3901_v38 }
 0x1a7   :  { %1324 = vrot.lane.b32.xlu2 %v3527_v22, %s3216_s24 }
 0x1a8   :  { %2877 = vset.pattern.permute.xlu2 %v5412_v21 }
 0x1a9   :  { %1520 = vperm.xlu0 %2888, %v3440_v41   ;;  %1645 = vperm.xlu1 %2879, %v3406_v34   ;;  %v3908_v52 = vpop.permute.xlu1 %811  ;;  %v3910_v62 = vpop.permute.xlu2 %807 }
 0x1aa   :  { %5413 = vst [vmem:[#allocation67_spill] sm:$0xff] %v3908_v52  ;;  %v3912_v16 = vpop.permute.xlu0 %676  ;;  %v5420_v52 = vmov 7  }
 0x1ab   :  { %5414 = vst [vmem:[#allocation68_spill] sm:$0xff] %v3910_v62 }
 0x1ac   :  { %5415 = vst [vmem:[#allocation69_spill] sm:$0xff] %v3912_v16  ;;  %v3133_v16 = vld [vmem:[%s5292_s3] sm:$0xff] }
 0x1af   :  { %1359 = vperm.xlu2 %2877, %v3411_v35  }
 0x1b1   :  { %948 = vrot.lane.b32.xlu0 %v3608_v48, %s3209_s21  ;;  %942 = vrot.lane.b32.xlu1 %v3569_v7, %s3209_s21  ;;  %v3919_v4 = vpop.permute.xlu1 %817  ;;  %v3921_v38 = vpop.permute.xlu2 %813 }
 0x1b2   :  { %5416 = vst [vmem:[#allocation70_spill] sm:$0xff] %v3919_v4  ;;  %v3923_v41 = vpop.permute.xlu0 %809  ;;  %2882 = vset.pattern.permute.xlu1 %v5419_v12 }
 0x1b3   :  { %5417 = vst [vmem:[#allocation71_spill] sm:$0xff] %v3921_v38 }
 0x1b4   :  { %5418 = vst [vmem:[#allocation72_spill] sm:$0xff] %v3923_v41 }
 0x1b7   :  { %2878 = vset.pattern.permute.xlu2 %v5420_v52 }
 0x1b8   :  { %1500 = vperm.xlu2 %2878, %v3406_v34  }
 0x1b9   :  { %1479 = vrot.lane.b32.xlu0 %v3608_v48, %s3210_s22  ;;  %1758 = vperm.xlu1 %2882, %v3133_v16   ;;  %v3933_v62 = vpop.permute.xlu1 %824  ;;  %v3935_v4 = vpop.permute.xlu2 %819 }
 0x1ba   :  { %5421 = vst [vmem:[#allocation73_spill] sm:$0xff] %v3935_v4  ;;  %v3937_v38 = vpop.permute.xlu0 %815 }
 0x1bb   :  { %5422 = vst [vmem:[#allocation74_spill] sm:$0xff] %v3937_v38 }
 0x1c0   :  { %1614 = vrot.lane.b32.xlu2 %v3527_v22, %s3218_s25 }
 0x1c1   :  { %1528 = vperm.xlu0 %2888, %v3375_v28   ;;  %2884 = vset.pattern.permute.xlu1 %v5399_v57  ;;  %v3943_v34 = vpop.permute.xlu1 %836  ;;  %v3945_v41 = vpop.permute.xlu2 %828 }
 0x1c2   :  { %v3947_v9 = vpop.permute.xlu0 %821  ;;  %1838 = vperm.xlu1 %2884, %v3133_v16   ;;  %2880 = vset.pattern.permute.xlu2 %v5424_v46 }
 0x1c3   :  { %5423 = vst [vmem:[#allocation75_spill] sm:$0xff] %v3947_v9 }
 0x1c8   :  { %1649 = vperm.xlu2 %2880, %v3411_v35  }
 0x1c9   :  { %952 = vrot.lane.b32.xlu0 %v3677_v55, %s3209_s21  ;;  %v3953_v4 = vpop.permute.xlu1 %844  ;;  %v3955_v38 = vpop.permute.xlu2 %840 }
 0x1ca   :  { %5425 = vst [vmem:[#allocation76_spill] sm:$0xff] %v3953_v4  ;;  %v3957_v28 = vpop.permute.xlu0 %938  ;;  %2886 = vset.pattern.permute.xlu1 %v5427_v30 }
 0x1cb   :  { %5426 = vst [vmem:[#allocation77_spill] sm:$0xff] %v3955_v38  ;;  %1094 = vperm.xlu1 %2886, %v3423_v37  }
 0x1d0   :  { %2881 = vset.pattern.permute.xlu2 %v5399_v57 }
 0x1d1   :  { %1483 = vrot.lane.b32.xlu0 %v3677_v55, %s3210_s22  ;;  %v3964_v16 = vpop.permute.xlu1 %856  ;;  %977 = vperm.xlu2 %2881, %v3369_v27   ;;  %v3967_v35 = vpop.permute.xlu2 %848  ;;  %v3134_v27 = vld [vmem:[%s5292_s3 + $0x8] sm:$0xff] }
 0x1d2   :  { %5428 = vst [vmem:[#allocation78_spill] sm:$0xff] %v3964_v16  ;;  %v3969_v9 = vpop.permute.xlu0 %1214 }
 0x1d3   :  { %5429 = vst [vmem:[#allocation79_spill] sm:$0xff] %v3967_v35  ;;  %1183 = vrot.lane.b32.xlu1 %v3569_v7, %s3214_s23 }
 0x1d4   :  { %2889 = vset.pattern.permute.xlu1 %v5412_v21 }
 0x1d9   :  { %1536 = vperm.xlu0 %2888, %v3458_v44   ;;  %v3975_v4 = vpop.permute.xlu1 %868  ;;  %2883 = vset.pattern.permute.xlu2 %v5419_v12  ;;  %v3978_v38 = vpop.permute.xlu2 %860  ;;  %v3993_v44 = vld [vmem:[%s5293_s4 + $0x10] sm:$0xff] }
 0x1da   :  { %5430 = vst [vmem:[#allocation80_spill] sm:$0xff] %v3975_v4  ;;  %v3980_v16 = vpop.permute.xlu0 %1467  ;;  %1762 = vperm.xlu2 %2883, %v3134_v27  }
 0x1db   :  { %5431 = vst [vmem:[#allocation81_spill] sm:$0xff] %v3978_v38  ;;  %1326 = vrot.lane.b32.xlu1 %v3594_v61, %s3216_s24 }
 0x1dc   :  { %5432 = vst [vmem:[#allocation82_spill] sm:$0xff] %v3980_v16 }
 0x1e1   :  { %2928 = vset.pattern.permute.xlu0 %v5419_v12  ;;  %v3988_v35 = vpop.permute.xlu2 %936 }
 0x1e2   :  { %5433 = vst [vmem:[#allocation83_spill] sm:$0xff] %v3988_v35  ;;  %832 = vperm.xlu0 %2928, %v3993_v44   ;;  %v3996_v4 = vpop.permute.xlu0 %940  ;;  %v3998_v38 = vpop.permute.xlu1 %969  ;;  %2885 = vset.pattern.permute.xlu2 %v5399_v57 }
 0x1e3   :  { %5434 = vst [vmem:[#allocation84_spill] sm:$0xff] %v3996_v4  ;;  %1363 = vperm.xlu1 %2889, %v3993_v44   ;;  %1842 = vperm.xlu2 %2885, %v3134_v27  }
 0x1e4   :  { %5435 = vst [vmem:[#allocation85_spill] sm:$0xff] %v3998_v38 }
 0x1e9   :  { %v4002_v49 = vpop.permute.xlu2 %973 }
 0x1ea   :  { %852 = vperm.xlu0 %2928, %v4007_v29   ;;  %v4010_v25 = vpop.permute.xlu0 %1222 }
 0x1eb   :  { %5436 = vst [vmem:[#allocation86_spill] sm:$0xff] %v4010_v25  ;;  %1473 = vrot.lane.b32.xlu1 %v3569_v7, %s3210_s22  ;;  %v4014_v19 = vpop.permute.xlu1 %1086  ;;  %1181 = vrot.lane.b32.xlu2 %v3594_v61, %s3214_s23 }
 0x1ec   :  { %2887 = vset.pattern.permute.xlu2 %v5406_v0  ;;  %2892 = vset.pattern.permute.xlu1 %v5424_v46 }
 0x1f1   :  { %v4020_v27 = vpop.permute.xlu2 %1177 }
 0x1f2   :  { %5437 = vst [vmem:[#allocation87_spill] sm:$0xff] %v4020_v27  ;;  %864 = vperm.xlu0 %2928, %v4025_v32  }
 0x1f3   :  { %v4028_v45 = vpop.permute.xlu0 %1504  ;;  %1616 = vrot.lane.b32.xlu1 %v3594_v61, %s3218_s25  ;;  %v4032_v55 = vpop.permute.xlu1 %1179  ;;  %1218 = vperm.xlu2 %2887, %v3993_v44  }
 0x1f9   :  { %v4035_v4 = vpop.permute.xlu2 %1210 }
 0x1fa   :  { %5438 = vst [vmem:[#allocation88_spill] sm:$0xff] %v4035_v4  ;;  %956 = vrot.lane.b32.xlu0 %v3648_v5, %s3209_s21 }
 0x1fb   :  { %v4039_v16 = vpop.permute.xlu0 %1471  ;;  %1653 = vperm.xlu1 %2892, %v3993_v44   ;;  %v4042_v1 = vpop.permute.xlu1 %1322  ;;  %1328 = vrot.lane.b32.xlu2 %v3569_v7, %s3216_s24 }
 0x1fc   :  { %5439 = vst [vmem:[#allocation89_spill] sm:$0xff] %v4039_v16  ;;  %2890 = vset.pattern.permute.xlu2 %v5412_v21 }
 0x1fd   :  { %5440 = vst [vmem:[#allocation90_spill] sm:$0xff] %v4042_v1 }
 0x201   :  { %v4047_v61 = vpop.permute.xlu2 %1324 }
 0x202   :  { %1487 = vrot.lane.b32.xlu0 %v3648_v5, %s3210_s22  ;;  %v3138_v5 = vld [vmem:[%s5292_s3 + $0x10] sm:$0xff] }
 0x203   :  { %v4051_v4 = vpop.permute.xlu0 %1512  ;;  %946 = vrot.lane.b32.xlu1 %v3636_v31, %s3209_s21  ;;  %v4055_v16 = vpop.permute.xlu1 %1355  ;;  %1367 = vperm.xlu2 %2890, %v3423_v37  }
 0x204   :  { %5441 = vst [vmem:[#allocation91_spill] sm:$0xff] %v4051_v4  ;;  %2895 = vset.pattern.permute.xlu1 %v5419_v12 }
 0x205   :  { %5442 = vst [vmem:[#allocation92_spill] sm:$0xff] %v4055_v16 }
 0x209   :  { %v4059_v1 = vpop.permute.xlu2 %1359 }
 0x20a   :  { %872 = vperm.xlu0 %2928, %v3478_v50  }
 0x20b   :  { %v4062_v27 = vpop.permute.xlu0 %944  ;;  %1766 = vperm.xlu1 %2895, %v3138_v5   ;;  %v4067_v4 = vpop.permute.xlu1 %1469  ;;  %2891 = vset.pattern.permute.xlu2 %v5420_v52 }
 0x20c   :  { %5443 = vst [vmem:[#allocation93_spill] sm:$0xff] %v4062_v27  ;;  %1508 = vperm.xlu2 %2891, %v3993_v44  }
 0x212   :  { %1491 = vrot.lane.b32.xlu0 %v3691_v2, %s3210_s22  ;;  %v4073_v37 = vpop.permute.xlu2 %1500 }
 0x213   :  { %5444 = vst [vmem:[#allocation94_spill] sm:$0xff] %v4073_v37  ;;  %v4075_v16 = vpop.permute.xlu0 %1475  ;;  %2897 = vset.pattern.permute.xlu1 %v5399_v57  ;;  %v4078_v50 = vpop.permute.xlu1 %1612 }
 0x214   :  { %5445 = vst [vmem:[#allocation95_spill] sm:$0xff] %v4075_v16  ;;  %1846 = vperm.xlu1 %2897, %v3138_v5   ;;  %1618 = vrot.lane.b32.xlu2 %v3569_v7, %s3218_s25  ;;  %v3139_v16 = vld [vmem:[%s5293_s4 + $0x18] sm:$0xff]  ;;  %v4097_v5 = vld [vmem:[%s5293_s4 + $0x28] sm:$0xff] }
 0x215   :  { %5446 = vst [vmem:[#allocation96_spill] sm:$0xff] %v4078_v50  ;;  %2893 = vset.pattern.permute.xlu2 %v5424_v46  ;;  %v4113_v50 = vld [vmem:[%s5293_s4 + $0x20] sm:$0xff] }
 0x21a   :  { %880 = vperm.xlu0 %2928, %v3489_v54   ;;  %v4084_v27 = vpop.permute.xlu2 %1614 }
 0x21b   :  { %v4086_v3 = vpop.permute.xlu0 %1520  ;;  %v4088_v2 = vpop.permute.xlu1 %1645 }
 0x21c   :  { %5447 = vst [vmem:[#allocation97_spill] sm:$0xff] %v4086_v3  ;;  %2899 = vset.pattern.permute.xlu1 %v5427_v30  ;;  %1657 = vperm.xlu2 %2893, %v3139_v16  }
 0x21d   :  { %5448 = vst [vmem:[#allocation98_spill] sm:$0xff] %v4088_v2  ;;  %1102 = vperm.xlu1 %2899, %v4097_v5  }
 0x222   :  { %2955 = vset.pattern.permute.xlu0 %v5399_v57  ;;  %v4101_v54 = vpop.permute.xlu2 %1649 }
 0x223   :  { %981 = vperm.xlu0 %2955, %v3139_v16   ;;  %v4103_v3 = vpop.permute.xlu0 %948  ;;  %v4105_v2 = vpop.permute.xlu1 %942 }
 0x224   :  { %5449 = vst [vmem:[#allocation99_spill] sm:$0xff] %v4103_v3  ;;  %2894 = vset.pattern.permute.xlu2 %v5399_v57 }
 0x225   :  { %1187 = vrot.lane.b32.xlu1 %v3636_v31, %s3214_s23  ;;  %985 = vperm.xlu2 %2894, %v4113_v50  }
 0x226   :  { %2901 = vset.pattern.permute.xlu1 %v5412_v21 }
 0x22b   :  { %989 = vperm.xlu0 %2955, %v4097_v5   ;;  %v4118_v16 = vpop.permute.xlu0 %1479  ;;  %v4120_v3 = vpop.permute.xlu2 %977 }
 0x22c   :  { %5450 = vst [vmem:[#allocation100_spill] sm:$0xff] %v4118_v16  ;;  %v4122_v37 = vpop.permute.xlu1 %1758 }
 0x22d   :  { %5451 = vst [vmem:[#allocation101_spill] sm:$0xff] %v4120_v3  ;;  %1330 = vrot.lane.b32.xlu1 %v3552_v20, %s3216_s24  ;;  %2896 = vset.pattern.permute.xlu2 %v5419_v12 }
 0x22e   :  { %5452 = vst [vmem:[#allocation102_spill] sm:$0xff] %v4122_v37  ;;  %1770 = vperm.xlu2 %2896, %v3142_v17   ;;  %v4142_v37 = vld [vmem:[%s5293_s4 + $0x48] sm:$0xff] }
 0x233   :  { %997 = vperm.xlu0 %2955, %v4007_v29   ;;  %v4131_v56 = vpop.permute.xlu0 %1528 }
 0x234   :  { %5453 = vst [vmem:[#allocation103_spill] sm:$0xff] %v4131_v56  ;;  %v4133_v25 = vpop.permute.xlu2 %1762  ;;  %v4135_v16 = vpop.permute.xlu1 %1838 }
 0x235   :  { %5454 = vst [vmem:[#allocation104_spill] sm:$0xff] %v4133_v25  ;;  %1371 = vperm.xlu1 %2901, %v4113_v50  }
 0x236   :  { %5455 = vst [vmem:[#allocation105_spill] sm:$0xff] %v4135_v16  ;;  %2898 = vset.pattern.permute.xlu2 %v5399_v57 }
 0x237   :  { %1850 = vperm.xlu2 %2898, %v3142_v17   ;;  %v4160_v17 = vld [vmem:[%s5293_s4 + $0x58] sm:$0xff] }
 0x23b   :  { %1005 = vperm.xlu0 %2955, %v4142_v37   ;;  %v4145_v3 = vpop.permute.xlu0 %952 }
 0x23c   :  { %5456 = vst [vmem:[#allocation106_spill] sm:$0xff] %v4145_v3 }
 0x23d   :  { %1477 = vrot.lane.b32.xlu1 %v3636_v31, %s3210_s22  ;;  %v4149_v56 = vpop.permute.xlu1 %1094  ;;  %v4151_v16 = vpop.permute.xlu2 %1842 }
 0x23e   :  { %5457 = vst [vmem:[#allocation107_spill] sm:$0xff] %v4149_v56  ;;  %2904 = vset.pattern.permute.xlu1 %v5424_v46  ;;  %v4175_v56 = vld [vmem:[%s5293_s4 + $0x68] sm:$0xff] }
 0x23f   :  { %5458 = vst [vmem:[#allocation108_spill] sm:$0xff] %v4151_v16  ;;  %1185 = vrot.lane.b32.xlu2 %v3552_v20, %s3214_s23 }
 0x240   :  { %2900 = vset.pattern.permute.xlu2 %v5406_v0 }
 0x243   :  { %1013 = vperm.xlu0 %2955, %v4160_v17   ;;  %v4163_v3 = vpop.permute.xlu0 %1483 }
 0x244   :  { %5459 = vst [vmem:[#allocation109_spill] sm:$0xff] %v4163_v3 }
 0x245   :  { %1620 = vrot.lane.b32.xlu1 %v3552_v20, %s3218_s25  ;;  %v4167_v16 = vpop.permute.xlu1 %1183  ;;  %v4169_v25 = vpop.permute.xlu2 %1181 }
 0x246   :  { %5460 = vst [vmem:[#allocation110_spill] sm:$0xff] %v4167_v16 }
 0x247   :  { %5461 = vst [vmem:[#allocation111_spill] sm:$0xff] %v4169_v25  ;;  %1226 = vperm.xlu2 %2900, %v4113_v50   ;;  %v4191_v25 = vld [vmem:[%s5293_s4 + $0x78] sm:$0xff] }
 0x248   :  { %5465 = vst [vmem:[#allocation115_spill] sm:$0xff] %v4191_v25 }
 0x24b   :  { %1021 = vperm.xlu0 %2955, %v4175_v56   ;;  %v4178_v7 = vpop.permute.xlu0 %1536 }
 0x24c   :  { %5462 = vst [vmem:[#allocation112_spill] sm:$0xff] %v4178_v7 }
 0x24d   :  { %1661 = vperm.xlu1 %2904, %v4113_v50   ;;  %v4181_v3 = vpop.permute.xlu1 %1326  ;;  %v4183_v20 = vpop.permute.xlu2 %1218 }
 0x24e   :  { %5463 = vst [vmem:[#allocation113_spill] sm:$0xff] %v4181_v3 }
 0x24f   :  { %5464 = vst [vmem:[#allocation114_spill] sm:$0xff] %v4183_v20  ;;  %1332 = vrot.lane.b32.xlu2 %v3636_v31, %s3216_s24  ;;  %v3147_v20 = vld [vmem:[%s5293_s4] sm:$0xff] }
 0x250   :  { %2902 = vset.pattern.permute.xlu2 %v5412_v21 }
 0x253   :  { %1029 = vperm.xlu0 %2955, %v4191_v25  }
 0x254   :  { %v4194_v16 = vpop.permute.xlu0 %832 }
 0x255   :  { %5466 = vst [vmem:[#allocation116_spill] sm:$0xff] %v4194_v16  ;;  %950 = vrot.lane.b32.xlu1 %v3605_v24, %s3209_s21  ;;  %v4198_v7 = vpop.permute.xlu1 %1363  ;;  %v4200_v3 = vpop.permute.xlu2 %1328  ;;  %v3148_v16 = vld [vmem:[%s5292_s3 + $0x20] sm:$0xff] }
 0x256   :  { %5467 = vst [vmem:[#allocation117_spill] sm:$0xff] %v4198_v7  ;;  %2907 = vset.pattern.permute.xlu1 %v5419_v12 }
 0x257   :  { %5468 = vst [vmem:[#allocation118_spill] sm:$0xff] %v4200_v3  ;;  %1375 = vperm.xlu2 %2902, %v4097_v5  }
 0x25b   :  { %2958 = vset.pattern.permute.xlu0 %v5427_v30 }
 0x25c   :  { %1082 = vperm.xlu0 %2958, %v3147_v20   ;;  %v4208_v38 = vpop.permute.xlu0 %852 }
 0x25d   :  { %1774 = vperm.xlu1 %2907, %v3148_v16   ;;  %v4213_v7 = vpop.permute.xlu1 %1473  ;;  %v4215_v3 = vpop.permute.xlu2 %1367 }
 0x25e   :  { %5469 = vst [vmem:[#allocation119_spill] sm:$0xff] %v4213_v7 }
 0x25f   :  { %5470 = vst [vmem:[#allocation120_spill] sm:$0xff] %v4215_v3  ;;  %2903 = vset.pattern.permute.xlu2 %v5420_v52 }
 0x260   :  { %1516 = vperm.xlu2 %2903, %v4113_v50  }
 0x264   :  { %1090 = vperm.xlu0 %2958, %v3993_v44   ;;  %v4220_v35 = vpop.permute.xlu0 %864 }
 0x265   :  { %5471 = vst [vmem:[#allocation121_spill] sm:$0xff] %v4220_v35  ;;  %2909 = vset.pattern.permute.xlu1 %v5399_v57  ;;  %v4223_v20 = vpop.permute.xlu1 %1616 }
 0x266   :  { %5472 = vst [vmem:[#allocation122_spill] sm:$0xff] %v4223_v20  ;;  %1854 = vperm.xlu1 %2909, %v3148_v16   ;;  %v4225_v25 = vpop.permute.xlu2 %1508  ;;  %v4243_v16 = vld [vmem:[%s5293_s4 + $0x30] sm:$0xff]  ;;  %v3151_v20 = vld [vmem:[%s5292_s3 + $0x28] sm:$0xff] }
 0x267   :  { %5473 = vst [vmem:[#allocation123_spill] sm:$0xff] %v4225_v25 }
 0x268   :  { %1622 = vrot.lane.b32.xlu2 %v3636_v31, %s3218_s25  ;;  %v4260_v31 = vld [vmem:[%s5293_s4 + $0x40] sm:$0xff] }
 0x269   :  { %2905 = vset.pattern.permute.xlu2 %v5424_v46 }
 0x26c   :  { %1098 = vperm.xlu0 %2958, %v4113_v50   ;;  %v4231_v7 = vpop.permute.xlu0 %956 }
 0x26d   :  { %5474 = vst [vmem:[#allocation124_spill] sm:$0xff] %v4231_v7  ;;  %v4233_v3 = vpop.permute.xlu1 %1653 }
 0x26e   :  { %5475 = vst [vmem:[#allocation125_spill] sm:$0xff] %v4233_v3  ;;  %2911 = vset.pattern.permute.xlu1 %v5427_v30  ;;  %v4236_v44 = vpop.permute.xlu2 %1618 }
 0x26f   :  { %5476 = vst [vmem:[#allocation126_spill] sm:$0xff] %v4236_v44  ;;  %1110 = vperm.xlu1 %2911, %v4007_v29  }
 0x270   :  { %1665 = vperm.xlu2 %2905, %v4097_v5  }
 0x274   :  { %1106 = vperm.xlu0 %2958, %v4243_v16   ;;  %v4246_v50 = vpop.permute.xlu0 %1487 }
 0x275   :  { %5477 = vst [vmem:[#allocation127_spill] sm:$0xff] %v4246_v50  ;;  %v4248_v7 = vpop.permute.xlu1 %946 }
 0x276   :  { %5478 = vst [vmem:[#allocation128_spill] sm:$0xff] %v4248_v7  ;;  %v4250_v35 = vpop.permute.xlu2 %1657 }
 0x277   :  { %5479 = vst [vmem:[#allocation129_spill] sm:$0xff] %v4250_v35  ;;  %1191 = vrot.lane.b32.xlu1 %v3605_v24, %s3214_s23 }
 0x278   :  { %2906 = vset.pattern.permute.xlu2 %v5399_v57  ;;  %2913 = vset.pattern.permute.xlu1 %v5412_v21 }
 0x279   :  { %993 = vperm.xlu2 %2906, %v4243_v16  }
 0x27c   :  { %1114 = vperm.xlu0 %2958, %v4260_v31   ;;  %v4263_v50 = vpop.permute.xlu0 %872 }
 0x27d   :  { %5480 = vst [vmem:[#allocation130_spill] sm:$0xff] %v4263_v50  ;;  %v4265_v7 = vpop.permute.xlu1 %1766 }
 0x27e   :  { %5481 = vst [vmem:[#allocation131_spill] sm:$0xff] %v4265_v7 }
 0x27f   :  { %1334 = vrot.lane.b32.xlu1 %v3608_v48, %s3216_s24  ;;  %v4269_v3 = vpop.permute.xlu2 %985 }
 0x280   :  { %5482 = vst [vmem:[#allocation132_spill] sm:$0xff] %v4269_v3  ;;  %v3152_v3 = vld [vmem:[%s5293_s4 + $0x60] sm:$0xff] }
 0x281   :  { %2908 = vset.pattern.permute.xlu2 %v5419_v12 }
 0x282   :  { %1778 = vperm.xlu2 %2908, %v3151_v20  }
 0x284   :  { %1122 = vperm.xlu0 %2958, %v4025_v32   ;;  %v4276_v25 = vpop.permute.xlu0 %1491 }
 0x285   :  { %5483 = vst [vmem:[#allocation133_spill] sm:$0xff] %v4276_v25 }
 0x286   :  { %v4278_v35 = vpop.permute.xlu1 %1846 }
 0x287   :  { %5484 = vst [vmem:[#allocation134_spill] sm:$0xff] %v4278_v35  ;;  %1379 = vperm.xlu1 %2913, %v4243_v16  }
 0x288   :  { %v4281_v50 = vpop.permute.xlu2 %1770 }
 0x289   :  { %5485 = vst [vmem:[#allocation135_spill] sm:$0xff] %v4281_v50  ;;  %v598_v50 = vmul.f32 %v3587_v47, %v3705_v63  ;;  %v2819_v47 = vld [vmem:[%s5297_s8 + $0x38] sm:$0xff] }
 0x28a   :  { %2910 = vset.pattern.permute.xlu2 %v5399_v57  ;;  %2085 = vmatpush.bf16.msra.mxu1 %v2819_v47 }
 0x28b   :  { %1858 = vperm.xlu2 %2910, %v3151_v20   ;;  %v3153_v20 = vld [vmem:[%s5293_s4 + $0x70] sm:$0xff] }
 0x28c   :  { %1130 = vperm.xlu0 %2958, %v3152_v3   ;;  %v4287_v7 = vpop.permute.xlu0 %880 }
 0x28d   :  { %5486 = vst [vmem:[#allocation136_spill] sm:$0xff] %v4287_v7 }
 0x28f   :  { %1481 = vrot.lane.b32.xlu1 %v3605_v24, %s3210_s22  ;;  %v4291_v32 = vpop.permute.xlu1 %1102 }
 0x290   :  { %5487 = vst [vmem:[#allocation137_spill] sm:$0xff] %v4291_v32  ;;  %2916 = vset.pattern.permute.xlu1 %v5424_v46 }
 0x291   :  { %v4294_v25 = vpop.permute.xlu2 %1850 }
 0x292   :  { %5488 = vst [vmem:[#allocation138_spill] sm:$0xff] %v4294_v25 }
 0x293   :  { %1189 = vrot.lane.b32.xlu2 %v3608_v48, %s3214_s23 }
 0x294   :  { %1138 = vperm.xlu0 %2958, %v3153_v20   ;;  %2912 = vset.pattern.permute.xlu2 %v5406_v0 }
 0x295   :  { %v982_v3 = vpop.permute.xlu0 %981 }
 0x297   :  { %1624 = vrot.lane.b32.xlu1 %v3608_v48, %s3218_s25  ;;  %v4304_v7 = vpop.permute.xlu1 %1187 }
 0x298   :  { %5489 = vst [vmem:[#allocation139_spill] sm:$0xff] %v4304_v7 }
 0x299   :  { %v4306_v32 = vpop.permute.xlu2 %1185 }
 0x29a   :  { %5490 = vst [vmem:[#allocation140_spill] sm:$0xff] %v4306_v32 }
 0x29b   :  { %1234 = vperm.xlu2 %2912, %v4243_v16  }
 0x29c   :  { %2962 = vset.pattern.permute.xlu0 %v5406_v0  ;;  %v743_v0 = vmul.f32 %v3685_v11, %v3726_v18  ;;  %v1033_v11 = vmul.f32 %v4002_v49, %v3957_v28 }
 0x29d   :  { %1230 = vperm.xlu0 %2962, %v4097_v5   ;;  %v4311_v35 = vpop.permute.xlu0 %989 }
 0x29e   :  { %5491 = vst [vmem:[#allocation141_spill] sm:$0xff] %v4311_v35 }
 0x29f   :  { %1669 = vperm.xlu1 %2916, %v4243_v16   ;;  %v4314_v20 = vpop.permute.xlu1 %1330 }
 0x2a0   :  { %5492 = vst [vmem:[#allocation142_spill] sm:$0xff] %v4314_v20  ;;  %v3154_v20 = vld [vmem:[%s5292_s3 + $0x30] sm:$0xff] }
 0x2a1   :  { %v4316_v25 = vpop.permute.xlu2 %1226 }
 0x2a2   :  { %5493 = vst [vmem:[#allocation143_spill] sm:$0xff] %v4316_v25 }
 0x2a3   :  { %1336 = vrot.lane.b32.xlu2 %v3605_v24, %s3216_s24 }
 0x2a4   :  { %2914 = vset.pattern.permute.xlu2 %v5412_v21 }
 0x2a5   :  { %1238 = vperm.xlu0 %2962, %v4007_v29   ;;  %v4322_v48 = vpop.permute.xlu0 %997 }
 0x2a7   :  { %954 = vrot.lane.b32.xlu1 %v3651_v60, %s3209_s21  ;;  %v4326_v5 = vpop.permute.xlu1 %1371 }
 0x2a8   :  { %5494 = vst [vmem:[#allocation144_spill] sm:$0xff] %v4326_v5  ;;  %2919 = vset.pattern.permute.xlu1 %v5419_v12  ;;  %v483_v5 = vld [vmem:[%s5290_s1] sm:$0xff] }
 0x2a9   :  { %v4329_v7 = vpop.permute.xlu2 %1332  ;;  %v4361_v44 = vperm.slane %v483_v5, 2  ;;  %v4387_v47 = vperm.slane %v483_v5, 5 }
 0x2aa   :  { %5495 = vst [vmem:[#allocation145_spill] sm:$0xff] %v4329_v7  ;;  %v4345_v7 = vperm.slane %v483_v5, 1 }
 0x2ab   :  { %1383 = vperm.xlu2 %2914, %v4007_v29  }
 0x2ac   :  { %v760_v12 = vmul.f32 %v4345_v7, %v743_v0  ;;  %v745_v0 = vmul.f32 %v3673_v36, %v3779_v13  ;;  %v1274_v13 = vmul.f32 %v3969_v9, %v4032_v55  ;;  %v1035_v36 = vmul.f32 %v982_v3, %v4105_v2  ;;  %v2817_v55 = vld [vmem:[%s5297_s8 + $0x28] sm:$0xff] }
 0x2ad   :  { %1246 = vperm.xlu0 %2962, %v4142_v37   ;;  %v4333_v35 = vpop.permute.xlu0 %1005  ;;  %v742_v9 = vmul.f32 %v3662_v14, %v3741_v26  ;;  %v749_v3 = vmul.f32 %v3713_v53, %v3809_v15  ;;  %v604_v14 = vmul.f32 %v3532_v39, %v3799_v58  ;;  %v894_v53 = vmul.f32 %v4208_v38, %v3897_v8  ;;  %v2816_v39 = vld [vmem:[%s5297_s8 + $0x20] sm:$0xff]  ;;  %v5501_v38 = vld [vmem:[#allocation115_spill] sm:$0xff] }
 0x2ae   :  { %5496 = vst [vmem:[#allocation146_spill] sm:$0xff] %v4333_v35  ;;  %v4350_v35 = vperm.slane %v483_v5, 0  ;;  %v597_v58 = vmul.f32 %v3572_v10, %v3729_v6  ;;  %v744_v8 = vmul.f32 %v3698_v51, %v3765_v40  ;;  %v2815_v40 = vld [vmem:[%s5297_s8 + $0x18] sm:$0xff] }
 0x2af   :  { %1782 = vperm.xlu1 %2919, %v3154_v20   ;;  %v4338_v25 = vpop.permute.xlu1 %1477  ;;  %v911_v51 = vmul.f32 %v4361_v44, %v894_v53  ;;  %v2814_v53 = vld [vmem:[%s5297_s8 + $0x10] sm:$0xff] }
 0x2b0   :  { %5497 = vst [vmem:[#allocation147_spill] sm:$0xff] %v4338_v25  ;;  %v888_v25 = vmul.f32 %v3945_v41, %v3847_v42  ;;  %v615_v18 = vmul.f32 %v4350_v35, %v598_v50  ;;  %v4373_v41 = vperm.slane %v483_v5, 3  ;;  %v600_v50 = vmul.f32 %v3583_v23, %v3768_v33 }
 0x2b1   :  { %v4343_v32 = vpop.permute.xlu2 %1375  ;;  %v621_v10 = vmul.f32 %v4350_v35, %v604_v14  ;;  %v5509_v14 = vld [vmem:[#allocation34_spill] sm:$0xff] }
 0x2b2   :  { %5498 = vst [vmem:[#allocation148_spill] sm:$0xff] %v4343_v32  ;;  %v905_v42 = vmul.f32 %v4361_v44, %v888_v25  ;;  %v776_v49 = vadd.f32 %v760_v12, %v615_v18  ;;  %v1050_v28 = vmul.f32 %v4373_v41, %v1033_v11  ;;  %v890_v25 = vmul.f32 %v3943_v34, %v3853_v43 }
 0x2b3   :  { %2915 = vset.pattern.permute.xlu2 %v5420_v52  ;;  %v762_v12 = vmul.f32 %v4345_v7, %v745_v0  ;;  %v1419_v43 = vmul.f32 %v4059_v1, %v4047_v61  ;;  %v617_v34 = vmul.f32 %v4350_v35, %v600_v50  ;;  %v1146_v11 = vmul.f32 %v4014_v19, %v3527_v22 }
 0x2b4   :  { %1524 = vperm.xlu2 %2915, %v4243_v16   ;;  %v907_v2 = vmul.f32 %v4361_v44, %v890_v25  ;;  %v1291_v1 = vmul.f32 %v4387_v47, %v1274_v13  ;;  %v4415_v61 = vperm.slane %v483_v5, 6  ;;  %v4420_v18 = vperm.slane %v483_v5, 7  ;;  %v5504_v25 = vld [vmem:[#allocation85_spill] sm:$0xff] }
 0x2b5   :  { %1254 = vperm.xlu0 %2962, %v4160_v17   ;;  %v4358_v32 = vpop.permute.xlu0 %1013  ;;  %v778_v26 = vadd.f32 %v762_v12, %v617_v34  ;;  %v1564_v19 = vmul.f32 %v4028_v45, %v4067_v4  ;;  %v887_v5 = vmul.f32 %v3933_v62, %v3821_v59  ;;  %v1709_v4 = vmul.f32 %v4101_v54, %v4084_v27  ;;  %v5503_v62 = vld [vmem:[#allocation83_spill] sm:$0xff] }
 0x2b6   :  { %5499 = vst [vmem:[#allocation149_spill] sm:$0xff] %v4358_v32  ;;  %v2818_v32 = vld [vmem:[%s5297_s8 + $0x30] sm:$0xff]  ;;  %v1436_v22 = vmul.f32 %v4415_v61, %v1419_v43  ;;  %v759_v45 = vmul.f32 %v4345_v7, %v742_v9  ;;  %v614_v54 = vmul.f32 %v4350_v35, %v597_v58  ;;  %v5508_v9 = vld [vmem:[#allocation86_spill] sm:$0xff] }
 0x2b7   :  { %2921 = vset.pattern.permute.xlu1 %v5399_v57  ;;  %v4369_v63 = vpop.permute.xlu1 %1620  ;;  %2086 = vmatpush.bf16.msra.mxu1 %v2818_v32  ;;  %v1581_v27 = vmul.f32 %v4420_v18, %v1564_v19  ;;  %v904_v12 = vmul.f32 %v4361_v44, %v887_v5 }
 0x2b8   :  { %1862 = vperm.xlu1 %2921, %v3154_v20   ;;  %v921_v20 = vadd.f32 %v905_v42, %v776_v49  ;;  %v1052_v42 = vmul.f32 %v4373_v41, %v1035_v36  ;;  %v923_v49 = vadd.f32 %v907_v2, %v778_v26  ;;  %v5505_v36 = vld [vmem:[#allocation10_spill] sm:$0xff]  ;;  %v775_v26 = vadd.f32 %v759_v45, %v614_v54  ;;  %v5512_v45 = vld [vmem:[#allocation116_spill] sm:$0xff] }
 0x2ba   :  { %v4378_v16 = vpop.permute.xlu2 %1516  ;;  %v1066_v33 = vadd.f32 %v1050_v28, %v921_v20  ;;  %v766_v28 = vmul.f32 %v4345_v7, %v749_v3  ;;  %v1068_v6 = vadd.f32 %v1052_v42, %v923_v49  ;;  %v1032_v20 = vmul.f32 %v5504_v25, %v5503_v62  ;;  %v5510_v42 = vld [vmem:[#allocation5_spill] sm:$0xff]  ;;  %v5515_v25 = vld [vmem:[#allocation87_spill] sm:$0xff] }
 0x2bb   :  { %2087 = vmatpush.bf16.msra.mxu1 %v2817_v55  ;;  %v5507_v55 = vld [vmem:[#allocation110_spill] sm:$0xff] }
 0x2bc   :  { %1626 = vrot.lane.b32.xlu2 %v3605_v24, %s3218_s25  ;;  %v1162_v15 = vadd.f32 %v1146_v11, %v1066_v33  ;;  %v5506_v33 = vld [vmem:[#allocation107_spill] sm:$0xff]  ;;  %v1276_v34 = vmul.f32 %v5508_v9, %v5507_v55  ;;  %v782_v3 = vadd.f32 %v766_v28, %v621_v10  ;;  %v920_v28 = vadd.f32 %v904_v12, %v775_v26  ;;  %v5513_v10 = vld [vmem:[#allocation118_spill] sm:$0xff] }
 0x2bd   :  { %1262 = vperm.xlu0 %2962, %v4175_v56   ;;  %v4396_v23 = vpop.permute.xlu0 %1021  ;;  %2917 = vset.pattern.permute.xlu2 %v5424_v46  ;;  %v1148_v43 = vmul.f32 %v5506_v33, %v5505_v36  ;;  %v5517_v12 = vld [vmem:[#allocation90_spill] sm:$0xff]  ;;  %v5518_v36 = vld [vmem:[#allocation92_spill] sm:$0xff] }
 0x2be   :  { %5500 = vst [vmem:[#allocation150_spill] sm:$0xff] %v4396_v23  ;;  %v1307_v50 = vadd.f32 %v1291_v1, %v1162_v15  ;;  %v599_v15 = vmul.f32 %v5510_v42, %v5509_v14  ;;  %v927_v5 = vadd.f32 %v911_v51, %v782_v3  ;;  %v1418_v33 = vmul.f32 %v5518_v36, %v5517_v12  ;;  %v5522_v42 = vld [vmem:[#allocation7_spill] sm:$0xff]  ;;  %v5531_v36 = vld [vmem:[#allocation126_spill] sm:$0xff] }
 0x2bf   :  { %v4408_v32 = vpop.permute.xlu1 %1661  ;;  %2088 = vmatpush.bf16.msra.mxu1 %v2816_v39  ;;  %v1164_v19 = vadd.f32 %v1148_v43, %v1068_v6  ;;  %v1049_v39 = vmul.f32 %v4373_v41, %v1032_v20  ;;  %v5514_v6 = vld [vmem:[#allocation120_spill] sm:$0xff] }
 0x2c0   :  { %2923 = vset.pattern.permute.xlu1 %v5427_v30  ;;  %v1452_v13 = vadd.f32 %v1436_v22, %v1307_v50  ;;  %v761_v22 = vmul.f32 %v4345_v7, %v744_v8  ;;  %v1293_v50 = vmul.f32 %v4387_v47, %v1276_v34  ;;  %v1421_v62 = vmul.f32 %v5514_v6, %v5513_v10  ;;  %v5519_v43 = vld [vmem:[#allocation104_spill] sm:$0xff] }
 0x2c1   :  { %1118 = vperm.xlu1 %2923, %v4142_v37   ;;  %v616_v54 = vmul.f32 %v4350_v35, %v599_v15  ;;  %v1065_v9 = vadd.f32 %v1049_v39, %v920_v28  ;;  %v5523_v39 = vld [vmem:[#allocation108_spill] sm:$0xff]  ;;  %v5525_v28 = vld [vmem:[#allocation94_spill] sm:$0xff] }
 0x2c2   :  { %v4429_v0 = vpop.permute.xlu2 %1622  ;;  %v1597_v58 = vadd.f32 %v1581_v27, %v1452_v13  ;;  %v1309_v51 = vadd.f32 %v1293_v50, %v1164_v19  ;;  %v1438_v14 = vmul.f32 %v4415_v61, %v1421_v62  ;;  %v5528_v62 = vld [vmem:[#allocation24_spill] sm:$0xff] }
 0x2c3   :  { %2089 = vmatpush.bf16.msra.mxu1 %v2815_v40  ;;  %v5516_v40 = vld [vmem:[#allocation88_spill] sm:$0xff] }
 0x2c4   :  { %1673 = vperm.xlu2 %2917, %v4007_v29   ;;  %v4455_v29 = vld [vmem:[%s5290_s1 + $0x8] ss:$0 sm:$0xff]  ;;  %v1273_v20 = vmul.f32 %v5516_v40, %v5515_v25  ;;  %v1454_v10 = vadd.f32 %v1438_v14, %v1309_v51  ;;  %v1435_v25 = vmul.f32 %v4415_v61, %v1418_v33  ;;  %v5529_v40 = vld [vmem:[#allocation96_spill] sm:$0xff] }
 0x2c5   :  { %1270 = vperm.xlu0 %2962, %v5501_v38   ;;  %v4447_v59 = vpop.permute.xlu0 %1029  ;;  %v1726_v11 = vmul.f32 %v4455_v29, %v1709_v4  ;;  %v5511_v4 = vld [vmem:[#allocation52_spill] sm:$0xff] }
 0x2c6   :  { %5502 = vst [vmem:[#allocation115_spill] sm:$0xff] %v4447_v59  ;;  %v889_v8 = vmul.f32 %v5512_v45, %v5511_v4  ;;  %v5526_v4 = vld [vmem:[#allocation84_spill] sm:$0xff]  ;;  %v5527_v45 = vld [vmem:[#allocation101_spill] sm:$0xff] }
 0x2c7   :  { %v951_v2 = vpop.permute.xlu1 %950  ;;  %v1742_v13 = vadd.f32 %v1726_v11, %v1597_v58  ;;  %2090 = vmatpush.bf16.msra.mxu1 %v2814_v53  ;;  %v5520_v11 = vld [vmem:[#allocation119_spill] sm:$0xff]  ;;  %v777_v53 = vadd.f32 %v761_v22, %v616_v54  ;;  %v1290_v58 = vmul.f32 %v4387_v47, %v1273_v20  ;;  %v2812_v22 = vld [vmem:[%s5297_s8] sm:$0xff]  ;;  %v5530_v20 = vld [vmem:[#allocation98_spill] sm:$0xff] }
 0x2c8   :  { %v1039_v1 = vmul.f32 %v4322_v48, %v951_v2  ;;  %v2813_v2 = vld [vmem:[%s5297_s8 + $0x8] sm:$0xff]  ;;  %v906_v3 = vmul.f32 %v4361_v44, %v889_v8  ;;  %v1034_v8 = vmul.f32 %v5527_v45, %v5526_v4  ;;  %v5561_v59 = vld [vmem:[#allocation9_spill] sm:$0xff]  ;;  %s3220_s8 = smov 128  }
 0x2c9   :  { %1195 = vrot.lane.b32.xlu1 %v3651_v60, %s3214_s23  ;;  %v1822_v55 = vmul.f32 %v5519_v43, %v1742_v13  ;;  %v1708_v13 = vmul.f32 %v5530_v20, %v5529_v40  ;;  %v5532_v43 = vld [vmem:[#allocation129_spill] sm:$0xff]  ;;  %v5540_v20 = vld [vmem:[#allocation123_spill] sm:$0xff] }
 0x2ca   :  { %v1056_v48 = vmul.f32 %v4373_v41, %v1039_v1  ;;  %v4479_v49 = vpop.permute.xlu2 %1665  ;;  %2925 = vset.pattern.permute.xlu1 %v5412_v21  ;;  %v5521_v1 = vld [vmem:[#allocation91_spill] sm:$0xff]  ;;  %v922_v54 = vadd.f32 %v906_v3, %v777_v53  ;;  %v1051_v14 = vmul.f32 %v4373_v41, %v1034_v8  ;;  %v5535_v3 = vmov 2   ;;  %v5536_v53 = vld [vmem:[#allocation113_spill] sm:$0xff] }
 0x2cb   :  { %v1566_v26 = vmul.f32 %v5521_v1, %v5520_v11  ;;  %2091 = vmatpush.bf16.msra.mxu1 %v2813_v2  ;;  %v5533_v2 = vld [vmem:[#allocation111_spill] sm:$0xff]  ;;  %v5534_v11 = vld [vmem:[#allocation114_spill] sm:$0xff]  ;;  %v5539_v40 = vld [vmem:[#allocation89_spill] sm:$0xff] }
 0x2cc   :  { %2918 = vset.pattern.permute.xlu2 %v5399_v57  ;;  %v4490_v27 = vadd.f32 %v1056_v48, %v927_v5  ;;  %v4511_v5 = vadd.f32 %v5523_v39, %v1822_v55  ;;  %v5524_v48 = vld [vmem:[#allocation82_spill] sm:$0xff]  ;;  %v1711_v55 = vmul.f32 %v5532_v43, %v5531_v36  ;;  %v1275_v1 = vmul.f32 %v5534_v11, %v5533_v2  ;;  %v5538_v8 = vld [vmem:[#allocation11_spill] sm:$0xff] }
 0x2cd   :  { %2965 = vset.pattern.permute.xlu0 %v5420_v52  ;;  %1001 = vperm.xlu2 %2918, %v4260_v31   ;;  %v1563_v50 = vmul.f32 %v5525_v28, %v5524_v48  ;;  %v1583_v12 = vmul.f32 %v4420_v18, %v1566_v26  ;;  %v3155_v28 = vld [vmem:[%s5292_s3 + $0x38] sm:$0xff]  ;;  %v1067_v45 = vadd.f32 %v1051_v14, %v922_v54  ;;  %v5543_v11 = vld [vmem:[#allocation102_spill] sm:$0xff] }
 0x2ce   :  { %1544 = vperm.xlu0 %2965, %v4160_v17   ;;  %v1083_v34 = vpop.permute.xlu0 %1082 }
 0x2cf   :  { %v1145_v15 = vmul.f32 %v1083_v34, %v5522_v42  ;;  %v4507_v19 = vpop.permute.xlu1 %1774  ;;  %v1918_v34 = vsub.f32 0.0, %v4511_v5  ;;  %2092 = vmatpush.bf16.msra.mxu1 %v2812_v22  ;;  %v1580_v33 = vmul.f32 %v4420_v18, %v1563_v50  ;;  %v1599_v26 = vadd.f32 %v1583_v12, %v1454_v10 }
 0x2d0   :  { %v1728_v50 = vmul.f32 %v4455_v29, %v1711_v55  ;;  %v1292_v22 = vmul.f32 %v4387_v47, %v1275_v1  ;;  %v5541_v55 = vld [vmem:[#allocation122_spill] sm:$0xff] }
 0x2d1   :  { %v1161_v6 = vadd.f32 %v1145_v15, %v1065_v9  ;;  %1338 = vrot.lane.b32.xlu1 %v5528_v62, %s3216_s24  ;;  %v1725_v15 = vmul.f32 %v4455_v29, %v1708_v13  ;;  %v1935_v10 = vmul.f32 1.442695, %v1918_v34 }
 0x2d2   :  { %v1744_v36 = vadd.f32 %v1728_v50, %v1599_v26  ;;  %v5546_v26 = vld [vmem:[#allocation36_spill] sm:$0xff] }
 0x2d3   :  { %v1306_v51 = vadd.f32 %v1290_v58, %v1161_v6  ;;  %v4528_v9 = vpop.permute.xlu2 %993  ;;  %v5537_v58 = vld [vmem:[#allocation117_spill] sm:$0xff]  ;;  %3053 = vpow2.f32 %v1935_v10  ;;  %v5547_v10 = vld [vmem:[#allocation138_spill] sm:$0xff] }
 0x2d4   :  { %v1420_v39 = vmul.f32 %v5537_v58, %v5536_v53  ;;  %v5545_v58 = vld [vmem:[#allocation135_spill] sm:$0xff] }
 0x2d5   :  { %v1451_v42 = vadd.f32 %v1435_v25, %v1306_v51  ;;  %2920 = vset.pattern.permute.xlu2 %v5535_v3  ;;  %v5542_v51 = vld [vmem:[#allocation125_spill] sm:$0xff] }
 0x2d6   :  { %1552 = vperm.xlu0 %2965, %v4175_v56   ;;  %v1091_v48 = vpop.permute.xlu0 %1090  ;;  %1786 = vperm.xlu2 %2920, %v3155_v28   ;;  %v1565_v56 = vmul.f32 %v5540_v20, %v5539_v40  ;;  %v1437_v43 = vmul.f32 %v4415_v61, %v1420_v39  ;;  %v1710_v54 = vmul.f32 %v5542_v51, %v5541_v55  ;;  %v5548_v20 = vld [vmem:[#allocation131_spill] sm:$0xff] }
 0x2d7   :  { %v1596_v4 = vadd.f32 %v1580_v33, %v1451_v42  ;;  %v1147_v6 = vmul.f32 %v1091_v48, %v5538_v8  ;;  %v5544_v42 = vld [vmem:[#allocation105_spill] sm:$0xff]  ;;  %v1824_v48 = vmul.f32 %v5545_v58, %v1744_v36 }
 0x2d8   :  { %v4546_v25 = vpop.permute.xlu1 %1854  ;;  %v1582_v33 = vmul.f32 %v4420_v18, %v1565_v56  ;;  %v1727_v39 = vmul.f32 %v4455_v29, %v1710_v54  ;;  %v5550_v54 = vmov 5  }
 0x2d9   :  { %v1163_v13 = vadd.f32 %v1147_v6, %v1067_v45  ;;  %1387 = vperm.xlu1 %2925, %v4260_v31   ;;  %v1741_v12 = vadd.f32 %v1725_v15, %v1596_v4  ;;  %v3054_v40 = vpop.eup %3053 }
 0x2db   :  { %v1308_v2 = vadd.f32 %v1292_v22, %v1163_v13  ;;  %v1821_v34 = vmul.f32 %v5543_v11, %v1741_v12  ;;  %v4569_v22 = vadd.f32 %v5547_v10, %v1824_v48 }
 0x2dc   :  { %v4555_v1 = vpop.permute.xlu2 %1778 }
 0x2dd   :  { %v1453_v14 = vadd.f32 %v1437_v43, %v1308_v2  ;;  %v1901_v53 = vadd.f32 %v5544_v42, %v1821_v34  ;;  %v1920_v36 = vsub.f32 0.0, %v4569_v22  ;;  %v1966_v43 = vadd.f32 1.0, %v3054_v40  ;;  %v5551_v42 = vld [vmem:[#allocation38_spill] sm:$0xff] }
 0x2de   :  { %1495 = vrot.lane.b32.xlu0 %v5546_v26, %s3210_s22  ;;  %v1099_v15 = vpop.permute.xlu0 %1098  ;;  %2922 = vset.pattern.permute.xlu2 %v5399_v57 }
 0x2df   :  { %v1598_v50 = vadd.f32 %v1582_v33, %v1453_v14  ;;  %1866 = vperm.xlu2 %2922, %v3155_v28   ;;  %v1917_v4 = vsub.f32 0.0, %v1901_v53  ;;  %v5549_v28 = vld [vmem:[#allocation134_spill] sm:$0xff]  ;;  %v1939_v33 = vmul.f32 1.442695, %v1920_v36  ;;  %v5557_v36 = vld [vmem:[#allocation93_spill] sm:$0xff] }
 0x2e1   :  { %1485 = vrot.lane.b32.xlu1 %v3651_v60, %s3210_s22  ;;  %v4566_v45 = vpop.permute.xlu1 %1110  ;;  %v1933_v8 = vmul.f32 1.442695, %v1917_v4  ;;  %v1743_v6 = vadd.f32 %v1727_v39, %v1598_v50  ;;  %v5553_v39 = vld [vmem:[#allocation37_spill] sm:$0xff] }
 0x2e2   :  { %2929 = vset.pattern.permute.xlu1 %v5424_v46  ;;  %v5554_v50 = vld [vmem:[#allocation13_spill] sm:$0xff] }
 0x2e3   :  { %3055 = vpow2.f32 %v1933_v8  ;;  %v1823_v56 = vmul.f32 %v5548_v20, %v1743_v6  ;;  %v601_v4 = vmul.f32 %v5554_v50, %v5553_v39  ;;  %v5555_v8 = vld [vmem:[#allocation62_spill] sm:$0xff]  ;;  %v5556_v6 = vld [vmem:[#allocation77_spill] sm:$0xff]  ;;  %v3156_v20 = vld [vmem:[%s5292_s3 + $0x70] sm:$0xff] }
 0x2e4   :  { %3057 = vrcp.f32 %v1966_v43  ;;  %v891_v10 = vmul.f32 %v5556_v6, %v5555_v8  ;;  %v5558_v43 = vld [vmem:[#allocation132_spill] sm:$0xff] }
 0x2e5   :  { %v4573_v13 = vpop.permute.xlu2 %1858  ;;  %v4576_v12 = vadd.f32 %v5549_v28, %v1823_v56 }
 0x2e6   :  { %v4579_v55 = vpop.permute.xlu0 %1106  ;;  %1560 = vperm.xlu0 %2965, %v5501_v38   ;;  %v5552_v38 = vld [vmem:[#allocation28_spill] sm:$0xff] }
 0x2e7   :  { %1193 = vrot.lane.b32.xlu2 %v5528_v62, %s3214_s23  ;;  %v1919_v51 = vsub.f32 0.0, %v4576_v12  ;;  %v746_v58 = vmul.f32 %v5552_v38, %v5551_v42  ;;  %v908_v42 = vmul.f32 %v4361_v44, %v891_v10 }
 0x2e8   :  { %2924 = vset.pattern.permute.xlu2 %v5550_v54 }
 0x2e9   :  { %v3056_v2 = vpop.eup %3055  ;;  %1628 = vrot.lane.b32.xlu1 %v5528_v62, %s3218_s25  ;;  %v4588_v11 = vpop.permute.xlu1 %1191  ;;  %v1937_v34 = vmul.f32 1.442695, %v1919_v51  ;;  %v763_v28 = vmul.f32 %v4345_v7, %v746_v58  ;;  %v1036_v51 = vmul.f32 %v5558_v43, %v5557_v36 }
 0x2ea   :  { %v1965_v14 = vadd.f32 1.0, %v3056_v2  ;;  %v3058_v56 = vpop.eup %3057 }
 0x2eb   :  { %3059 = vpow2.f32 %v1937_v34  ;;  %v4616_v50 = vmul.f32 %v3058_v56, %v4511_v5  ;;  %v1053_v8 = vmul.f32 %v4373_v41, %v1036_v51  ;;  %v5563_v5 = vld [vmem:[#allocation140_spill] sm:$0xff]  ;;  %v5565_v51 = vmov 0  }
 0x2ec   :  { %3061 = vrcp.f32 %v1965_v14  ;;  %v618_v14 = vmul.f32 %v4350_v35, %v601_v4  ;;  %v1149_v4 = vmul.f32 %v1099_v15, %v5561_v59 }
 0x2ed   :  { %v4592_v48 = vpop.permute.xlu2 %1189  ;;  %3063 = vpow2.f32 %v1939_v33  ;;  %5560 = vst [vmem:[#allocation85_spill] sm:$0xff] %v4616_v50 }
 0x2ee   :  { %v4598_v40 = vpop.permute.xlu0 %1114  ;;  %2971 = vset.pattern.permute.xlu0 %v5535_v3  ;;  %v779_v58 = vadd.f32 %v763_v28, %v618_v14  ;;  %v5567_v14 = vld [vmem:[#allocation142_spill] sm:$0xff] }
 0x2ef   :  { %1242 = vperm.xlu2 %2924, %v4260_v31   ;;  %1814 = vperm.xlu0 %2971, %v3156_v20  }
 0x2f0   :  { %v924_v43 = vadd.f32 %v908_v42, %v779_v58  ;;  %v5568_v42 = vld [vmem:[#allocation144_spill] sm:$0xff] }
 0x2f1   :  { %v3060_v2 = vpop.eup %3059  ;;  %1677 = vperm.xlu1 %2929, %v4260_v31   ;;  %v4609_v34 = vpop.permute.xlu1 %1334 }
 0x2f2   :  { %v3062_v33 = vpop.eup %3061  ;;  %v1967_v6 = vadd.f32 1.0, %v3060_v2  ;;  %v1069_v28 = vadd.f32 %v1053_v8, %v924_v43  ;;  %v5566_v2 = vld [vmem:[#allocation29_spill] sm:$0xff] }
 0x2f3   :  { %v3064_v38 = vpop.eup %3063  ;;  %v4613_v39 = vmul.f32 %v3062_v33, %v1901_v53  ;;  %v5564_v53 = vld [vmem:[#allocation143_spill] sm:$0xff] }
 0x2f4   :  { %v1968_v10 = vadd.f32 1.0, %v3064_v38  ;;  %v1277_v56 = vmul.f32 %v5564_v53, %v5563_v5  ;;  %3065 = vrcp.f32 %v1967_v6  ;;  %v1165_v15 = vadd.f32 %v1149_v4, %v1069_v28  ;;  %v5570_v4 = vld [vmem:[#allocation95_spill] sm:$0xff] }
 0x2f5   :  { %5559 = vst [vmem:[#allocation83_spill] sm:$0xff] %v4613_v39  ;;  %v4619_v20 = vpop.permute.xlu2 %1234  ;;  %v2013_v36 = vpack.c.bf16 %v4616_v50, %v4613_v39  ;;  %v1422_v38 = vmul.f32 %v5568_v42, %v5567_v14  ;;  %v1567_v53 = vmul.f32 %v4378_v16, %v5570_v4  ;;  %v5576_v39 = vld [vmem:[#allocation12_spill] sm:$0xff]  ;;  %v5577_v4 = vld [vmem:[#allocation59_spill] sm:$0xff] }
 0x2f6   :  { %v4624_v26 = vpop.permute.xlu0 %1122  ;;  %3067 = vrcp.f32 %v1968_v10  ;;  %v1294_v33 = vmul.f32 %v4387_v47, %v1277_v56  ;;  %v3157_v10 = vld [vmem:[%s5292_s3 + $0x40] sm:$0xff] }
 0x2f7   :  { %5562 = vst [vmem:[#allocation10_spill] sm:$0xff] %v4624_v26  ;;  %2093 = vmatmul.bf16.vlgmr.msra.gmra.mxu1 %v2013_v36  ;;  %1340 = vrot.lane.b32.xlu2 %v3651_v60, %s3216_s24  ;;  %v1439_v5 = vmul.f32 %v4415_v61, %v1422_v38  ;;  %v5575_v38 = vld [vmem:[#allocation41_spill] sm:$0xff]  ;;  %v1584_v23 = vmul.f32 %v4420_v18, %v1567_v53 }
 0x2f8   :  { %2926 = vset.pattern.permute.xlu2 %v5412_v21  ;;  %2976 = vset.pattern.permute.xlu0 %v5565_v51  ;;  %v1310_v6 = vadd.f32 %v1294_v33, %v1165_v15  ;;  %v5572_v15 = vld [vmem:[#allocation43_spill] sm:$0xff]  ;;  %v5573_v33 = vld [vmem:[#allocation26_spill] sm:$0xff]  ;;  %v602_v16 = vmul.f32 %v5576_v39, %v5575_v38  ;;  %v5578_v51 = vld [vmem:[#allocation76_spill] sm:$0xff]  ;;  %v1712_v26 = vmul.f32 %v4408_v32, %v4369_v63 }
 0x2f9   :  { %958 = vrot.lane.b32.xlu1 %v5566_v2, %s3209_s21  ;;  %v4634_v59 = vpop.permute.xlu1 %1379  ;;  %v747_v14 = vmul.f32 %v5573_v33, %v5572_v15 }
 0x2fa   :  { %2932 = vset.pattern.permute.xlu1 %v5535_v3  ;;  %v3066_v8 = vpop.eup %3065  ;;  %v1455_v42 = vadd.f32 %v1439_v5, %v1310_v6  ;;  %v1729_v32 = vmul.f32 %v4455_v29, %v1712_v26 }
 0x2fb   :  { %v4654_v28 = vmul.f32 %v3066_v8, %v4576_v12  ;;  %v764_v6 = vmul.f32 %v4345_v7, %v747_v14 }
 0x2fc   :  { %v3068_v43 = vpop.eup %3067  ;;  %v1600_v15 = vadd.f32 %v1584_v23, %v1455_v42 }
 0x2fd   :  { %v4640_v58 = vpop.permute.xlu2 %1336  ;;  %5571 = vst [vmem:[#allocation110_spill] sm:$0xff] %v4654_v28  ;;  %v4659_v50 = vmul.f32 %v3068_v43, %v4569_v22  ;;  %v5579_v22 = vld [vmem:[#allocation128_spill] sm:$0xff]  ;;  %v5580_v43 = vld [vmem:[#allocation141_spill] sm:$0xff] }
 0x2fe   :  { %v4642_v36 = vpop.permute.xlu0 %1130  ;;  %v1037_v5 = vmul.f32 %v5580_v43, %v5579_v22  ;;  %v1745_v14 = vadd.f32 %v1729_v32, %v1600_v15  ;;  %v5583_v22 = vld [vmem:[#allocation137_spill] sm:$0xff] }
 0x2ff   :  { %5569 = vst [vmem:[#allocation107_spill] sm:$0xff] %v4642_v36  ;;  %1391 = vperm.xlu2 %2926, %v4142_v37   ;;  %v892_v36 = vmul.f32 %v5578_v51, %v5577_v4  ;;  %v2014_v8 = vpack.c.bf16 %v4659_v50, %v4654_v28  ;;  %v619_v51 = vmul.f32 %v4350_v35, %v602_v16  ;;  %v5584_v43 = vld [vmem:[#allocation145_spill] sm:$0xff]  ;;  %v5586_v28 = vld [vmem:[#allocation139_spill] sm:$0xff] }
 0x300   :  { %5574 = vst [vmem:[#allocation86_spill] sm:$0xff] %v4659_v50  ;;  %v1054_v23 = vmul.f32 %v4373_v41, %v1037_v5  ;;  %v1825_v16 = vmul.f32 %v4507_v19, %v1745_v14  ;;  %v5590_v19 = vld [vmem:[#allocation97_spill] sm:$0xff]  ;;  %v5592_v14 = vld [vmem:[#allocation16_spill] sm:$0xff] }
 0x301   :  { %1790 = vperm.xlu1 %2932, %v3157_v10   ;;  %v4651_v56 = vpop.permute.xlu1 %1481  ;;  %v909_v63 = vmul.f32 %v4361_v44, %v892_v36  ;;  %v780_v33 = vadd.f32 %v764_v6, %v619_v51  ;;  %v5582_v36 = vld [vmem:[#allocation18_spill] sm:$0xff]  ;;  %v5589_v51 = vld [vmem:[#allocation147_spill] sm:$0xff] }
 0x302   :  { %v1150_v26 = vmul.f32 %v5583_v22, %v5582_v36  ;;  %v5587_v6 = vld [vmem:[#allocation46_spill] sm:$0xff]  ;;  %v5594_v36 = vld [vmem:[#allocation79_spill] sm:$0xff] }
 0x303   :  { %v925_v42 = vadd.f32 %v909_v63, %v780_v33  ;;  %v1568_v63 = vmul.f32 %v5590_v19, %v5589_v51 }
 0x305   :  { %v4668_v12 = vpop.permute.xlu2 %1383  ;;  %v1070_v38 = vadd.f32 %v1054_v23, %v925_v42  ;;  %v4702_v23 = vadd.f32 %v4546_v25, %v1825_v16  ;;  %v1585_v16 = vmul.f32 %v4420_v18, %v1568_v63  ;;  %v1279_v63 = vmul.f32 %v4619_v20, %v4592_v48  ;;  %v5597_v48 = vld [vmem:[#allocation100_spill] sm:$0xff] }
 0x306   :  { %v4675_v39 = vpop.permute.xlu0 %1138 }
 0x307   :  { %5581 = vst [vmem:[#allocation34_spill] sm:$0xff] %v4675_v39  ;;  %2098 = vmatmul.bf16.gmra.mxu1 %v2014_v8  ;;  %2927 = vset.pattern.permute.xlu2 %v5420_v52  ;;  %v1166_v32 = vadd.f32 %v1150_v26, %v1070_v38  ;;  %v1713_v38 = vmul.f32 %v4479_v49, %v4429_v0  ;;  %v1921_v51 = vsub.f32 0.0, %v4702_v23 }
 0x308   :  { %1532 = vperm.xlu2 %2927, %v4260_v31   ;;  %v5585_v31 = vld [vmem:[#allocation148_spill] sm:$0xff] }
 0x309   :  { %2934 = vset.pattern.permute.xlu1 %v5399_v57  ;;  %v4683_v53 = vpop.permute.xlu1 %1624  ;;  %v1423_v50 = vmul.f32 %v5585_v31, %v5584_v43  ;;  %v5595_v31 = vld [vmem:[#allocation99_spill] sm:$0xff]  ;;  %v1730_v19 = vmul.f32 %v4455_v29, %v1713_v38 }
 0x30a   :  { %1870 = vperm.xlu1 %2934, %v3157_v10   ;;  %v5588_v10 = vld [vmem:[#allocation30_spill] sm:$0xff]  ;;  %v1038_v25 = vmul.f32 %v4528_v9, %v5595_v31 }
 0x30b   :  { %v748_v5 = vmul.f32 %v5588_v10, %v5587_v6  ;;  %v1440_v43 = vmul.f32 %v4415_v61, %v1423_v50 }
 0x30e   :  { %v1525_v4 = vpop.permute.xlu2 %1524 }
 0x30f   :  { %v1231_v8 = vpop.permute.xlu0 %1230  ;;  %v1569_v20 = vmul.f32 %v1525_v4, %v5597_v48 }
 0x310   :  { %v1278_v39 = vmul.f32 %v1231_v8, %v5586_v28  ;;  %1630 = vrot.lane.b32.xlu2 %v3651_v60, %s3218_s25  ;;  %v5591_v28 = vld [vmem:[#allocation44_spill] sm:$0xff] }
 0x311   :  { %v1670_v15 = vpop.permute.xlu1 %1669  ;;  %2930 = vset.pattern.permute.xlu2 %v5424_v46  ;;  %v603_v42 = vmul.f32 %v5592_v14, %v5591_v28  ;;  %v5593_v8 = vld [vmem:[#allocation64_spill] sm:$0xff]  ;;  %v5596_v14 = vld [vmem:[#allocation14_spill] sm:$0xff]  ;;  %v1586_v31 = vmul.f32 %v4420_v18, %v1569_v20 }
 0x312   :  { %v1295_v33 = vmul.f32 %v4387_v47, %v1278_v39  ;;  %2936 = vset.pattern.permute.xlu1 %v5427_v30  ;;  %v893_v22 = vmul.f32 %v5594_v36, %v5593_v8  ;;  %v765_v39 = vmul.f32 %v4345_v7, %v748_v5  ;;  %v1055_v5 = vmul.f32 %v4373_v41, %v1038_v25 }
 0x313   :  { %1126 = vperm.xlu1 %2936, %v4160_v17   ;;  %v620_v17 = vmul.f32 %v4350_v35, %v603_v42  ;;  %v1151_v42 = vmul.f32 %v4579_v55, %v5596_v14 }
 0x314   :  { %v1311_v26 = vadd.f32 %v1295_v33, %v1166_v32  ;;  %v910_v50 = vmul.f32 %v4361_v44, %v893_v22  ;;  %v1941_v33 = vmul.f32 1.442695, %v1921_v51  ;;  %v1296_v22 = vmul.f32 %v4387_v47, %v1279_v63 }
 0x315   :  { %v781_v49 = vadd.f32 %v765_v39, %v620_v17 }
 0x316   :  { %v1456_v6 = vadd.f32 %v1440_v43, %v1311_v26  ;;  %v4716_v10 = vpop.permute.xlu2 %1626  ;;  %3069 = vpow2.f32 %v1941_v33 }
 0x317   :  { %v926_v28 = vadd.f32 %v910_v50, %v781_v49  ;;  %v1152_v50 = vmul.f32 %v4566_v45, %v3605_v24  ;;  %v3159_v24 = vld [vmem:[%s5292_s3 + $0x48] sm:$0xff] }
 0x318   :  { %v1601_v0 = vadd.f32 %v1585_v16, %v1456_v6  ;;  %1681 = vperm.xlu2 %2930, %v4142_v37   ;;  %v1424_v37 = vmul.f32 %v4634_v59, %v4609_v34  ;;  %v1239_v34 = vpop.permute.xlu0 %1238  ;;  %v5598_v16 = vld [vmem:[#allocation21_spill] sm:$0xff] }
 0x319   :  { %v4724_v9 = vpop.permute.xlu1 %954  ;;  %v1071_v36 = vadd.f32 %v1055_v5, %v926_v28  ;;  %v1280_v17 = vmul.f32 %v1239_v34, %v4588_v11  ;;  %v1168_v63 = vadd.f32 %v1152_v50, %v4490_v27  ;;  %v1425_v11 = vmul.f32 %v4668_v12, %v4640_v58 }
 0x31a   :  { %v1746_v32 = vadd.f32 %v1730_v19, %v1601_v0  ;;  %v1441_v39 = vmul.f32 %v4415_v61, %v1424_v37 }
 0x31b   :  { %1199 = vrot.lane.b32.xlu1 %v5566_v2, %s3214_s23  ;;  %v1167_v26 = vadd.f32 %v1151_v42, %v1071_v36  ;;  %v5599_v42 = vld [vmem:[#allocation103_spill] sm:$0xff]  ;;  %v1442_v37 = vmul.f32 %v4415_v61, %v1425_v11 }
 0x31c   :  { %2938 = vset.pattern.permute.xlu1 %v5412_v21  ;;  %v1826_v8 = vmul.f32 %v4555_v1, %v1746_v32  ;;  %v4744_v1 = vld [vmem:[%s5293_s4 + $0x50] sm:$0xff]  ;;  %v3070_v6 = vpop.eup %3069  ;;  %v1570_v27 = vmul.f32 %v5599_v42, %v4651_v56  ;;  %v3161_v42 = vld [vmem:[%s5293_s4 + $0x58] sm:$0xff] }
 0x31d   :  { %v1312_v4 = vadd.f32 %v1296_v22, %v1167_v26  ;;  %v1969_v5 = vadd.f32 1.0, %v3070_v6 }
 0x31e   :  { %v1674_v43 = vpop.permute.xlu2 %1673  ;;  %v1906_v38 = vadd.f32 %v4573_v13, %v1826_v8  ;;  %v1714_v13 = vmul.f32 %v1670_v15, %v4683_v53  ;;  %v1297_v53 = vmul.f32 %v4387_v47, %v1280_v17  ;;  %v1587_v48 = vmul.f32 %v4420_v18, %v1570_v27  ;;  %v5600_v27 = vld [vmem:[#allocation25_spill] sm:$0xff] }
 0x31f   :  { %v1457_v51 = vadd.f32 %v1441_v39, %v1312_v4  ;;  %v1715_v58 = vmul.f32 %v1674_v43, %v4716_v10 }
 0x320   :  { %2931 = vset.pattern.permute.xlu2 %v5399_v57  ;;  %v1922_v55 = vsub.f32 0.0, %v1906_v38  ;;  %v1731_v19 = vmul.f32 %v4455_v29, %v1714_v13  ;;  %v1313_v28 = vadd.f32 %v1297_v53, %v1168_v63  ;;  %v4800_v63 = vld [vmem:[%s5293_s4 + $0x68] sm:$0xff] }
 0x321   :  { %v1783_v59 = vpop.permute.xlu1 %1782  ;;  %1009 = vperm.xlu2 %2931, %v4744_v1   ;;  %v1602_v0 = vadd.f32 %v1586_v31, %v1457_v51  ;;  %v1732_v20 = vmul.f32 %v4455_v29, %v1715_v58 }
 0x322   :  { %v1943_v25 = vmul.f32 1.442695, %v1922_v55  ;;  %v1458_v36 = vadd.f32 %v1442_v37, %v1313_v28 }
 0x323   :  { %1342 = vrot.lane.b32.xlu1 %v5598_v16, %s3216_s24  ;;  %v1747_v32 = vadd.f32 %v1731_v19, %v1602_v0 }
 0x324   :  { %3071 = vpow2.f32 %v1943_v25  ;;  %v1603_v55 = vadd.f32 %v1587_v48, %v1458_v36  ;;  %v5602_v36 = vld [vmem:[#allocation33_spill] sm:$0xff] }
 0x325   :  { %3073 = vrcp.f32 %v1969_v5  ;;  %v1827_v14 = vmul.f32 %v1783_v59, %v1747_v32 }
 0x326   :  { %v1748_v59 = vadd.f32 %v1732_v20, %v1603_v55 }
 0x327   :  { %v4755_v49 = vpop.permute.xlu2 %1001 }
 0x329   :  { %2933 = vset.pattern.permute.xlu2 %v5535_v3 }
 0x32a   :  { %v3072_v15 = vpop.eup %3071  ;;  %v1863_v33 = vpop.permute.xlu1 %1862  ;;  %1794 = vperm.xlu2 %2933, %v3159_v24  }
 0x32b   :  { %1395 = vperm.xlu1 %2938, %v4744_v1   ;;  %v1970_v45 = vadd.f32 1.0, %v3072_v15  ;;  %v1907_v12 = vadd.f32 %v1863_v33, %v1827_v14  ;;  %v3074_v22 = vpop.eup %3073 }
 0x32c   :  { %v4778_v10 = vmul.f32 %v3074_v22, %v4702_v23 }
 0x32d   :  { %3075 = vrcp.f32 %v1970_v45  ;;  %v1923_v26 = vsub.f32 0.0, %v1907_v12 }
 0x32f   :  { %v1945_v34 = vmul.f32 1.442695, %v1923_v26  ;;  %v5603_v26 = vld [vmem:[#allocation48_spill] sm:$0xff] }
 0x330   :  { %v1787_v8 = vpop.permute.xlu2 %1786 }
 0x331   :  { %v1828_v31 = vmul.f32 %v1787_v8, %v1748_v59  ;;  %3077 = vpow2.f32 %v1945_v34  ;;  %v5601_v8 = vld [vmem:[#allocation49_spill] sm:$0xff]  ;;  %v5605_v34 = vld [vmem:[#allocation68_spill] sm:$0xff]  ;;  %v5606_v59 = vld [vmem:[#allocation78_spill] sm:$0xff] }
 0x332   :  { %2935 = vset.pattern.permute.xlu2 %v5399_v57  ;;  %v750_v22 = vmul.f32 %v5602_v36, %v5601_v8  ;;  %v5608_v8 = vld [vmem:[#allocation54_spill] sm:$0xff]  ;;  %v5609_v36 = vld [vmem:[#allocation32_spill] sm:$0xff] }
 0x333   :  { %v3076_v39 = vpop.eup %3075  ;;  %1489 = vrot.lane.b32.xlu1 %v5566_v2, %s3210_s22  ;;  %v4775_v56 = vpop.permute.xlu1 %1118  ;;  %1874 = vperm.xlu2 %2935, %v3159_v24  }
 0x334   :  { %v4780_v43 = vmul.f32 %v3076_v39, %v1906_v38  ;;  %2941 = vset.pattern.permute.xlu1 %v5424_v46  ;;  %v5604_v39 = vld [vmem:[#allocation15_spill] sm:$0xff] }
 0x335   :  { %v605_v55 = vmul.f32 %v5604_v39, %v5603_v26  ;;  %v5610_v39 = vld [vmem:[#allocation109_spill] sm:$0xff] }
 0x336   :  { %v2015_v4 = vpack.c.bf16 %v4780_v43, %v4778_v10 }
 0x337   :  { %v3078_v51 = vpop.eup %3077 }
 0x338   :  { %2103 = vmatmul.bf16.gmra.mxu1 %v2015_v4  ;;  %v1971_v50 = vadd.f32 1.0, %v3078_v51  ;;  %v895_v4 = vmul.f32 %v5606_v59, %v5605_v34  ;;  %v5613_v59 = vld [vmem:[#allocation72_spill] sm:$0xff] }
 0x339   :  { %v1867_v13 = vpop.permute.xlu2 %1866 }
 0x33a   :  { %v1908_v25 = vadd.f32 %v1867_v13, %v1828_v31  ;;  %v5607_v31 = vld [vmem:[#allocation106_spill] sm:$0xff] }
 0x33b   :  { %1632 = vrot.lane.b32.xlu1 %v5598_v16, %s3218_s25  ;;  %v4787_v6 = vpop.permute.xlu1 %1195  ;;  %1197 = vrot.lane.b32.xlu2 %v5598_v16, %s3214_s23  ;;  %v1040_v13 = vmul.f32 %v4755_v49, %v5607_v31  ;;  %v1153_v49 = vmul.f32 %v4598_v40, %v5528_v62  ;;  %v5616_v62 = vld [vmem:[#allocation35_spill] sm:$0xff] }
 0x33c   :  { %v1924_v23 = vsub.f32 0.0, %v1908_v25  ;;  %2937 = vset.pattern.permute.xlu2 %v5550_v54 }
 0x33d   :  { %v1057_v51 = vmul.f32 %v4373_v41, %v1040_v13  ;;  %v5615_v13 = vld [vmem:[#allocation53_spill] sm:$0xff] }
 0x33e   :  { %v1947_v38 = vmul.f32 1.442695, %v1924_v23  ;;  %v912_v23 = vmul.f32 %v4361_v44, %v895_v4  ;;  %v5614_v4 = vld [vmem:[#allocation81_spill] sm:$0xff]  ;;  %v752_v40 = vmul.f32 %v5616_v62, %v5615_v13 }
 0x340   :  { %3079 = vpow2.f32 %v1947_v38 }
 0x341   :  { %v1194_v17 = vpop.permute.xlu2 %1193  ;;  %3081 = vrcp.f32 %v1971_v50 }
 0x343   :  { %1685 = vperm.xlu1 %2941, %v4744_v1   ;;  %v1339_v19 = vpop.permute.xlu1 %1338  ;;  %1250 = vperm.xlu2 %2937, %v4744_v1  }
 0x346   :  { %v3080_v0 = vpop.eup %3079 }
 0x347   :  { %v1972_v5 = vadd.f32 1.0, %v3080_v0  ;;  %v3082_v11 = vpop.eup %3081 }
 0x348   :  { %v4804_v33 = vmul.f32 %v3082_v11, %v1907_v12  ;;  %v3162_v12 = vld [vmem:[%s5292_s3 + $0x50] sm:$0xff] }
 0x349   :  { %3083 = vrcp.f32 %v1972_v5  ;;  %v1243_v53 = vpop.permute.xlu2 %1242 }
 0x34a   :  { %v1281_v11 = vmul.f32 %v1243_v53, %v1194_v17  ;;  %v5611_v17 = vld [vmem:[#allocation51_spill] sm:$0xff] }
 0x34b   :  { %2943 = vset.pattern.permute.xlu1 %v5535_v3  ;;  %v1388_v15 = vpop.permute.xlu1 %1387  ;;  %1344 = vrot.lane.b32.xlu2 %v5566_v2, %s3216_s24  ;;  %v5612_v53 = vld [vmem:[#allocation19_spill] sm:$0xff] }
 0x34c   :  { %876 = vperm.xlu1 %2943, %v4800_v63   ;;  %2939 = vset.pattern.permute.xlu2 %v5412_v21 }
 0x34f   :  { %v3084_v32 = vpop.eup %3083 }
 0x350   :  { %v4806_v24 = vmul.f32 %v3084_v32, %v1908_v25  ;;  %v622_v25 = vmul.f32 %v4350_v35, %v605_v55 }
 0x351   :  { %v4808_v45 = vpop.permute.xlu2 %1340 }
 0x352   :  { %v2016_v28 = vpack.c.bf16 %v4806_v24, %v4804_v33 }
 0x353   :  { %v4812_v14 = vpop.permute.xlu1 %1485  ;;  %1399 = vperm.xlu2 %2939, %v3161_v42  }
 0x354   :  { %962 = vrot.lane.b32.xlu1 %v5600_v27, %s3209_s21  ;;  %2108 = vmatmul.bf16.gmra.mxu1 %v2016_v28  ;;  %v1298_v28 = vmul.f32 %v4387_v47, %v1281_v11  ;;  %v5620_v11 = vld [vmem:[#allocation6_spill] sm:$0xff] }
 0x359   :  { %v4819_v37 = vpop.permute.xlu2 %1391 }
 0x35b   :  { %v1629_v58 = vpop.permute.xlu1 %1628  ;;  %2940 = vset.pattern.permute.xlu2 %v5420_v52 }
 0x35c   :  { %1798 = vperm.xlu1 %2943, %v3162_v12   ;;  %1540 = vperm.xlu2 %2940, %v4744_v1   ;;  %v767_v1 = vmul.f32 %v4345_v7, %v750_v22  ;;  %v751_v22 = vmul.f32 %v5609_v36, %v5608_v8  ;;  %v5622_v8 = vld [vmem:[#allocation121_spill] sm:$0xff] }
 0x35e   :  { %v783_v38 = vadd.f32 %v767_v1, %v622_v25  ;;  %v896_v1 = vmul.f32 %v5614_v4, %v5613_v59  ;;  %v5623_v59 = vld [vmem:[#allocation56_spill] sm:$0xff] }
 0x35f   :  { %v5624_v4 = vld [vmem:[#allocation40_spill] sm:$0xff] }
 0x360   :  { %v928_v5 = vadd.f32 %v912_v23, %v783_v38  ;;  %v5617_v23 = vld [vmem:[#allocation27_spill] sm:$0xff]  ;;  %v5618_v38 = vld [vmem:[#allocation146_spill] sm:$0xff]  ;;  %v753_v13 = vmul.f32 %v5624_v4, %v5623_v59 }
 0x362   :  { %v1533_v48 = vpop.permute.xlu2 %1532  ;;  %v1073_v32 = vadd.f32 %v1057_v51, %v928_v5  ;;  %v1041_v51 = vmul.f32 %v5618_v38, %v4724_v9  ;;  %v5619_v5 = vld [vmem:[#allocation50_spill] sm:$0xff]  ;;  %v769_v9 = vmul.f32 %v4345_v7, %v752_v40  ;;  %v5625_v38 = vld [vmem:[#allocation55_spill] sm:$0xff] }
 0x363   :  { %v1678_v20 = vpop.permute.xlu1 %1677  ;;  %v1571_v55 = vmul.f32 %v1533_v48, %v5610_v39  ;;  %v768_v48 = vmul.f32 %v4345_v7, %v751_v22  ;;  %v913_v22 = vmul.f32 %v4361_v44, %v896_v1  ;;  %v1247_v39 = vpop.permute.xlu0 %1246 }
 0x364   :  { %2946 = vset.pattern.permute.xlu1 %v5399_v57  ;;  %1634 = vrot.lane.b32.xlu2 %v5566_v2, %s3218_s25  ;;  %v1169_v26 = vadd.f32 %v1153_v49, %v1073_v32  ;;  %v607_v32 = vmul.f32 %v5620_v11, %v5619_v5  ;;  %v5621_v49 = vld [vmem:[#allocation67_spill] sm:$0xff]  ;;  %v5626_v5 = vld [vmem:[#allocation17_spill] sm:$0xff] }
 0x365   :  { %1878 = vperm.xlu1 %2946, %v3162_v12   ;;  %2942 = vset.pattern.permute.xlu2 %v5424_v46  ;;  %v1426_v12 = vmul.f32 %v1388_v15, %v1339_v19  ;;  %v897_v36 = vmul.f32 %v5622_v8, %v5621_v49  ;;  %v608_v40 = vmul.f32 %v5626_v5, %v5625_v38  ;;  %v5627_v11 = vld [vmem:[#allocation71_spill] sm:$0xff] }
 0x366   :  { %v1314_v25 = vadd.f32 %v1298_v28, %v1169_v26  ;;  %v1588_v28 = vmul.f32 %v4420_v18, %v1571_v55  ;;  %v1058_v55 = vmul.f32 %v4373_v41, %v1041_v51  ;;  %v1154_v49 = vmul.f32 %v4775_v56, %v3651_v60 }
 0x367   :  { %v1443_v19 = vmul.f32 %v4415_v61, %v1426_v12  ;;  %v1716_v12 = vmul.f32 %v1678_v20, %v1629_v58  ;;  %v1282_v58 = vmul.f32 %v1247_v39, %v4787_v6  ;;  %v624_v20 = vmul.f32 %v4350_v35, %v607_v32  ;;  %v5629_v32 = vld [vmem:[#allocation124_spill] sm:$0xff] }
 0x368   :  { %v1427_v6 = vmul.f32 %v4819_v37, %v4808_v45  ;;  %v5630_v45 = vld [vmem:[#allocation149_spill] sm:$0xff]  ;;  %v625_v59 = vmul.f32 %v4350_v35, %v608_v40 }
 0x369   :  { %v1733_v1 = vmul.f32 %v4455_v29, %v1716_v12  ;;  %v785_v8 = vadd.f32 %v769_v9, %v624_v20  ;;  %v1299_v60 = vmul.f32 %v4387_v47, %v1282_v58 }
 0x36a   :  { %v4842_v50 = vpop.permute.xlu2 %1630 }
 0x36b   :  { %v959_v0 = vpop.permute.xlu1 %958 }
 0x36c   :  { %1689 = vperm.xlu2 %2942, %v3161_v42   ;;  %v606_v42 = vmul.f32 %v5612_v53, %v5611_v17  ;;  %v1459_v17 = vadd.f32 %v1443_v19, %v1314_v25  ;;  %v5628_v25 = vld [vmem:[#allocation80_spill] sm:$0xff]  ;;  %v1043_v37 = vmul.f32 %v5630_v45, %v959_v0 }
 0x36d   :  { %2948 = vset.pattern.permute.xlu1 %v5427_v30  ;;  %v898_v19 = vmul.f32 %v5628_v25, %v5627_v11 }
 0x36e   :  { %1134 = vperm.xlu1 %2948, %v4800_v63   ;;  %v623_v26 = vmul.f32 %v4350_v35, %v606_v42  ;;  %v914_v42 = vmul.f32 %v4361_v44, %v897_v36  ;;  %v1604_v62 = vadd.f32 %v1588_v28, %v1459_v17  ;;  %v4897_v28 = vld [vmem:[%s5293_s4 + $0x60] sm:$0xff]  ;;  %v1060_v5 = vmul.f32 %v4373_v41, %v1043_v37 }
 0x36f   :  { %v915_v4 = vmul.f32 %v4361_v44, %v898_v19 }
 0x370   :  { %v784_v53 = vadd.f32 %v768_v48, %v623_v26  ;;  %v930_v9 = vadd.f32 %v914_v42, %v785_v8  ;;  %v1749_v17 = vadd.f32 %v1733_v1, %v1604_v62  ;;  %v5632_v1 = vld [vmem:[#allocation112_spill] sm:$0xff] }
 0x371   :  { %v1572_v62 = vmul.f32 %v5632_v1, %v4812_v14  ;;  %v3164_v14 = vld [vmem:[%s5292_s3 + $0x58] sm:$0xff] }
 0x372   :  { %v4852_v34 = vpop.permute.xlu2 %1681  ;;  %v929_v48 = vadd.f32 %v913_v22, %v784_v53  ;;  %v770_v22 = vmul.f32 %v4345_v7, %v753_v13  ;;  %v5631_v13 = vld [vmem:[#allocation10_spill] sm:$0xff] }
 0x373   :  { %v1791_v31 = vpop.permute.xlu1 %1790  ;;  %v1717_v40 = vmul.f32 %v4852_v34, %v4842_v50 }
 0x374   :  { %v2094_v15 = vpop.f32.mrf.mxu1  ;;  %960 = vrot.lane.b32.xlu2 %v5617_v23, %s3209_s21  ;;  %v1074_v39 = vadd.f32 %v1058_v55, %v929_v48  ;;  %v1155_v55 = vmul.f32 %v5631_v13, %v5598_v16  ;;  %v1829_v58 = vmul.f32 %v1791_v31, %v1749_v17  ;;  %v786_v38 = vadd.f32 %v770_v22, %v625_v59 }
 0x375   :  { %2944 = vset.pattern.permute.xlu2 %v5399_v57  ;;  %v1589_v31 = vmul.f32 %v4420_v18, %v1572_v62  ;;  %v1734_v8 = vmul.f32 %v4455_v29, %v1717_v40 }
 0x376   :  { %1203 = vrot.lane.b32.xlu1 %v5600_v27, %s3214_s23  ;;  %v1170_v20 = vadd.f32 %v1154_v49, %v1074_v39  ;;  %v931_v19 = vadd.f32 %v915_v4, %v786_v38 }
 0x377   :  { %2950 = vset.pattern.permute.xlu1 %v5412_v21 }
 0x378   :  { %v1315_v0 = vadd.f32 %v1299_v60, %v1170_v20  ;;  %v1076_v50 = vadd.f32 %v1060_v5, %v931_v19 }
 0x37b   :  { %v1010_v51 = vpop.permute.xlu2 %1009 }
 0x37c   :  { %v1042_v36 = vmul.f32 %v1010_v51, %v5629_v32  ;;  %v2096_v26 = vpop.f32.mrf.mxu1  ;;  %v1871_v12 = vpop.permute.xlu1 %1870  ;;  %1017 = vperm.xlu2 %2944, %v4897_v28  }
 0x37d   :  { %v4902_v56 = vpack.c.bf16 %v2096_v26, %v2094_v15  ;;  %v1444_v15 = vmul.f32 %v4415_v61, %v1427_v6  ;;  %v1909_v11 = vadd.f32 %v1871_v12, %v1829_v58 }
 0x37e   :  { %v1059_v53 = vmul.f32 %v4373_v41, %v1042_v36  ;;  %1346 = vrot.lane.b32.xlu1 %v5617_v23, %s3216_s24 }
 0x37f   :  { %v1460_v48 = vadd.f32 %v1444_v15, %v1315_v0  ;;  %v1925_v6 = vsub.f32 0.0, %v1909_v11 }
 0x380   :  { %v1075_v42 = vadd.f32 %v1059_v53, %v930_v9 }
 0x381   :  { %v1605_v32 = vadd.f32 %v1589_v31, %v1460_v48  ;;  %v1949_v26 = vmul.f32 1.442695, %v1925_v6  ;;  %v1255_v6 = vpop.permute.xlu0 %1254 }
 0x382   :  { %v1171_v25 = vadd.f32 %v1155_v55, %v1075_v42 }
 0x383   :  { %v1750_v12 = vadd.f32 %v1734_v8, %v1605_v32  ;;  %3085 = vpow2.f32 %v1949_v26  ;;  %v3166_v8 = vld [vmem:[%s5292_s3 + $0x60] sm:$0xff] }
 0x384   :  { %v2099_v49 = vpop.f32.mrf.mxu1  ;;  %2945 = vset.pattern.permute.xlu2 %v5535_v3  ;;  %v1795_v16 = vpop.permute.xlu2 %1794 }
 0x385   :  { %v1127_v51 = vpop.permute.xlu1 %1126  ;;  %1802 = vperm.xlu2 %2945, %v3164_v14   ;;  %v1830_v22 = vmul.f32 %v1795_v16, %v1750_v12  ;;  %v5633_v16 = vld [vmem:[#allocation31_spill] sm:$0xff]  ;;  %v5634_v12 = vld [vmem:[#allocation60_spill] sm:$0xff] }
 0x386   :  { %v1156_v34 = vmul.f32 %v1127_v51, %v5566_v2  ;;  %1403 = vperm.xlu1 %2950, %v4897_v28  }
 0x388   :  { %v4926_v36 = vadd.f32 %v1156_v34, %v1076_v50 }
 0x389   :  { %v3086_v17 = vpop.eup %3085 }
 0x38a   :  { %v1973_v4 = vadd.f32 1.0, %v3086_v17 }
 0x38c   :  { %v2101_v39 = vpop.f32.mrf.mxu1 }
 0x38d   :  { %v4928_v60 = vpack.c.bf16 %v2101_v39, %v2099_v49  ;;  %v4930_v9 = vpop.permute.xlu1 %1199  ;;  %2947 = vset.pattern.permute.xlu2 %v5399_v57  ;;  %v1875_v29 = vpop.permute.xlu2 %1874 }
 0x38e   :  { %v1910_v45 = vadd.f32 %v1875_v29, %v1830_v22  ;;  %1493 = vrot.lane.b32.xlu1 %v5600_v27, %s3210_s22  ;;  %1882 = vperm.xlu2 %2947, %v3164_v14   ;;  %v5635_v22 = vld [vmem:[#allocation42_spill] sm:$0xff]  ;;  %v5637_v29 = vld [vmem:[#allocation8_spill] sm:$0xff] }
 0x38f   :  { %2953 = vset.pattern.permute.xlu1 %v5424_v46  ;;  %v755_v39 = vmul.f32 %v5635_v22, %v5634_v12 }
 0x390   :  { %v1926_v2 = vsub.f32 0.0, %v1910_v45 }
 0x391   :  { %v772_v17 = vmul.f32 %v4345_v7, %v755_v39  ;;  %v5641_v39 = vld [vmem:[#allocation61_spill] sm:$0xff] }
 0x392   :  { %v1951_v37 = vmul.f32 1.442695, %v1926_v2  ;;  %v5638_v2 = vld [vmem:[#allocation70_spill] sm:$0xff] }
 0x394   :  { %3087 = vpow2.f32 %v1951_v37 }
 0x395   :  { %v4936_v53 = vpop.permute.xlu1 %1342  ;;  %v1198_v59 = vpop.permute.xlu2 %1197  ;;  %3089 = vrcp.f32 %v1973_v4 }
 0x396   :  { %1636 = vrot.lane.b32.xlu1 %v5617_v23, %s3218_s25  ;;  %1201 = vrot.lane.b32.xlu2 %v5617_v23, %s3214_s23 }
 0x397   :  { %2949 = vset.pattern.permute.xlu2 %v5550_v54 }
 0x39a   :  { %v3088_v20 = vpop.eup %3087 }
 0x39b   :  { %v1974_v13 = vadd.f32 1.0, %v3088_v20  ;;  %v3090_v38 = vpop.eup %3089 }
 0x39c   :  { %v4948_v62 = vmul.f32 %v3090_v38, %v1909_v11  ;;  %v4994_v38 = vpop.permute.xlu0 %1262 }
 0x39d   :  { %3091 = vrcp.f32 %v1974_v13  ;;  %v1396_v55 = vpop.permute.xlu1 %1395  ;;  %v1251_v15 = vpop.permute.xlu2 %1250 }
 0x39e   :  { %v1283_v58 = vmul.f32 %v1251_v15, %v1198_v59  ;;  %1693 = vperm.xlu1 %2953, %v4897_v28   ;;  %1258 = vperm.xlu2 %2949, %v4897_v28  }
 0x3a0   :  { %v1300_v42 = vmul.f32 %v4387_v47, %v1283_v58  ;;  %v5639_v58 = vld [vmem:[#allocation150_spill] sm:$0xff] }
 0x3a2   :  { %v4946_v0 = vadd.f32 %v1300_v42, %v1171_v25  ;;  %v4964_v25 = vld [vmem:[%s5293_s4 + $0x78] sm:$0xff] }
 0x3a3   :  { %v3092_v1 = vpop.eup %3091 }
 0x3a4   :  { %v4950_v5 = vmul.f32 %v3092_v1, %v1910_v45 }
 0x3a5   :  { %v4952_v40 = vpop.permute.xlu1 %1489  ;;  %v4954_v19 = vpop.permute.xlu2 %1344 }
 0x3a6   :  { %2956 = vset.pattern.permute.xlu1 %v5535_v3  ;;  %1348 = vrot.lane.b32.xlu2 %v5600_v27, %s3216_s24  ;;  %v2017_v48 = vpack.c.bf16 %v4950_v5, %v4948_v62 }
 0x3a7   :  { %884 = vperm.xlu1 %2956, %v4964_v25   ;;  %2951 = vset.pattern.permute.xlu2 %v5412_v21 }
 0x3a8   :  { %2113 = vmatmul.bf16.gmra.mxu1 %v2017_v48 }
 0x3ad   :  { %v1633_v11 = vpop.permute.xlu1 %1632  ;;  %v1400_v49 = vpop.permute.xlu2 %1399 }
 0x3ae   :  { %1407 = vperm.xlu2 %2951, %v4800_v63  }
 0x3af   :  { %966 = vrot.lane.b32.xlu1 %v5633_v16, %s3209_s21 }
 0x3b5   :  { %v2104_v31 = vpop.f32.mrf.mxu1  ;;  %v1686_v51 = vpop.permute.xlu1 %1685 }
 0x3b6   :  { %2952 = vset.pattern.permute.xlu2 %v5420_v52  ;;  %v1541_v14 = vpop.permute.xlu2 %1540 }
 0x3b7   :  { %1548 = vperm.xlu2 %2952, %v4897_v28   ;;  %1806 = vperm.xlu1 %2956, %v3166_v8   ;;  %v5636_v28 = vld [vmem:[#allocation57_spill] sm:$0xff] }
 0x3b8   :  { %v610_v45 = vmul.f32 %v5637_v29, %v5636_v28  ;;  %v5642_v28 = vld [vmem:[#allocation39_spill] sm:$0xff] }
 0x3b9   :  { %v754_v29 = vmul.f32 %v5642_v28, %v5641_v39  ;;  %v5026_v39 = vld [vmem:[%s5290_s1 + $0x8] ss:$0 sm:$0xff] }
 0x3ba   :  { %v627_v59 = vmul.f32 %v4350_v35, %v610_v45  ;;  %v5645_v45 = vld [vmem:[#allocation22_spill] sm:$0xff] }
 0x3bc   :  { %v788_v15 = vadd.f32 %v772_v17, %v627_v59  ;;  %v5647_v17 = vld [vmem:[#allocation130_spill] sm:$0xff] }
 0x3bd   :  { %v2106_v50 = vpop.f32.mrf.mxu1 }
 0x3be   :  { %v4976_v34 = vpack.c.bf16 %v2106_v50, %v2104_v31  ;;  %v877_v32 = vpop.permute.xlu1 %876  ;;  %v4978_v26 = vpop.permute.xlu2 %1634  ;;  %v5640_v50 = vld [vmem:[#allocation127_spill] sm:$0xff] }
 0x3bf   :  { %1638 = vrot.lane.b32.xlu2 %v5600_v27, %s3218_s25  ;;  %2960 = vset.pattern.permute.xlu1 %v5399_v57  ;;  %v900_v37 = vmul.f32 %v877_v32, %v5638_v2  ;;  %v1573_v32 = vmul.f32 %v1541_v14, %v5640_v50  ;;  %v5014_v14 = vpop.permute.xlu0 %1270 }
 0x3c0   :  { %1886 = vperm.xlu1 %2960, %v3166_v8   ;;  %2954 = vset.pattern.permute.xlu2 %v5424_v46  ;;  %v1428_v8 = vmul.f32 %v1396_v55, %v4936_v53 }
 0x3c1   :  { %v917_v4 = vmul.f32 %v4361_v44, %v900_v37  ;;  %v5646_v37 = vld [vmem:[#allocation74_spill] sm:$0xff]  ;;  %v1590_v55 = vmul.f32 %v4420_v18, %v1573_v32  ;;  %v1429_v32 = vmul.f32 %v1400_v49, %v4954_v19 }
 0x3c2   :  { %v899_v59 = vmul.f32 %v5647_v17, %v5646_v37  ;;  %v1445_v53 = vmul.f32 %v4415_v61, %v1428_v8 }
 0x3c3   :  { %v933_v1 = vadd.f32 %v917_v4, %v788_v15  ;;  %v771_v4 = vmul.f32 %v4345_v7, %v754_v29  ;;  %v5648_v29 = vld [vmem:[#allocation107_spill] sm:$0xff] }
 0x3c4   :  { %v1461_v15 = vadd.f32 %v1445_v53, %v4946_v0 }
 0x3c6   :  { %v963_v20 = vpop.permute.xlu1 %962  ;;  %v1690_v13 = vpop.permute.xlu2 %1689 }
 0x3c7   :  { %v1045_v42 = vmul.f32 %v5639_v58, %v963_v20  ;;  %1697 = vperm.xlu2 %2954, %v4800_v63   ;;  %v5643_v63 = vld [vmem:[#allocation36_spill] sm:$0xff]  ;;  %v1718_v20 = vmul.f32 %v1686_v51, %v1633_v11  ;;  %v1284_v58 = vmul.f32 %v1255_v6, %v4930_v9  ;;  %v5032_v9 = vld [vmem:[%s5293_s4 + $0x70] sm:$0xff]  ;;  %v1545_v37 = vpop.permute.xlu0 %1544  ;;  %v1719_v53 = vmul.f32 %v1690_v13, %v4978_v26 }
 0x3c8   :  { %2963 = vset.pattern.permute.xlu1 %v5427_v30  ;;  %v5644_v30 = vld [vmem:[#allocation58_spill] sm:$0xff] }
 0x3c9   :  { %v1062_v48 = vmul.f32 %v4373_v41, %v1045_v42  ;;  %1142 = vperm.xlu1 %2963, %v4964_v25   ;;  %v609_v2 = vmul.f32 %v5645_v45, %v5644_v30  ;;  %v1735_v11 = vmul.f32 %v5026_v39, %v1718_v20  ;;  %v1301_v6 = vmul.f32 %v4387_v47, %v1284_v58 }
 0x3ca   :  { %v1446_v30 = vmul.f32 %v4415_v61, %v1429_v32 }
 0x3cb   :  { %v1078_v31 = vadd.f32 %v1062_v48, %v933_v1  ;;  %v626_v42 = vmul.f32 %v4350_v35, %v609_v2  ;;  %v916_v1 = vmul.f32 %v4361_v44, %v899_v59  ;;  %v1606_v48 = vadd.f32 %v1590_v55, %v1461_v15 }
 0x3cc   :  { %v1317_v17 = vadd.f32 %v1301_v6, %v4926_v36  ;;  %v1574_v59 = vmul.f32 %v1545_v37, %v4952_v40  ;;  %v1736_v36 = vmul.f32 %v5026_v39, %v1719_v53 }
 0x3cd   :  { %v787_v50 = vadd.f32 %v771_v4, %v626_v42  ;;  %v1751_v19 = vadd.f32 %v1735_v11, %v1606_v48 }
 0x3ce   :  { %v1799_v12 = vpop.permute.xlu1 %1798  ;;  %v961_v22 = vpop.permute.xlu2 %960  ;;  %v1462_v20 = vadd.f32 %v1446_v30, %v1317_v17 }
 0x3cf   :  { %964 = vrot.lane.b32.xlu2 %v5643_v63, %s3209_s21  ;;  %v932_v28 = vadd.f32 %v916_v1, %v787_v50  ;;  %v1831_v45 = vmul.f32 %v1799_v12, %v1751_v19  ;;  %v1591_v12 = vmul.f32 %v4420_v18, %v1574_v59 }
 0x3d0   :  { %2957 = vset.pattern.permute.xlu2 %v5399_v57 }
 0x3d1   :  { %1207 = vrot.lane.b32.xlu1 %v5633_v16, %s3214_s23  ;;  %v1607_v26 = vadd.f32 %v1591_v12, %v1462_v20 }
 0x3d2   :  { %2966 = vset.pattern.permute.xlu1 %v5412_v21 }
 0x3d3   :  { %v1752_v48 = vadd.f32 %v1736_v36, %v1607_v26  ;;  %v5650_v26 = vld [vmem:[#allocation69_spill] sm:$0xff] }
 0x3d6   :  { %v1018_v8 = vpop.permute.xlu2 %1017 }
 0x3d7   :  { %v1044_v51 = vmul.f32 %v1018_v8, %v961_v22  ;;  %v1879_v0 = vpop.permute.xlu1 %1878  ;;  %1025 = vperm.xlu2 %2957, %v5032_v9   ;;  %v1157_v22 = vmul.f32 %v5648_v29, %v5617_v23  ;;  %v3169_v23 = vld [vmem:[%s5292_s3 + $0x68] sm:$0xff] }
 0x3d8   :  { %v1911_v55 = vadd.f32 %v1879_v0, %v1831_v45 }
 0x3d9   :  { %v1061_v49 = vmul.f32 %v4373_v41, %v1044_v51  ;;  %1350 = vrot.lane.b32.xlu1 %v5643_v63, %s3216_s24 }
 0x3da   :  { %v1927_v42 = vsub.f32 0.0, %v1911_v55 }
 0x3db   :  { %v1077_v2 = vadd.f32 %v1061_v49, %v932_v28 }
 0x3dc   :  { %v1953_v1 = vmul.f32 1.442695, %v1927_v42 }
 0x3dd   :  { %v1173_v4 = vadd.f32 %v1157_v22, %v1077_v2 }
 0x3de   :  { %3093 = vpow2.f32 %v1953_v1 }
 0x3df   :  { %2959 = vset.pattern.permute.xlu2 %v5535_v3  ;;  %v1803_v15 = vpop.permute.xlu2 %1802 }
 0x3e0   :  { %v1135_v58 = vpop.permute.xlu1 %1134  ;;  %1810 = vperm.xlu2 %2959, %v3169_v23   ;;  %v1832_v8 = vmul.f32 %v1803_v15, %v1752_v48  ;;  %v5652_v48 = vld [vmem:[#allocation66_spill] sm:$0xff] }
 0x3e1   :  { %v1158_v40 = vmul.f32 %v1135_v58, %v5600_v27  ;;  %1411 = vperm.xlu1 %2966, %v5032_v9  }
 0x3e3   :  { %v1174_v13 = vadd.f32 %v1158_v40, %v1078_v31 }
 0x3e4   :  { %v3094_v28 = vpop.eup %3093 }
 0x3e8   :  { %v1204_v50 = vpop.permute.xlu1 %1203  ;;  %2961 = vset.pattern.permute.xlu2 %v5399_v57  ;;  %v1883_v32 = vpop.permute.xlu2 %1882 }
 0x3e9   :  { %v1286_v11 = vmul.f32 %v4994_v38, %v1204_v50  ;;  %v1912_v51 = vadd.f32 %v1883_v32, %v1832_v8  ;;  %1890 = vperm.xlu2 %2961, %v3169_v23   ;;  %1497 = vrot.lane.b32.xlu1 %v5633_v16, %s3210_s22  ;;  %v1975_v38 = vadd.f32 1.0, %v3094_v28  ;;  %v5653_v8 = vld [vmem:[#allocation23_spill] sm:$0xff] }
 0x3ea   :  { %2969 = vset.pattern.permute.xlu1 %v5424_v46  ;;  %v612_v50 = vmul.f32 %v5653_v8, %v5652_v48  ;;  %v5654_v32 = vld [vmem:[#allocation75_spill] sm:$0xff]  ;;  %v5662_v48 = vld [vmem:[#allocation136_spill] sm:$0xff] }
 0x3eb   :  { %v1303_v27 = vmul.f32 %v4387_v47, %v1286_v11  ;;  %v1928_v31 = vsub.f32 0.0, %v1912_v51  ;;  %v5655_v28 = vld [vmem:[#allocation115_spill] sm:$0xff] }
 0x3ed   :  { %v5059_v0 = vadd.f32 %v1303_v27, %v1174_v13  ;;  %v1955_v6 = vmul.f32 1.442695, %v1928_v31  ;;  %v5651_v13 = vld [vmem:[#allocation45_spill] sm:$0xff] }
 0x3ee   :  { %v757_v1 = vmul.f32 %v5651_v13, %v5650_v26  ;;  %v5660_v26 = vld [vmem:[#allocation20_spill] sm:$0xff] }
 0x3ef   :  { %3095 = vpow2.f32 %v1955_v6 }
 0x3f0   :  { %v1347_v19 = vpop.permute.xlu1 %1346  ;;  %v1202_v49 = vpop.permute.xlu2 %1201  ;;  %3097 = vrcp.f32 %v1975_v38 }
 0x3f1   :  { %1205 = vrot.lane.b32.xlu2 %v5643_v63, %s3214_s23  ;;  %1640 = vrot.lane.b32.xlu1 %v5643_v63, %s3218_s25 }
 0x3f2   :  { %2964 = vset.pattern.permute.xlu2 %v5550_v54 }
 0x3f5   :  { %v3096_v29 = vpop.eup %3095 }
 0x3f6   :  { %v1976_v22 = vadd.f32 1.0, %v3096_v29  ;;  %v3098_v17 = vpop.eup %3097 }
 0x3f7   :  { %v5069_v20 = vmul.f32 %v3098_v17, %v1911_v55  ;;  %v3170_v55 = vld [vmem:[%s5292_s3 + $0x78] sm:$0xff] }
 0x3f8   :  { %3099 = vrcp.f32 %v1976_v22  ;;  %v1404_v30 = vpop.permute.xlu1 %1403  ;;  %v1259_v45 = vpop.permute.xlu2 %1258 }
 0x3f9   :  { %v1285_v2 = vmul.f32 %v1259_v45, %v1202_v49  ;;  %1266 = vperm.xlu2 %2964, %v5032_v9   ;;  %1701 = vperm.xlu1 %2969, %v5032_v9   ;;  %v1430_v22 = vmul.f32 %v1404_v30, %v1347_v19  ;;  %v5656_v45 = vld [vmem:[#allocation133_spill] sm:$0xff] }
 0x3fb   :  { %v1302_v37 = vmul.f32 %v4387_v47, %v1285_v2  ;;  %v1447_v30 = vmul.f32 %v4415_v61, %v1430_v22 }
 0x3fd   :  { %v1318_v59 = vadd.f32 %v1302_v37, %v1173_v4 }
 0x3fe   :  { %v3100_v53 = vpop.eup %3099 }
 0x3ff   :  { %v5071_v15 = vmul.f32 %v3100_v53, %v1912_v51  ;;  %v5657_v53 = vld [vmem:[#allocation65_spill] sm:$0xff] }
 0x400   :  { %v5073_v54 = vpop.permute.xlu1 %1493  ;;  %v1349_v58 = vpop.permute.xlu2 %1348 }
 0x401   :  { %1352 = vrot.lane.b32.xlu2 %v5633_v16, %s3216_s24  ;;  %v2018_v23 = vpack.c.bf16 %v5071_v15, %v5069_v20  ;;  %2972 = vset.pattern.permute.xlu1 %v5535_v3  ;;  %s3219_s24 = smov [#allocation2]  }
 0x402   :  { %2967 = vset.pattern.permute.xlu2 %v5412_v21  ;;  %1818 = vperm.xlu1 %2972, %v3170_v55   ;;  %v5649_v21 = vmov 1  }
 0x403   :  { %2118 = vmatmul.bf16.gmra.mxu1 %v2018_v23  ;;  %v5658_v23 = vld [vmem:[#allocation47_spill] sm:$0xff] }
 0x408   :  { %v1637_v4 = vpop.permute.xlu1 %1636  ;;  %v1408_v12 = vpop.permute.xlu2 %1407 }
 0x409   :  { %1415 = vperm.xlu2 %2967, %v4964_v25  }
 0x40a   :  { %2974 = vset.pattern.permute.xlu1 %v5399_v57 }
 0x40b   :  { %1898 = vperm.xlu1 %2974, %v3170_v55   ;;  %v756_v55 = vmul.f32 %v5658_v23, %v5657_v53 }
 0x40d   :  { %v773_v8 = vmul.f32 %v4345_v7, %v756_v55 }
 0x410   :  { %v1694_v36 = vpop.permute.xlu1 %1693 }
 0x411   :  { %v1549_v42 = vpop.permute.xlu2 %1548  ;;  %2968 = vset.pattern.permute.xlu2 %v5420_v52  ;;  %v774_v52 = vmul.f32 %v4345_v7, %v757_v1  ;;  %v5661_v1 = vld [vmem:[#allocation73_spill] sm:$0xff] }
 0x412   :  { %1556 = vperm.xlu2 %2968, %v5032_v9   ;;  %v629_v9 = vmul.f32 %v4350_v35, %v612_v50  ;;  %v1575_v2 = vmul.f32 %v1549_v42, %v5656_v45  ;;  %v901_v19 = vmul.f32 %v5662_v48, %v5661_v1  ;;  %v1720_v50 = vmul.f32 %v1694_v36, %v1637_v4  ;;  %v1553_v45 = vpop.permute.xlu0 %1552 }
 0x413   :  { %2977 = vset.pattern.permute.xlu1 %v5649_v21 }
 0x414   :  { %v790_v6 = vadd.f32 %v774_v52, %v629_v9  ;;  %v1592_v42 = vmul.f32 %v4420_v18, %v1575_v2 }
 0x419   :  { %v885_v3 = vpop.permute.xlu1 %884  ;;  %v1639_v40 = vpop.permute.xlu2 %1638 }
 0x41a   :  { %1642 = vrot.lane.b32.xlu2 %v5633_v16, %s3218_s25  ;;  %v902_v11 = vmul.f32 %v885_v3, %v5654_v32  ;;  %v3171_v3 = vld [vmem:[%s5292_s3 + $0x70] sm:$0xff]  ;;  %v1463_v32 = vadd.f32 %v1447_v30, %v1318_v59  ;;  %v5664_v59 = vld [vmem:[#allocation34_spill] sm:$0xff]  ;;  %s2654_s25 = sshll.u32 %s3219_s24, 4  ;;  %s2655_s25 = int_to_ptr.vmem [resolvable:$true] %s2654_s25 }
 0x41b   :  { %2970 = vset.pattern.permute.xlu2 %v5424_v46  ;;  %v1159_v4 = vmul.f32 %v5664_v59, %v5643_v63 }
 0x41c   :  { %v919_v51 = vmul.f32 %v4361_v44, %v902_v11  ;;  %v918_v11 = vmul.f32 %v4361_v44, %v901_v19  ;;  %v1608_v52 = vadd.f32 %v1592_v42, %v1463_v32 }
 0x41e   :  { %v935_v38 = vadd.f32 %v919_v51, %v790_v6  ;;  %v1737_v6 = vmul.f32 %v5026_v39, %v1720_v50 }
 0x420   :  { %v1753_v22 = vadd.f32 %v1737_v6, %v1608_v52 }
 0x421   :  { %v1698_v27 = vpop.permute.xlu2 %1697  ;;  %v967_v31 = vpop.permute.xlu1 %966 }
 0x422   :  { %v1047_v49 = vmul.f32 %v5655_v28, %v967_v31  ;;  %1705 = vperm.xlu2 %2970, %v4964_v25   ;;  %v5659_v25 = vld [vmem:[#allocation63_spill] sm:$0xff]  ;;  %v1431_v31 = vmul.f32 %v1408_v12, %v1349_v58  ;;  %v1576_v58 = vmul.f32 %v1553_v45, %v5073_v54  ;;  %v1721_v12 = vmul.f32 %v1698_v27, %v1639_v40 }
 0x423   :  { %v611_v13 = vmul.f32 %v5660_v26, %v5659_v25 }
 0x424   :  { %v1064_v46 = vmul.f32 %v4373_v41, %v1047_v49 }
 0x426   :  { %v5103_v29 = vadd.f32 %v1064_v46, %v935_v38  ;;  %v5663_v38 = vmov 0  }
 0x429   :  { %v965_v37 = vpop.permute.xlu2 %964  ;;  %v1807_v17 = vpop.permute.xlu1 %1806 }
 0x42a   :  { %2973 = vset.pattern.permute.xlu2 %v5399_v57  ;;  %v628_v57 = vmul.f32 %v4350_v35, %v611_v13  ;;  %v1448_v35 = vmul.f32 %v4415_v61, %v1431_v31  ;;  %v1833_v44 = vmul.f32 %v1807_v17, %v1753_v22 }
 0x42b   :  { %1894 = vperm.xlu2 %2973, %v3171_v3   ;;  %v1593_v3 = vmul.f32 %v4420_v18, %v1576_v58 }
 0x42c   :  { %v789_v51 = vadd.f32 %v773_v8, %v628_v57  ;;  %v1464_v53 = vadd.f32 %v1448_v35, %v5059_v0 }
 0x42e   :  { %v934_v46 = vadd.f32 %v918_v11, %v789_v51  ;;  %v1609_v63 = vadd.f32 %v1593_v3, %v1464_v53 }
 0x431   :  { %v1026_v9 = vpop.permute.xlu2 %1025 }
 0x432   :  { %v1046_v28 = vmul.f32 %v1026_v9, %v965_v37  ;;  %v1887_v49 = vpop.permute.xlu1 %1886 }
 0x433   :  { %2975 = vset.pattern.permute.xlu2 %v5663_v38  ;;  %v1913_v2 = vadd.f32 %v1887_v49, %v1833_v44 }
 0x434   :  { %v1063_v7 = vmul.f32 %v4373_v41, %v1046_v28  ;;  %v1738_v41 = vmul.f32 %v5026_v39, %v1721_v12 }
 0x435   :  { %v1929_v25 = vsub.f32 0.0, %v1913_v2 }
 0x436   :  { %v1079_v36 = vadd.f32 %v1063_v7, %v934_v46  ;;  %v1754_v13 = vadd.f32 %v1738_v41, %v1609_v63  ;;  %v1496_v7 = vpop.permute.xlu0 %1495 }
 0x437   :  { %v1957_v26 = vmul.f32 1.442695, %v1929_v25 }
 0x438   :  { %v1175_v37 = vadd.f32 %v1159_v4, %v1079_v36 }
 0x439   :  { %3101 = vpow2.f32 %v1957_v26 }
 0x43a   :  { %v1811_v23 = vpop.permute.xlu2 %1810 }
 0x43b   :  { %v1143_v55 = vpop.permute.xlu1 %1142  ;;  %v1834_v17 = vmul.f32 %v1811_v23, %v1754_v13 }
 0x43c   :  { %v1160_v36 = vmul.f32 %v1143_v55, %v5633_v16 }
 0x43e   :  { %v1561_v3 = vpop.permute.xlu0 %1560  ;;  %v1176_v41 = vadd.f32 %v1160_v36, %v5103_v29 }
 0x43f   :  { %v3102_v19 = vpop.eup %3101 }
 0x440   :  { %v1977_v42 = vadd.f32 1.0, %v3102_v19 }
 0x443   :  { %v1891_v1 = vpop.permute.xlu2 %1890  ;;  %v1208_v48 = vpop.permute.xlu1 %1207 }
 0x444   :  { %v1914_v54 = vadd.f32 %v1891_v1, %v1834_v17  ;;  %v1288_v35 = vmul.f32 %v5014_v14, %v1208_v48 }
 0x446   :  { %v1930_v40 = vsub.f32 0.0, %v1914_v54  ;;  %v1305_v53 = vmul.f32 %v4387_v47, %v1288_v35  ;;  %v2109_v35 = vpop.f32.mrf.mxu1 }
 0x448   :  { %v1959_v27 = vmul.f32 1.442695, %v1930_v40  ;;  %v1321_v13 = vadd.f32 %v1305_v53, %v1176_v41 }
 0x44a   :  { %3103 = vpow2.f32 %v1959_v27 }
 0x44b   :  { %v1206_v0 = vpop.permute.xlu2 %1205  ;;  %v1351_v30 = vpop.permute.xlu1 %1350  ;;  %3105 = vrcp.f32 %v1977_v42 }
 0x450   :  { %v3104_v8 = vpop.eup %3103 }
 0x451   :  { %v1978_v50 = vadd.f32 1.0, %v3104_v8  ;;  %v3106_v11 = vpop.eup %3105 }
 0x452   :  { %v5131_v9 = vmul.f32 %v3106_v11, %v1913_v2 }
 0x453   :  { %3107 = vrcp.f32 %v1978_v50  ;;  %v1267_v32 = vpop.permute.xlu2 %1266  ;;  %v1412_v57 = vpop.permute.xlu1 %1411 }
 0x454   :  { %v1287_v59 = vmul.f32 %v1267_v32, %v1206_v0  ;;  %v1432_v58 = vmul.f32 %v1412_v57, %v1351_v30 }
 0x456   :  { %v1304_v44 = vmul.f32 %v4387_v47, %v1287_v59  ;;  %v1449_v63 = vmul.f32 %v4415_v61, %v1432_v58 }
 0x458   :  { %v1320_v23 = vadd.f32 %v1304_v44, %v1175_v37  ;;  %v2111_v44 = vpop.f32.mrf.mxu1 }
 0x459   :  { %v3108_v52 = vpop.eup %3107 }
 0x45a   :  { %v5133_v51 = vmul.f32 %v3108_v52, %v1914_v54  ;;  %v1465_v16 = vadd.f32 %v1449_v63, %v1320_v23  ;;  %v2137_v63 = vld [vmem:[%s5295_s6 + $0x18] sm:$0xff] }
 0x45b   :  { %v1353_v31 = vpop.permute.xlu2 %1352  ;;  %v1498_v6 = vpop.permute.xlu1 %1497  ;;  %2198 = vperm.xlu0 %2976, %v2137_v63  }
 0x45c   :  { %v2019_v28 = vpack.c.bf16 %v5133_v51, %v5131_v9  ;;  %v1578_v17 = vmul.f32 %v1561_v3, %v1498_v6 }
 0x45e   :  { %2123 = vmatmul.bf16.gmra.mxu1 %v2019_v28  ;;  %v1595_v47 = vmul.f32 %v4420_v18, %v1578_v17 }
 0x460   :  { %v2114_v36 = vpop.f32.mrf.mxu1 }
 0x463   :  { %v1416_v49 = vpop.permute.xlu2 %1415  ;;  %v1641_v46 = vpop.permute.xlu1 %1640  ;;  %2981 = vset.pattern.permute.xlu0 %v5649_v21 }
 0x464   :  { %v1433_v45 = vmul.f32 %v1416_v49, %v1353_v31 }
 0x466   :  { %v1450_v25 = vmul.f32 %v4415_v61, %v1433_v45  ;;  %v1815_v61 = vpop.permute.xlu0 %1814 }
 0x468   :  { %v1466_v1 = vadd.f32 %v1450_v25, %v1321_v13  ;;  %v2116_v45 = vpop.f32.mrf.mxu1  ;;  %v2136_v25 = vld [vmem:[%s5295_s6 + $0x10] sm:$0xff]  ;;  %v2134_v13 = vld [vmem:[%s5295_s6] sm:$0xff] }
 0x469   :  { %2214 = vperm.xlu1 %2977, %v2136_v25   ;;  %2193 = vperm.xlu2 %2975, %v2136_v25   ;;  %v2146_v17 = vpack.c.bf16 %v2116_v45, %v2114_v36  ;;  %v2826_v36 = vld [vmem:[%s5296_s7 + $0x20] sm:$0xff]  ;;  %v2827_v45 = vld [vmem:[%s5296_s7 + $0x28] sm:$0xff] }
 0x46a   :  { %v1611_v27 = vadd.f32 %v1595_v47, %v1466_v1  ;;  %2206 = vperm.xlu0 %2981, %v2134_v13   ;;  %v2820_v1 = vld [vmem:[%s5294_s5] sm:$0xff] }
 0x46b   :  { %v1702_v4 = vpop.permute.xlu1 %1701 }
 0x46c   :  { %v1557_v22 = vpop.permute.xlu2 %1556  ;;  %v1722_v55 = vmul.f32 %v1702_v4, %v1641_v46 }
 0x46d   :  { %v1577_v12 = vmul.f32 %v1557_v22, %v1496_v7 }
 0x46e   :  { %v1739_v40 = vmul.f32 %v5026_v39, %v1722_v55  ;;  %v2135_v55 = vld [vmem:[%s5295_s6 + $0x8] sm:$0xff] }
 0x46f   :  { %v1594_v14 = vmul.f32 %v4420_v18, %v1577_v12 }
 0x471   :  { %v1610_v48 = vadd.f32 %v1594_v14, %v1465_v16  ;;  %2979 = vset.pattern.permute.xlu1 %v5663_v38  ;;  %2978 = vset.pattern.permute.xlu2 %v5649_v21  ;;  %v2145_v16 = vpack.c.bf16 %v2111_v44, %v2109_v35  ;;  %v2824_v35 = vld [vmem:[%s5296_s7 + $0x10] sm:$0xff]  ;;  %v2825_v44 = vld [vmem:[%s5296_s7 + $0x18] sm:$0xff] }
 0x472   :  { %2183 = vperm.xlu1 %2979, %v2134_v13   ;;  %2218 = vperm.xlu2 %2978, %v2137_v63  }
 0x473   :  { %v1755_v19 = vadd.f32 %v1739_v40, %v1610_v48  ;;  %2984 = vset.pattern.permute.xlu0 %v5663_v38  ;;  %v2821_v48 = vld [vmem:[%s5294_s5 + $0x8] sm:$0xff] }
 0x474   :  { %v1643_v2 = vpop.permute.xlu2 %1642  ;;  %v1819_v26 = vpop.permute.xlu1 %1818 }
 0x475   :  { %v1835_v8 = vmul.f32 %v1815_v61, %v1755_v19 }
 0x47a   :  { %2982 = vset.pattern.permute.xlu1 %v5649_v21  ;;  %2980 = vset.pattern.permute.xlu2 %v5663_v38 }
 0x47b   :  { %2210 = vperm.xlu1 %2982, %v2135_v55   ;;  %2188 = vperm.xlu2 %2980, %v2135_v55  }
 0x47c   :  { %v1706_v54 = vpop.permute.xlu2 %1705 }
 0x47d   :  { %v1723_v37 = vmul.f32 %v1706_v54, %v1643_v2  ;;  %v1899_v30 = vpop.permute.xlu1 %1898  ;;  %v5185_v54 = vld [vmem:[%s5300_s11] sm:$0xff] }
 0x47f   :  { %v1740_v29 = vmul.f32 %v5026_v39, %v1723_v37 }
 0x480   :  { %v2119_v58 = vpop.f32.mrf.mxu1 }
 0x481   :  { %v1756_v0 = vadd.f32 %v1740_v29, %v1611_v27 }
 0x483   :  { %v1836_v42 = vmul.f32 %v1819_v26, %v1756_v0  ;;  %2983 = vset.pattern.permute.xlu1 %v5663_v38  ;;  %2576 = vperm.xlu2 %2980, %v5185_v54  }
 0x485   :  { %v1916_v50 = vadd.f32 %v1899_v30, %v1836_v42  ;;  %v1895_v32 = vpop.permute.xlu2 %1894 }
 0x486   :  { %v1915_v57 = vadd.f32 %v1895_v32, %v1835_v8 }
 0x487   :  { %v1932_v11 = vsub.f32 0.0, %v1916_v50 }
 0x488   :  { %v1931_v52 = vsub.f32 0.0, %v1915_v57  ;;  %v2121_v12 = vpop.f32.mrf.mxu1 }
 0x489   :  { %v1963_v31 = vmul.f32 1.442695, %v1932_v11  ;;  %v2147_v26 = vpack.c.bf16 %v2121_v12, %v2119_v58  ;;  %v2828_v58 = vld [vmem:[%s5296_s7 + $0x30] sm:$0xff]  ;;  %v2829_v12 = vld [vmem:[%s5296_s7 + $0x38] sm:$0xff] }
 0x48a   :  { %v1961_v6 = vmul.f32 1.442695, %v1931_v52 }
 0x48b   :  { %3109 = vpow2.f32 %v1963_v31 }
 0x48c   :  { %3111 = vpow2.f32 %v1961_v6 }
 0x491   :  { %v3110_v18 = vpop.eup %3109 }
 0x492   :  { %v3112_v28 = vpop.eup %3111  ;;  %v1980_v49 = vadd.f32 1.0, %v3110_v18 }
 0x493   :  { %v1979_v39 = vadd.f32 1.0, %v3112_v28 }
 0x494   :  { %3113 = vrcp.f32 %v1980_v49 }
 0x495   :  { %3115 = vrcp.f32 %v1979_v39 }
 0x49a   :  { %v3114_v46 = vpop.eup %3113 }
 0x49b   :  { %v3116_v22 = vpop.eup %3115  ;;  %v5148_v7 = vmul.f32 %v3114_v46, %v1916_v50 }
 0x49c   :  { %v5150_v59 = vmul.f32 %v3116_v22, %v1915_v57  ;;  %v2822_v22 = vld [vmem:[%s5296_s7] sm:$0xff] }
 0x49e   :  { %v2020_v4 = vpack.c.bf16 %v5148_v7, %v5150_v59 }
 0x4a0   :  { %2128 = vmatmul.bf16.gmra.mxu1 %v2020_v4  ;;  %v2823_v4 = vld [vmem:[%s5296_s7 + $0x8] sm:$0xff] }
 0x4cd   :  { %v2199_v40 = vpop.permute.xlu0 %2198 }
 0x4db   :  { %v2124_v2 = vpop.f32.mrf.mxu1  ;;  %v2215_v47 = vpop.permute.xlu1 %2214 }
 0x4dc   :  { %v2207_v57 = vpop.permute.xlu0 %2206 }
 0x4e3   :  { %v2126_v53 = vpop.f32.mrf.mxu1 }
 0x4e4   :  { %v2148_v14 = vpack.c.bf16 %v2126_v53, %v2124_v2  ;;  %v2184_v37 = vpop.permute.xlu1 %2183  ;;  %v2432_v2 = vld [vmem:[%s5298_s9] sm:$0x1] }
 0x4e5   :  { %v2460_v53 = vsel %vm2458_vm1, %v2432_v2, 0 }
 0x4ed   :  { %v2211_v61 = vpop.permute.xlu1 %2210 }
 0x51d   :  { %v2129_v23 = vpop.f32.mrf.mxu1 }
 0x525   :  { %v2131_v3 = vpop.f32.mrf.mxu1 }
 0x526   :  { %v2149_v41 = vpack.c.bf16 %v2131_v3, %v2129_v23 }
 0x528   :  { %2162 = vmatpush.bf16.msra.mxu2 %v2149_v41  ;;  %2832 = vmatpush.bf16.msra.mxu3 %v2149_v41 }
 0x52c   :  { %2163 = vmatpush.bf16.msra.mxu2 %v2148_v14  ;;  %2833 = vmatpush.bf16.msra.mxu3 %v2148_v14 }
 0x530   :  { %2164 = vmatpush.bf16.msra.mxu2 %v2147_v26  ;;  %2834 = vmatpush.bf16.msra.mxu3 %v2147_v26 }
 0x534   :  { %2165 = vmatpush.bf16.msra.mxu2 %v2146_v17  ;;  %2835 = vmatpush.bf16.msra.mxu3 %v2146_v17 }
 0x538   :  { %2166 = vmatpush.bf16.msra.mxu2 %v2145_v16  ;;  %2836 = vmatpush.bf16.msra.mxu3 %v2145_v16 }
 0x53c   :  { %2167 = vmatpush.bf16.msra.mxu2 %v4976_v34  ;;  %2837 = vmatpush.bf16.msra.mxu3 %v4976_v34  ;;  %v2194_v34 = vpop.permute.xlu2 %2193 }
 0x540   :  { %2168 = vmatpush.bf16.msra.mxu2 %v4928_v60  ;;  %2838 = vmatpush.bf16.msra.mxu3 %v4928_v60  ;;  %v5194_v60 = vld [vmem:[%s5300_s11 + $0x10] sm:$0xff] }
 0x541   :  { %2586 = vperm.xlu2 %2980, %v5194_v60  }
 0x544   :  { %2169 = vmatpush.bf16.msra.mxu2 %v4902_v56  ;;  %2839 = vmatpush.bf16.msra.mxu3 %v4902_v56  ;;  %v2219_v38 = vpop.permute.xlu2 %2218 }
 0x547   :  { %2170 = vmatmul.bf16.vlgmr.msra.gmra.mxu2 %v2820_v1  ;;  %2175 = vmatmul.bf16.vlgmr.msra.gmra.mxu3 %v2821_v48 }
 0x548   :  { %2469 = vmatpush.bf16.msrb.mxu2 %v2460_v53 }
 0x549   :  { %2986 = vset.pattern.permute.xlu2 %v5649_v21 }
 0x54c   :  { %v2189_v19 = vpop.permute.xlu2 %2188 }
 0x5ca   :  { %v2171_v29 = vpop.f32.mrf.mxu2  ;;  %v2176_v56 = vpop.f32.mrf.mxu3 }
 0x5cb   :  { %v2203_v27 = vmul.f32 %v2194_v34, %v2176_v56  ;;  %v2201_v8 = vmul.f32 %v2184_v37, %v2171_v29 }
 0x5cd   :  { %v2223_v42 = vadd.f32 %v2215_v47, %v2203_v27  ;;  %v2221_v6 = vadd.f32 %v2207_v57, %v2201_v8 }
 0x5cf   :  { %v2227_v31 = vmax.f32 %v2223_v42, 0.0  ;;  %v2225_v39 = vmax.f32 %v2221_v6, 0.0 }
 0x5d2   :  { %v2173_v0 = vpop.f32.mrf.mxu2  ;;  %v2178_v30 = vpop.f32.mrf.mxu3 }
 0x5d3   :  { %v2202_v50 = vmul.f32 %v2189_v19, %v2173_v0  ;;  %v2204_v32 = vmul.f32 %v2199_v40, %v2178_v30 }
 0x5d5   :  { %v2224_v11 = vadd.f32 %v2219_v38, %v2204_v32  ;;  %v2222_v52 = vadd.f32 %v2211_v61, %v2202_v50 }
 0x5d7   :  { %v2228_v18 = vmax.f32 %v2224_v11, 0.0  ;;  %v2226_v28 = vmax.f32 %v2222_v52, 0.0 }
 0x5d9   :  { %v2246_v49 = vpack.c.bf16 %v2228_v18, %v2227_v31  ;;  %v2245_v46 = vpack.c.bf16 %v2226_v28, %v2225_v39 }
 0x5db   :  { %2317 = vmatpush.bf16.msrb.mxu3 %v2246_v49 }
 0x5df   :  { %2318 = vmatpush.bf16.msrb.mxu3 %v2245_v46 }
 0x5e2   :  { %2780 = vmatmul.msk.bf16.vlgmr.msrb.gmra.mxu3 %vm121_vm0, %v2822_v22 }
 0x5f2   :  { %2781 = vmatmul.msk.bf16.gmra.mxu3 %vm121_vm0, %v2823_v4 }
 0x602   :  { %2782 = vmatmul.msk.bf16.gmra.mxu3 %vm121_vm0, %v2824_v35 }
 0x612   :  { %2783 = vmatmul.msk.bf16.gmra.mxu3 %vm121_vm0, %v2825_v44 }
 0x622   :  { %2784 = vmatmul.msk.bf16.gmra.mxu3 %vm121_vm0, %v2826_v36 }
 0x632   :  { %2785 = vmatmul.msk.bf16.gmra.mxu3 %vm121_vm0, %v2827_v45 }
 0x642   :  { %2786 = vmatmul.msk.bf16.gmra.mxu3 %vm121_vm0, %v2828_v58 }
 0x652   :  { %2787 = vmatmul.msk.bf16.gmra.mxu3 %vm121_vm0, %v2829_v12 }
 0x665   :  { %v2320_v23 = vpop.f32.mrf.mxu3 }
 0x666   :  { %v2360_v3 = vmul.f32 0.16666667, %v2320_v23 }
 0x668   :  { %v2376_v41 = vadd.f32 0.5, %v2360_v3 }
 0x66a   :  { %v2392_v14 = vmax.f32 %v2376_v41, 0.0 }
 0x66c   :  { %v2408_v17 = vmin.f32 %v2392_v14, 1.0 }
 0x66d   :  { %v2322_v25 = vpop.f32.mrf.mxu3 }
 0x66e   :  { %v2361_v63 = vmul.f32 0.16666667, %v2322_v25 }
 0x670   :  { %v2377_v26 = vadd.f32 0.5, %v2361_v63 }
 0x672   :  { %v2393_v13 = vmax.f32 %v2377_v26, 0.0 }
 0x674   :  { %v2409_v16 = vmin.f32 %v2393_v13, 1.0 }
 0x675   :  { %v2325_v55 = vpop.f32.mrf.mxu3 }
 0x676   :  { %v2424_v1 = vpack.c.bf16 %v2409_v16, %v2408_v17  ;;  %v2362_v48 = vmul.f32 0.16666667, %v2325_v55 }
 0x678   :  { %2788 = vmatmul.msk.bf16.vlgmr.msrb.gmra.mxu2 %vm2433_vm2, %v2424_v1  ;;  %v2378_v34 = vadd.f32 0.5, %v2362_v48 }
 0x67a   :  { %v2394_v37 = vmax.f32 %v2378_v34, 0.0 }
 0x67c   :  { %v2410_v56 = vmin.f32 %v2394_v37, 1.0 }
 0x67d   :  { %v2327_v47 = vpop.f32.mrf.mxu3 }
 0x67e   :  { %v2363_v38 = vmul.f32 0.16666667, %v2327_v47 }
 0x680   :  { %v2379_v40 = vadd.f32 0.5, %v2363_v38 }
 0x682   :  { %v2395_v29 = vmax.f32 %v2379_v40, 0.0 }
 0x684   :  { %v2411_v27 = vmin.f32 %v2395_v29, 1.0 }
 0x685   :  { %v2330_v19 = vpop.f32.mrf.mxu3 }
 0x686   :  { %v2425_v61 = vpack.c.bf16 %v2411_v27, %v2410_v56  ;;  %v2364_v0 = vmul.f32 0.16666667, %v2330_v19 }
 0x688   :  { %2789 = vmatmul.msk.bf16.gmra.mxu2 %vm2433_vm2, %v2425_v61  ;;  %v2380_v30 = vadd.f32 0.5, %v2364_v0 }
 0x68a   :  { %v2396_v50 = vmax.f32 %v2380_v30, 0.0 }
 0x68c   :  { %v2412_v11 = vmin.f32 %v2396_v50, 1.0 }
 0x68d   :  { %v2332_v42 = vpop.f32.mrf.mxu3 }
 0x68e   :  { %v2365_v8 = vmul.f32 0.16666667, %v2332_v42 }
 0x690   :  { %v2381_v32 = vadd.f32 0.5, %v2365_v8 }
 0x692   :  { %v2397_v57 = vmax.f32 %v2381_v32, 0.0 }
 0x694   :  { %v2413_v52 = vmin.f32 %v2397_v57, 1.0 }
 0x695   :  { %v2335_v31 = vpop.f32.mrf.mxu3 }
 0x696   :  { %v2426_v6 = vpack.c.bf16 %v2413_v52, %v2412_v11  ;;  %v2366_v18 = vmul.f32 0.16666667, %v2335_v31 }
 0x698   :  { %2790 = vmatmul.msk.bf16.gmra.mxu2 %vm2433_vm2, %v2426_v6  ;;  %v2382_v28 = vadd.f32 0.5, %v2366_v18 }
 0x69a   :  { %v2398_v46 = vmax.f32 %v2382_v28, 0.0 }
 0x69c   :  { %v2414_v35 = vmin.f32 %v2398_v46, 1.0 }
 0x69d   :  { %v2337_v49 = vpop.f32.mrf.mxu3 }
 0x69e   :  { %v2367_v39 = vmul.f32 0.16666667, %v2337_v49 }
 0x6a0   :  { %v2383_v22 = vadd.f32 0.5, %v2367_v39 }
 0x6a2   :  { %v2399_v4 = vmax.f32 %v2383_v22, 0.0 }
 0x6a4   :  { %v2415_v44 = vmin.f32 %v2399_v4, 1.0 }
 0x6a5   :  { %v2340_v36 = vpop.f32.mrf.mxu3 }
 0x6a6   :  { %v2427_v45 = vpack.c.bf16 %v2415_v44, %v2414_v35  ;;  %v2368_v58 = vmul.f32 0.16666667, %v2340_v36  ;;  %v5665_v35 = vld [vmem:[#allocation83_spill] sm:$0xff]  ;;  %v5666_v36 = vld [vmem:[#allocation85_spill] sm:$0xff] }
 0x6a8   :  { %2791 = vmatmul.msk.bf16.gmra.mxu2 %vm2433_vm2, %v2427_v45  ;;  %v2384_v12 = vadd.f32 0.5, %v2368_v58 }
 0x6aa   :  { %v2400_v23 = vmax.f32 %v2384_v12, 0.0 }
 0x6ac   :  { %v2416_v25 = vmin.f32 %v2400_v23, 1.0 }
 0x6ad   :  { %v2342_v2 = vpop.f32.mrf.mxu3 }
 0x6ae   :  { %v2369_v53 = vmul.f32 0.16666667, %v2342_v2 }
 0x6b0   :  { %v2385_v3 = vadd.f32 0.5, %v2369_v53  ;;  %v5667_v53 = vld [vmem:[#allocation110_spill] sm:$0xff] }
 0x6b2   :  { %v2401_v41 = vmax.f32 %v2385_v3, 0.0  ;;  %v5668_v3 = vld [vmem:[#allocation86_spill] sm:$0xff] }
 0x6b4   :  { %v2417_v63 = vmin.f32 %v2401_v41, 1.0 }
 0x6b5   :  { %v2345_v14 = vpop.f32.mrf.mxu3 }
 0x6b6   :  { %v2428_v26 = vpack.c.bf16 %v2417_v63, %v2416_v25  ;;  %v2370_v13 = vmul.f32 0.16666667, %v2345_v14 }
 0x6b8   :  { %2792 = vmatmul.msk.bf16.gmra.mxu2 %vm2433_vm2, %v2428_v26  ;;  %v2386_v17 = vadd.f32 0.5, %v2370_v13 }
 0x6ba   :  { %v2402_v1 = vmax.f32 %v2386_v17, 0.0 }
 0x6bc   :  { %v2418_v47 = vmin.f32 %v2402_v1, 1.0 }
 0x6bd   :  { %v2347_v16 = vpop.f32.mrf.mxu3 }
 0x6be   :  { %v2371_v55 = vmul.f32 0.16666667, %v2347_v16 }
 0x6c0   :  { %v2387_v48 = vadd.f32 0.5, %v2371_v55 }
 0x6c2   :  { %v2403_v34 = vmax.f32 %v2387_v48, 0.0 }
 0x6c4   :  { %v2419_v38 = vmin.f32 %v2403_v34, 1.0 }
 0x6c5   :  { %v2350_v37 = vpop.f32.mrf.mxu3 }
 0x6c6   :  { %v2429_v40 = vpack.c.bf16 %v2419_v38, %v2418_v47  ;;  %v2372_v29 = vmul.f32 0.16666667, %v2350_v37 }
 0x6c8   :  { %2793 = vmatmul.msk.bf16.gmra.mxu2 %vm2433_vm2, %v2429_v40  ;;  %v2388_v56 = vadd.f32 0.5, %v2372_v29 }
 0x6ca   :  { %v2404_v61 = vmax.f32 %v2388_v56, 0.0 }
 0x6cc   :  { %v2420_v42 = vmin.f32 %v2404_v61, 1.0 }
 0x6cd   :  { %v2352_v27 = vpop.f32.mrf.mxu3 }
 0x6ce   :  { %v2373_v19 = vmul.f32 0.16666667, %v2352_v27 }
 0x6d0   :  { %v2389_v0 = vadd.f32 0.5, %v2373_v19 }
 0x6d2   :  { %v2405_v30 = vmax.f32 %v2389_v0, 0.0 }
 0x6d4   :  { %v2421_v8 = vmin.f32 %v2405_v30, 1.0 }
 0x6d5   :  { %v2355_v50 = vpop.f32.mrf.mxu3 }
 0x6d6   :  { %v2430_v32 = vpack.c.bf16 %v2421_v8, %v2420_v42  ;;  %v2374_v57 = vmul.f32 0.16666667, %v2355_v50 }
 0x6d8   :  { %2794 = vmatmul.msk.bf16.gmra.mxu2 %vm2433_vm2, %v2430_v32  ;;  %v2390_v11 = vadd.f32 0.5, %v2374_v57 }
 0x6da   :  { %v2406_v6 = vmax.f32 %v2390_v11, 0.0 }
 0x6dc   :  { %v2422_v49 = vmin.f32 %v2406_v6, 1.0 }
 0x6dd   :  { %v2357_v52 = vpop.f32.mrf.mxu3 }
 0x6de   :  { %v2375_v31 = vmul.f32 0.16666667, %v2357_v52 }
 0x6e0   :  { %v2391_v18 = vadd.f32 0.5, %v2375_v31 }
 0x6e2   :  { %v2407_v28 = vmax.f32 %v2391_v18, 0.0 }
 0x6e4   :  { %v2423_v39 = vmin.f32 %v2407_v28, 1.0 }
 0x6e6   :  { %v2431_v46 = vpack.c.bf16 %v2423_v39, %v2422_v49 }
 0x6e8   :  { %2795 = vmatmul.msk.bf16.gmra.mxu2 %vm2433_vm2, %v2431_v46  ;;  %v3173_v46 = vld [vmem:[%s5289_s0 + $0x8] sm:$0xff] }
 0x6fb   :  { %v2471_v22 = vpop.f32.mrf.mxu2 }
 0x6fc   :  { %v2511_v44 = vmul.f32 %v2471_v22, %v5665_v35 }
 0x703   :  { %v2473_v4 = vpop.f32.mrf.mxu2 }
 0x704   :  { %v2512_v45 = vmul.f32 %v2473_v4, %v5666_v36 }
 0x706   :  { %v2535_v58 = vpack.c.bf16 %v2512_v45, %v2511_v44 }
 0x70b   :  { %v2476_v12 = vpop.f32.mrf.mxu2 }
 0x70c   :  { %v2513_v23 = vmul.f32 %v2476_v12, %v5667_v53  ;;  %v3174_v53 = vld [vmem:[%s5289_s0 + $0x10] sm:$0xff] }
 0x713   :  { %v2478_v2 = vpop.f32.mrf.mxu2 }
 0x714   :  { %v2514_v41 = vmul.f32 %v2478_v2, %v5668_v3 }
 0x716   :  { %v2536_v25 = vpack.c.bf16 %v2514_v41, %v2513_v23 }
 0x71b   :  { %v2481_v63 = vpop.f32.mrf.mxu2 }
 0x71c   :  { %v2515_v26 = vmul.f32 %v2481_v63, %v4778_v10 }
 0x723   :  { %v2483_v14 = vpop.f32.mrf.mxu2 }
 0x724   :  { %v2516_v13 = vmul.f32 %v2483_v14, %v4780_v43 }
 0x726   :  { %v2537_v17 = vpack.c.bf16 %v2516_v13, %v2515_v26 }
 0x72b   :  { %v2486_v16 = vpop.f32.mrf.mxu2 }
 0x72c   :  { %v2517_v1 = vmul.f32 %v2486_v16, %v4804_v33  ;;  %v2528_v33 = vld [vmem:[%s5300_s11 + $0x8] sm:$0xff] }
 0x72d   :  { %2581 = vperm.xlu1 %2983, %v2528_v33   ;;  %2603 = vperm.xlu2 %2986, %v2528_v33  }
 0x733   :  { %v2488_v55 = vpop.f32.mrf.mxu2 }
 0x734   :  { %v2518_v48 = vmul.f32 %v2488_v55, %v4806_v24 }
 0x735   :  { %2985 = vset.pattern.permute.xlu1 %v5649_v21 }
 0x736   :  { %v2538_v34 = vpack.c.bf16 %v2518_v48, %v2517_v1  ;;  %2599 = vperm.xlu1 %2985, %v5185_v54   ;;  %v3175_v48 = vld [vmem:[%s5289_s0 + $0x18] sm:$0xff] }
 0x73b   :  { %v2491_v47 = vpop.f32.mrf.mxu2 }
 0x73e   :  { %2607 = vperm.xlu1 %2985, %v5194_v60  }
 0x743   :  { %v2493_v38 = vpop.f32.mrf.mxu2 }
 0x74b   :  { %v2496_v37 = vpop.f32.mrf.mxu2 }
 0x74c   :  { %v2521_v8 = vmul.f32 %v2496_v37, %v5069_v20  ;;  %v2577_v20 = vpop.permute.xlu2 %2576 }
 0x753   :  { %v2498_v40 = vpop.f32.mrf.mxu2 }
 0x754   :  { %v2522_v30 = vmul.f32 %v2498_v40, %v5071_v15  ;;  %v2530_v15 = vld [vmem:[%s5300_s11 + $0x18] sm:$0xff]  ;;  %v2587_v50 = vpop.permute.xlu2 %2586 }
 0x755   :  { %2591 = vperm.xlu0 %2984, %v2530_v15   ;;  %2611 = vperm.xlu2 %2986, %v2530_v15  }
 0x75b   :  { %v2501_v29 = vpop.f32.mrf.mxu2 }
 0x75c   :  { %v2523_v24 = vmul.f32 %v2501_v29, %v5131_v9 }
 0x75d   :  { %2987 = vset.pattern.permute.xlu0 %v5649_v21  ;;  %v3172_v21 = vld [vmem:[%s5289_s0] sm:$0xff] }
 0x763   :  { %v2503_v56 = vpop.f32.mrf.mxu2 }
 0x764   :  { %v2524_v61 = vmul.f32 %v2503_v56, %v5133_v51  ;;  %v2519_v51 = vmul.f32 %v2491_v47, %v4948_v62  ;;  %v2830_v62 = vld [vmem:[%s5299_s10] sm:$0xff] }
 0x766   :  { %v2541_v42 = vpack.c.bf16 %v2524_v61, %v2523_v24 }
 0x76b   :  { %v2506_v27 = vpop.f32.mrf.mxu2 }
 0x76c   :  { %v2525_v10 = vmul.f32 %v2506_v27, %v5150_v59  ;;  %v2540_v59 = vpack.c.bf16 %v2522_v30, %v2521_v8 }
 0x773   :  { %v2508_v19 = vpop.f32.mrf.mxu2 }
 0x774   :  { %v2526_v43 = vmul.f32 %v2508_v19, %v5148_v7  ;;  %v2520_v7 = vmul.f32 %v2493_v38, %v4950_v5  ;;  %v2831_v5 = vld [vmem:[%s5299_s10 + $0x8] sm:$0xff] }
 0x776   :  { %v2542_v0 = vpack.c.bf16 %v2526_v43, %v2525_v10  ;;  %v2539_v9 = vpack.c.bf16 %v2520_v7, %v2519_v51 }
 0x778   :  { %2555 = vmatpush.bf16.msrb.mxu0 %v2542_v0 }
 0x77c   :  { %2556 = vmatpush.bf16.msrb.mxu0 %v2541_v42 }
 0x780   :  { %2557 = vmatpush.bf16.msrb.mxu0 %v2540_v59 }
 0x784   :  { %2558 = vmatpush.bf16.msrb.mxu0 %v2539_v9 }
 0x787   :  { %v2604_v18 = vpop.permute.xlu2 %2603 }
 0x788   :  { %2559 = vmatpush.bf16.msrb.mxu0 %v2538_v34 }
 0x78c   :  { %2560 = vmatpush.bf16.msrb.mxu0 %v2537_v17 }
 0x790   :  { %2561 = vmatpush.bf16.msrb.mxu0 %v2536_v25 }
 0x794   :  { %2562 = vmatpush.bf16.msrb.mxu0 %v2535_v58 }
 0x797   :  { %2563 = vmatmul.bf16.vlgmr.msrb.gmra.mxu0 %v2830_v62 }
 0x79f   :  { %v2582_v54 = vpop.permute.xlu1 %2581 }
 0x7a7   :  { %2568 = vmatmul.bf16.gmra.mxu0 %v2831_v5 }
 0x7a8   :  { %v2600_v32 = vpop.permute.xlu1 %2599 }
 0x7af   :  { %v2612_v16 = vpop.permute.xlu2 %2611 }
 0x7b0   :  { %v2608_v44 = vpop.permute.xlu1 %2607 }
 0x7c7   :  { %v2592_v3 = vpop.permute.xlu0 %2591 }
 0x814   :  { %v2564_v60 = vpop.f32.mrf.mxu0 }
 0x815   :  { %v2594_v57 = vmul.f32 %v2577_v20, %v2564_v60 }
 0x817   :  { %v2614_v11 = vadd.f32 %v2600_v32, %v2594_v57 }
 0x819   :  { %v2618_v52 = vadd.f32 %v3172_v21, %v2614_v11 }
 0x81b   :  { %v2622_v31 = vsub.f32 0.0, %v2618_v52 }
 0x81c   :  { %v2566_v6 = vpop.f32.mrf.mxu0 }
 0x81d   :  { %v2626_v28 = vmul.f32 1.442695, %v2622_v31  ;;  %v2595_v49 = vmul.f32 %v2582_v54, %v2566_v6 }
 0x81f   :  { %3117 = vpow2.f32 %v2626_v28  ;;  %v2615_v39 = vadd.f32 %v2604_v18, %v2595_v49 }
 0x821   :  { %v2619_v22 = vadd.f32 %v3173_v46, %v2615_v39 }
 0x823   :  { %v2623_v4 = vsub.f32 0.0, %v2619_v22 }
 0x824   :  { %v2569_v35 = vpop.f32.mrf.mxu0 }
 0x825   :  { %v3118_v36 = vpop.eup %3117  ;;  %v2596_v45 = vmul.f32 %v2587_v50, %v2569_v35  ;;  %v2628_v58 = vmul.f32 1.442695, %v2623_v4 }
 0x826   :  { %v2634_v12 = vadd.f32 1.0, %v3118_v36 }
 0x827   :  { %v2616_v2 = vadd.f32 %v2608_v44, %v2596_v45  ;;  %3119 = vpow2.f32 %v2628_v58 }
 0x828   :  { %3121 = vrcp.f32 %v2634_v12 }
 0x829   :  { %v2620_v23 = vadd.f32 %v3174_v53, %v2616_v2 }
 0x82b   :  { %v2624_v41 = vsub.f32 0.0, %v2620_v23 }
 0x82c   :  { %v2571_v25 = vpop.f32.mrf.mxu0 }
 0x82d   :  { %v3120_v63 = vpop.eup %3119  ;;  %v2630_v14 = vmul.f32 1.442695, %v2624_v41  ;;  %v2597_v26 = vmul.f32 %v2592_v3, %v2571_v25 }
 0x82e   :  { %v3122_v13 = vpop.eup %3121  ;;  %v2635_v17 = vadd.f32 1.0, %v3120_v63 }
 0x82f   :  { %v2642_v55 = vmul.f32 %v3122_v13, %v2618_v52  ;;  %3123 = vpow2.f32 %v2630_v14  ;;  %v2617_v1 = vadd.f32 %v2612_v16, %v2597_v26 }
 0x830   :  { %3125 = vrcp.f32 %v2635_v17 }
 0x831   :  { %2646 = vst [vmem:[#allocation2] sm:$0xff] %v2642_v55  ;;  %v2621_v34 = vadd.f32 %v3175_v48, %v2617_v1 }
 0x833   :  { %v2625_v47 = vsub.f32 0.0, %v2621_v34 }
 0x835   :  { %v3124_v38 = vpop.eup %3123  ;;  %v2632_v37 = vmul.f32 1.442695, %v2625_v47 }
 0x836   :  { %v3126_v40 = vpop.eup %3125  ;;  %v2636_v29 = vadd.f32 1.0, %v3124_v38 }
 0x837   :  { %v2643_v56 = vmul.f32 %v3126_v40, %v2619_v22  ;;  %3127 = vpow2.f32 %v2632_v37 }
 0x838   :  { %3129 = vrcp.f32 %v2636_v29 }
 0x839   :  { %2647 = vst [vmem:[#allocation2 + $0x8] sm:$0xff] %v2643_v56 }
 0x83d   :  { %v3128_v27 = vpop.eup %3127 }
 0x83e   :  { %v3130_v19 = vpop.eup %3129  ;;  %v2637_v10 = vadd.f32 1.0, %v3128_v27 }
 0x83f   :  { %v2644_v43 = vmul.f32 %v3130_v19, %v2620_v23 }
 0x840   :  { %3131 = vrcp.f32 %v2637_v10 }
 0x841   :  { %2648 = vst [vmem:[#allocation2 + $0x10] sm:$0xff] %v2644_v43 }
 0x846   :  { %v3132_v61 = vpop.eup %3131 }
 0x847   :  { %v2645_v0 = vmul.f32 %v3132_v61, %v2621_v34 }
 0x849   :  { %2649 = vst [vmem:[#allocation2 + $0x18] sm:$0xff] %v2645_v0 }
 0x84a   :  { %2662 = dma.vmem_to_hbm [thread:$0]  %s2655_s25, 512, %s2657_s18, [#allocation3], %s3220_s8, %s3220_s8, %s3205_s19  }
 0x84b   :  { %3200 = dma.done.wait [#allocation3], 512  }
 0x84c   :  { %3201 = vsyncadd [#allocation3], 4294966784 }
 0x84d   :  { %2667 = vsyncpa [#allocation3], 1 }

</bundles_post_ra>
